<compile_context>
chip_gen: v7x
topology: tpu7x:2x2x1
jax: 0.10.0
libtpu: 0.0.40
codegen_flags: <defaults>
</compile_context>

<pallas_src>
import math
import functools

import jax
import jax.numpy as jnp
from jax.experimental import pallas as pl
from jax.experimental.pallas import tpu as pltpu


# ----------------------------- in-kernel helpers -----------------------------

def _layernorm(x, gamma, beta, eps=1e-5):
    # torch.nn.LayerNorm over the last axis (biased variance, eps inside sqrt).
    # Two-pass centered statistics: x*sqrt(C)+pos has |mean| >> std, so the one-pass
    # E[x^2]-E[x]^2 form cancels badly (review correctness concern).
    mu = jnp.mean(x, axis=-1, keepdims=True)
    xc = x - mu
    var = jnp.mean(xc * xc, axis=-1, keepdims=True)
    return xc * jax.lax.rsqrt(var + eps) * gamma + beta


def _erf(x):
    # Abramowitz & Stegun 7.1.26 polynomial erf, |abs err| < 1.5e-7 (f32 math).
    a1, a2, a3, a4, a5 = 0.254829592, -0.284496736, 1.421413741, -1.453152027, 1.061405429
    p = 0.3275911
    ax = jnp.abs(x)
    t = pl.reciprocal(1.0 + p * ax, approx=True)     # EUP slot; ~1e-3 rel err, fine here
    poly = ((((a5 * t + a4) * t + a3) * t + a2) * t + a1) * t
    y = 1.0 - poly * jnp.exp(-ax * ax)
    return jnp.where(x >= 0, y, -y)


def _gelu_exact(x):
    # torch.nn.GELU() default (erf-based, non-approximate).
    return 0.5 * x * (1.0 + _erf(x * (1.0 / math.sqrt(2.0))))


# ------------------------ pass 1: LN1 + Q / K / V projection ------------------------

def qkv_proj_kernel(x_ref, pos_ref, g1_ref, b1_ref, wq_ref, bq_ref, wkv_ref, bkv_ref,
                    q_ref, k_ref, v_ref, *, num_heads, dim, sqrt_dim):
    bf16 = jnp.bfloat16
    hd = dim // num_heads

    xp = x_ref[...] * sqrt_dim + pos_ref[...]
    xn = _layernorm(xp, g1_ref[...], b1_ref[...])
    xnb = xn.astype(bf16)

    # Full-width MXU matmuls (scale pre-folded into Wq / bq by the wrapper).
    q = (jnp.dot(xnb, wq_ref[...], preferred_element_type=jnp.float32)
         + bq_ref[...]).astype(bf16)                                     # (tr, C)
    kv = (jnp.dot(xnb, wkv_ref[...], preferred_element_type=jnp.float32)
          + bkv_ref[...]).astype(bf16)                                   # (tr, 2C)

    # Split heads once here (outside the attention hot loop); outputs are head-major.
    for h in range(num_heads):
        lo = h * hd
        q_ref[h] = q[:, lo:lo + hd]
        k_ref[h] = kv[:, lo:lo + hd]
        v_ref[h] = kv[:, dim + lo:dim + lo + hd]


# ------------------- pass 2: flash attention + output proj + residual -------------------

def attention_kernel(q_ref, k_ref, v_ref, x_ref, wp_ref, bp_ref, o_ref,
                     acc_sc, m_sc, l_sc, *, num_heads, head_dim):
    ki = pl.program_id(2)
    nk = pl.num_programs(2)
    bf16 = jnp.bfloat16

    @pl.when(ki == 0)
    def _init():
        acc_sc[...] = jnp.zeros(acc_sc.shape, acc_sc.dtype)
        m_sc[...] = jnp.full(m_sc.shape, -jnp.inf, m_sc.dtype)
        l_sc[...] = jnp.zeros(l_sc.shape, l_sc.dtype)

    # Head-batched online-softmax update (all heads at once; no lane-offset RMW).
    q = q_ref[...]                                   # (H, tq, hd) bf16, pre-scaled
    k = k_ref[...]                                   # (H, tk, hd) bf16
    v = v_ref[...]                                   # (H, tk, hd) bf16
    s = jnp.einsum('hqd,hkd->hqk', q, k,
                   preferred_element_type=jnp.float32)          # (H, tq, tk) f32
    m_prev = m_sc[...]
    m_new = jnp.maximum(m_prev, jnp.max(s, axis=-1, keepdims=True))
    alpha = jnp.exp(m_prev - m_new)
    p = jnp.exp(s - m_new)
    l_sc[...] = alpha * l_sc[...] + jnp.sum(p, axis=-1, keepdims=True)
    pv = jnp.einsum('hqk,hkd->hqd', p.astype(bf16), v,
                    preferred_element_type=jnp.float32)          # (H, tq, hd) f32
    acc_sc[...] = alpha * acc_sc[...] + pv
    m_sc[...] = m_new

    @pl.when(ki == nk - 1)
    def _finalize():
        acc = acc_sc[...] / l_sc[...]                # exact normalization, once per tile
        out = x_ref[...] + bp_ref[...]               # residual 1 + proj bias, (tq, C) f32
        # Recombine heads through the output projection: H static (tq,hd)@(hd,C) matmuls
        # accumulated into the lane-dense (tq, C) result (runs once per query tile).
        for h in range(num_heads):
            lo = h * head_dim
            out = out + jnp.dot(acc[h].astype(bf16), wp_ref[lo:lo + head_dim, :],
                                preferred_element_type=jnp.float32)
        o_ref[...] = out.astype(o_ref.dtype)


# -------------------- pass 3: LN2 + MLP (hidden-dim tiled) + residual --------------------

def mlp_kernel(x1_ref, g2_ref, b2_ref, w1_ref, fb1_ref, w2_ref, fb2_ref, o_ref,
               xn_sc, acc_sc):
    hk = pl.program_id(2)
    nh = pl.num_programs(2)
    bf16 = jnp.bfloat16

    @pl.when(hk == 0)
    def _init():
        xn = _layernorm(x1_ref[...], g2_ref[...], b2_ref[...])
        xn_sc[...] = xn.astype(bf16)
        acc_sc[...] = jnp.zeros(acc_sc.shape, acc_sc.dtype)

    # One hidden chunk: fc1 -> GELU -> partial fc2 product accumulated in f32.
    h1 = jnp.dot(xn_sc[...], w1_ref[...],
                 preferred_element_type=jnp.float32) + fb1_ref[...]       # (tr, th)
    h1 = _gelu_exact(h1)
    acc_sc[...] += jnp.dot(h1.astype(bf16), w2_ref[...],
                           preferred_element_type=jnp.float32)            # (tr, C)

    @pl.when(hk == nh - 1)
    def _finalize():
        o_ref[...] = (x1_ref[...] + acc_sc[...] + fb2_ref[...]).astype(o_ref.dtype)


# -------------------------------- wrapper -------------------------------------

def transformer_block(x, params, num_heads, *, tq=256, tk=256, tr=256, th=512):
    B, L, C = x.shape
    hidden = params["w1"].shape[1]
    tq, tk, tr = min(tq, L), min(tk, L), min(tr, L)
    th = min(th, hidden)
    assert L % tq == 0 and L % tk == 0 and L % tr == 0, "L must divide the tile sizes"
    assert hidden % th == 0
    assert C % num_heads == 0
    hd = C // num_heads
    assert hd % 8 == 0, "head_dim must be a sublane multiple"
    scale = hd ** (-0.5)
    bf16 = jnp.bfloat16
    f32 = jnp.float32
    H = num_heads

    # Fold the attention scale into Wq / bq; cast matmul weights to bf16 (MXU inputs).
    wq_s = (params["wq"] * scale).astype(bf16)
    bq_s = params["bq"] * scale
    wkv = params["wkv"].astype(bf16)
    wp = params["wp"].astype(bf16)
    w1 = params["w1"].astype(bf16)
    w2 = params["w2"].astype(bf16)

    def cparams(sem):
        # 48 MiB: under v7x's 64 MiB physical VMEM, above v5e's 16 MiB scoped default.
        return pltpu.CompilerParams(dimension_semantics=sem,
                                    vmem_limit_bytes=48 * 1024 * 1024)

    # ---------------- pass 1: LN1 + QKV projection (once per row) ----------------
    qkv_k = functools.partial(qkv_proj_kernel, num_heads=H, dim=C, sqrt_dim=math.sqrt(C))
    head_major = jax.ShapeDtypeStruct((B, H, L, hd), bf16)

    def c1(shape):  # constant-index weight blocks (resident in VMEM)
        return pl.BlockSpec(shape, lambda b, r: (0,) * len(shape))

    q, k, v = pl.pallas_call(
        qkv_k,
        out_shape=(head_major, head_major, head_major),
        grid_spec=pltpu.PrefetchScalarGridSpec(
            num_scalar_prefetch=0,
            grid=(B, L // tr),
            in_specs=[
                pl.BlockSpec((None, tr, C), lambda b, r: (b, r, 0)),    # x row tile
                pl.BlockSpec((tr, C), lambda b, r: (r, 0)),             # abs pos rows
                c1((1, C)), c1((1, C)),                                 # norm1 gamma/beta
                c1((C, C)), c1((1, C)),                                 # to_q W (scaled)/b
                c1((C, 2 * C)), c1((1, 2 * C)),                         # to_kv W / b
            ],
            out_specs=[pl.BlockSpec((None, H, tr, hd), lambda b, r: (b, 0, r, 0))] * 3,
        ),
        compiler_params=cparams(("parallel", "parallel")),
    )(x, params["pos"], params["n1_g"], params["n1_b"], wq_s, bq_s, wkv, params["bkv"])

    # ---------------- pass 2: flash attention + proj + residual ----------------
    attn_k = functools.partial(attention_kernel, num_heads=H, head_dim=hd)

    def c2(shape):
        return pl.BlockSpec(shape, lambda b, qi, ki: (0,) * len(shape))

    x1 = pl.pallas_call(
        attn_k,
        out_shape=jax.ShapeDtypeStruct((B, L, C), x.dtype),
        grid_spec=pltpu.PrefetchScalarGridSpec(
            num_scalar_prefetch=0,
            grid=(B, L // tq, L // tk),
            in_specs=[
                pl.BlockSpec((None, H, tq, hd), lambda b, qi, ki: (b, 0, qi, 0)),  # Q
                pl.BlockSpec((None, H, tk, hd), lambda b, qi, ki: (b, 0, ki, 0)),  # K
                pl.BlockSpec((None, H, tk, hd), lambda b, qi, ki: (b, 0, ki, 0)),  # V
                pl.BlockSpec((None, tq, C), lambda b, qi, ki: (b, qi, 0)),         # x (residual)
                c2((C, C)), c2((1, C)),                                            # proj W / b
            ],
            out_specs=pl.BlockSpec((None, tq, C), lambda b, qi, ki: (b, qi, 0)),
            scratch_shapes=[
                pltpu.VMEM((H, tq, hd), f32),      # flash accumulator (all heads)
                pltpu.VMEM((H, tq, 1), f32),       # running max m
                pltpu.VMEM((H, tq, 1), f32),       # running sum l
            ],
        ),
        compiler_params=cparams(("parallel", "parallel", "arbitrary")),
    )(q, k, v, x, wp, params["bp"])

    # ---------------- pass 3: LN2 + MLP (hidden tiled) + residual ----------------
    out = pl.pallas_call(
        mlp_kernel,
        out_shape=jax.ShapeDtypeStruct((B, L, C), x.dtype),
        grid_spec=pltpu.PrefetchScalarGridSpec(
            num_scalar_prefetch=0,
            grid=(B, L // tr, hidden // th),
            in_specs=[
                pl.BlockSpec((None, tr, C), lambda b, r, hk: (b, r, 0)),   # x1 row tile
                pl.BlockSpec((1, C), lambda b, r, hk: (0, 0)),             # norm2 gamma
                pl.BlockSpec((1, C), lambda b, r, hk: (0, 0)),             # norm2 beta
                pl.BlockSpec((C, th), lambda b, r, hk: (0, hk)),           # fc1 W chunk
                pl.BlockSpec((1, th), lambda b, r, hk: (0, hk)),           # fc1 b chunk
                pl.BlockSpec((th, C), lambda b, r, hk: (hk, 0)),           # fc2 W chunk
                pl.BlockSpec((1, C), lambda b, r, hk: (0, 0)),             # fc2 b
            ],
            out_specs=pl.BlockSpec((None, tr, C), lambda b, r, hk: (b, r, 0)),
            scratch_shapes=[
                pltpu.VMEM((tr, C), bf16),         # LN2(x1) cached across hidden chunks
                pltpu.VMEM((tr, C), f32),          # fc2 partial-product accumulator
            ],
        ),
        compiler_params=cparams(("parallel", "parallel", "arbitrary")),
    )(x1, params["n2_g"], params["n2_b"], w1, params["fc1_b"], w2, params["fc2_b"])

    return out


# ------------------------- pure-JAX reference (check) -------------------------

def reference(x, params, num_heads):
    B, L, C = x.shape
    hd = C // num_heads
    scale = hd ** (-0.5)

    def ln(t, g, b):
        mu = t.mean(-1, keepdims=True)
        var = ((t - mu) ** 2).mean(-1, keepdims=True)
        return (t - mu) / jnp.sqrt(var + 1e-5) * g + b

    xp = x * math.sqrt(C) + params["pos"][None]
    xn = ln(xp, params["n1_g"], params["n1_b"])
    q = xn @ params["wq"] + params["bq"]
    kv = xn @ params["wkv"] + params["bkv"]
    k, v = kv[..., :C], kv[..., C:]

    def split_heads(t):
        return t.reshape(B, L, num_heads, hd).transpose(0, 2, 1, 3)

    qh, kh, vh = split_heads(q) * scale, split_heads(k), split_heads(v)
    s = qh @ jnp.swapaxes(kh, -1, -2)
    p = jax.nn.softmax(s, axis=-1)
    o = (p @ vh).transpose(0, 2, 1, 3).reshape(B, L, C)
    attn = o @ params["wp"] + params["bp"]
    x1 = x + attn
    xn2 = ln(x1, params["n2_g"], params["n2_b"])
    h1 = jax.nn.gelu(xn2 @ params["w1"] + params["fc1_b"], approximate=False)
    ffn = h1 @ params["w2"] + params["fc2_b"]
    return x1 + ffn


# ----------------------------------- main -------------------------------------

if __name__ == "__main__":
    # Small but lane-dense config: C, hidden multiples of 128; L = 256 (one 256-tile).
    B, L, C = 2, 256, 128
    num_heads = 4
    mlp_ratio = 4.0
    hidden = int(C * mlp_ratio)
    f32 = jnp.float32

    key = jax.random.PRNGKey(0)
    keys = jax.random.split(key, 16)
    x = jax.random.normal(keys[0], (B, L, C), f32)

    # AbsPositionalEncoding table (sin on even cols, cos on odd cols).
    pos_l = jnp.arange(L, dtype=f32)[:, None]
    div = jnp.power(10000.0, jnp.arange(0, C, 2, dtype=f32) / C)
    ang = pos_l / div
    pos = (jnp.zeros((L, C), f32)
           .at[:, 0::2].set(jnp.sin(ang))
           .at[:, 1::2].set(jnp.cos(ang)))

    s = 0.02  # deterministic synthetic parameter init
    params = dict(
        pos=pos,
        n1_g=1.0 + s * jax.random.normal(keys[1], (1, C), f32),
        n1_b=s * jax.random.normal(keys[2], (1, C), f32),
        wq=s * jax.random.normal(keys[3], (C, C), f32),
        bq=s * jax.random.normal(keys[4], (1, C), f32),
        wkv=s * jax.random.normal(keys[5], (C, 2 * C), f32),
        bkv=s * jax.random.normal(keys[6], (1, 2 * C), f32),
        wp=s * jax.random.normal(keys[7], (C, C), f32),
        bp=s * jax.random.normal(keys[8], (1, C), f32),
        n2_g=1.0 + s * jax.random.normal(keys[9], (1, C), f32),
        n2_b=s * jax.random.normal(keys[10], (1, C), f32),
        w1=s * jax.random.normal(keys[11], (C, hidden), f32),
        fc1_b=s * jax.random.normal(keys[12], (1, hidden), f32),
        w2=s * jax.random.normal(keys[13], (hidden, C), f32),
        fc2_b=s * jax.random.normal(keys[14], (1, C), f32),
    )

    out = transformer_block(x, params, num_heads)
    out = jax.block_until_ready(out)

    ref = reference(x, params, num_heads)
    err = float(jnp.max(jnp.abs(out - ref)))
    # Tolerance accounts for bf16 MXU inputs (f32 accumulation) and the erf polynomial.
    assert jnp.allclose(out, ref, atol=1e-2, rtol=1e-2), f"max |err| = {err}"
    print("KERNEL_OK")
</pallas_src>

<mosaic_0001>
module attributes {stable_mosaic.version = 11 : i64} {
  func.func @qkv_proj_kernel(%arg0: i32, %arg1: i32, %arg2: memref<1x256x128xf32, #tpu.memory_space<vmem>>, %arg3: memref<256x128xf32, #tpu.memory_space<vmem>>, %arg4: memref<1x128xf32, #tpu.memory_space<vmem>>, %arg5: memref<1x128xf32, #tpu.memory_space<vmem>>, %arg6: memref<128x128xbf16, #tpu.memory_space<vmem>>, %arg7: memref<1x128xf32, #tpu.memory_space<vmem>>, %arg8: memref<128x256xbf16, #tpu.memory_space<vmem>>, %arg9: memref<1x256xf32, #tpu.memory_space<vmem>>, %arg10: memref<1x4x256x32xbf16, #tpu.memory_space<vmem>>, %arg11: memref<1x4x256x32xbf16, #tpu.memory_space<vmem>>, %arg12: memref<1x4x256x32xbf16, #tpu.memory_space<vmem>>) attributes {dimension_semantics = [#tpu.dimension_semantics<parallel>, #tpu.dimension_semantics<parallel>], iteration_bounds = array<i64: 2, 1>, scalar_prefetch = 0 : i64, scratch_operands = 0 : i64, tpu.core_type = #tpu.core_type<tc>, window_params = [{transform_indices = @transform_0, window_bounds = array<i64: 1, 256, 128>}, {transform_indices = @transform_1, window_bounds = array<i64: 256, 128>}, {pipeline_mode = #tpu.pipeline_mode<synchronous>, transform_indices = @transform_2, window_bounds = array<i64: 1, 128>}, {pipeline_mode = #tpu.pipeline_mode<synchronous>, transform_indices = @transform_3, window_bounds = array<i64: 1, 128>}, {pipeline_mode = #tpu.pipeline_mode<synchronous>, transform_indices = @transform_4, window_bounds = array<i64: 128, 128>}, {pipeline_mode = #tpu.pipeline_mode<synchronous>, transform_indices = @transform_5, window_bounds = array<i64: 1, 128>}, {pipeline_mode = #tpu.pipeline_mode<synchronous>, transform_indices = @transform_6, window_bounds = array<i64: 128, 256>}, {pipeline_mode = #tpu.pipeline_mode<synchronous>, transform_indices = @transform_7, window_bounds = array<i64: 1, 256>}, {transform_indices = @transform_8, window_bounds = array<i64: 1, 4, 256, 32>}, {transform_indices = @transform_9, window_bounds = array<i64: 1, 4, 256, 32>}, {transform_indices = @transform_10, window_bounds = array<i64: 1, 4, 256, 32>}]} {
    %c0 = arith.constant 0 : index
    %c0_0 = arith.constant 0 : index
    %c0_1 = arith.constant 0 : index
    %0 = vector.load %arg2[%c0, %c0_0, %c0_1] : memref<1x256x128xf32, #tpu.memory_space<vmem>>, vector<1x256x128xf32>
    %1 = vector.shape_cast %0 : vector<1x256x128xf32> to vector<256x128xf32>
    %cst = arith.constant 11.3137083 : f32
    %2 = vector.broadcast %cst : f32 to vector<256x128xf32>
    %3 = arith.mulf %1, %2 : vector<256x128xf32>
    %c0_2 = arith.constant 0 : index
    %c0_3 = arith.constant 0 : index
    %4 = vector.load %arg3[%c0_2, %c0_3] : memref<256x128xf32, #tpu.memory_space<vmem>>, vector<256x128xf32>
    %5 = arith.addf %3, %4 : vector<256x128xf32>
    %c0_4 = arith.constant 0 : index
    %c0_5 = arith.constant 0 : index
    %6 = vector.load %arg4[%c0_4, %c0_5] : memref<1x128xf32, #tpu.memory_space<vmem>>, vector<1x128xf32>
    %c0_6 = arith.constant 0 : index
    %c0_7 = arith.constant 0 : index
    %7 = vector.load %arg5[%c0_6, %c0_7] : memref<1x128xf32, #tpu.memory_space<vmem>>, vector<1x128xf32>
    %cst_8 = arith.constant dense<0.000000e+00> : vector<256xf32>
    %8 = vector.multi_reduction <add>, %5, %cst_8 [1] : vector<256x128xf32> to vector<256xf32>
    %9 = vector.shape_cast %8 : vector<256xf32> to vector<256x1xf32>
    %cst_9 = arith.constant 1.280000e+02 : f32
    %10 = vector.broadcast %cst_9 : f32 to vector<256x1xf32>
    %11 = arith.divf %9, %10 : vector<256x1xf32>
    %12 = vector.broadcast %11 : vector<256x1xf32> to vector<256x128xf32>
    %13 = arith.subf %5, %12 : vector<256x128xf32>
    %14 = arith.mulf %13, %13 : vector<256x128xf32>
    %cst_10 = arith.constant dense<0.000000e+00> : vector<256xf32>
    %15 = vector.multi_reduction <add>, %14, %cst_10 [1] : vector<256x128xf32> to vector<256xf32>
    %16 = vector.shape_cast %15 : vector<256xf32> to vector<256x1xf32>
    %cst_11 = arith.constant 1.280000e+02 : f32
    %17 = vector.broadcast %cst_11 : f32 to vector<256x1xf32>
    %18 = arith.divf %16, %17 : vector<256x1xf32>
    %cst_12 = arith.constant 9.99999974E-6 : f32
    %19 = vector.broadcast %cst_12 : f32 to vector<256x1xf32>
    %20 = arith.addf %18, %19 : vector<256x1xf32>
    %21 = math.rsqrt %20 : vector<256x1xf32>
    %22 = vector.broadcast %21 : vector<256x1xf32> to vector<256x128xf32>
    %23 = arith.mulf %13, %22 : vector<256x128xf32>
    %24 = vector.broadcast %6 : vector<1x128xf32> to vector<256x128xf32>
    %25 = arith.mulf %23, %24 : vector<256x128xf32>
    %26 = vector.broadcast %7 : vector<1x128xf32> to vector<256x128xf32>
    %27 = arith.addf %25, %26 : vector<256x128xf32>
    %28 = arith.truncf %27 : vector<256x128xf32> to vector<256x128xbf16>
    %c0_13 = arith.constant 0 : index
    %c0_14 = arith.constant 0 : index
    %29 = vector.load %arg6[%c0_13, %c0_14] : memref<128x128xbf16, #tpu.memory_space<vmem>>, vector<128x128xbf16>
    %cst_15 = arith.constant dense<0.000000e+00> : vector<256x128xf32>
    %30 = tpu.matmul %28, %29, %cst_15 {dimension_numbers = #tpu.dot_dimension_numbers<[1], [0], [0], [1], [0, 0, 1, 1], [], []>} : vector<256x128xbf16>, vector<128x128xbf16>, vector<256x128xf32> -> vector<256x128xf32>
    %c0_16 = arith.constant 0 : index
    %c0_17 = arith.constant 0 : index
    %31 = vector.load %arg7[%c0_16, %c0_17] : memref<1x128xf32, #tpu.memory_space<vmem>>, vector<1x128xf32>
    %32 = vector.broadcast %31 : vector<1x128xf32> to vector<256x128xf32>
    %33 = arith.addf %30, %32 : vector<256x128xf32>
    %34 = arith.truncf %33 : vector<256x128xf32> to vector<256x128xbf16>
    %c0_18 = arith.constant 0 : index
    %c0_19 = arith.constant 0 : index
    %35 = vector.load %arg8[%c0_18, %c0_19] : memref<128x256xbf16, #tpu.memory_space<vmem>>, vector<128x256xbf16>
    %cst_20 = arith.constant dense<0.000000e+00> : vector<256x256xf32>
    %36 = tpu.matmul %28, %35, %cst_20 {dimension_numbers = #tpu.dot_dimension_numbers<[1], [0], [0], [1], [0, 0, 1, 1], [], []>} : vector<256x128xbf16>, vector<128x256xbf16>, vector<256x256xf32> -> vector<256x256xf32>
    %c0_21 = arith.constant 0 : index
    %c0_22 = arith.constant 0 : index
    %37 = vector.load %arg9[%c0_21, %c0_22] : memref<1x256xf32, #tpu.memory_space<vmem>>, vector<1x256xf32>
    %38 = vector.broadcast %37 : vector<1x256xf32> to vector<256x256xf32>
    %39 = arith.addf %36, %38 : vector<256x256xf32>
    %40 = arith.truncf %39 : vector<256x256xf32> to vector<256x256xbf16>
    %41 = vector.extract_strided_slice %34 {offsets = [0, 0], sizes = [256, 32], strides = [1, 1]} : vector<256x128xbf16> to vector<256x32xbf16>
    %c0_23 = arith.constant 0 : index
    %c0_24 = arith.constant 0 : index
    %c0_25 = arith.constant 0 : index
    %c0_26 = arith.constant 0 : index
    %42 = vector.load %arg10[%c0_23, %c0_24, %c0_25, %c0_26] : memref<1x4x256x32xbf16, #tpu.memory_space<vmem>>, vector<1x1x256x32xbf16>
    %43 = vector.shape_cast %42 : vector<1x1x256x32xbf16> to vector<256x32xbf16>
    %44 = vector.shape_cast %41 : vector<256x32xbf16> to vector<1x1x256x32xbf16>
    tpu.vector_store %arg10[%c0_23, %c0_24, %c0_25, %c0_26], %44 {strides = array<i32>} : memref<1x4x256x32xbf16, #tpu.memory_space<vmem>>, vector<1x1x256x32xbf16>,
    %45 = vector.extract_strided_slice %40 {offsets = [0, 0], sizes = [256, 32], strides = [1, 1]} : vector<256x256xbf16> to vector<256x32xbf16>
    %c0_27 = arith.constant 0 : index
    %c0_28 = arith.constant 0 : index
    %c0_29 = arith.constant 0 : index
    %c0_30 = arith.constant 0 : index
    %46 = vector.load %arg11[%c0_27, %c0_28, %c0_29, %c0_30] : memref<1x4x256x32xbf16, #tpu.memory_space<vmem>>, vector<1x1x256x32xbf16>
    %47 = vector.shape_cast %46 : vector<1x1x256x32xbf16> to vector<256x32xbf16>
    %48 = vector.shape_cast %45 : vector<256x32xbf16> to vector<1x1x256x32xbf16>
    tpu.vector_store %arg11[%c0_27, %c0_28, %c0_29, %c0_30], %48 {strides = array<i32>} : memref<1x4x256x32xbf16, #tpu.memory_space<vmem>>, vector<1x1x256x32xbf16>,
    %49 = vector.extract_strided_slice %40 {offsets = [0, 128], sizes = [256, 32], strides = [1, 1]} : vector<256x256xbf16> to vector<256x32xbf16>
    %c0_31 = arith.constant 0 : index
    %c0_32 = arith.constant 0 : index
    %c0_33 = arith.constant 0 : index
    %c0_34 = arith.constant 0 : index
    %50 = vector.load %arg12[%c0_31, %c0_32, %c0_33, %c0_34] : memref<1x4x256x32xbf16, #tpu.memory_space<vmem>>, vector<1x1x256x32xbf16>
    %51 = vector.shape_cast %50 : vector<1x1x256x32xbf16> to vector<256x32xbf16>
    %52 = vector.shape_cast %49 : vector<256x32xbf16> to vector<1x1x256x32xbf16>
    tpu.vector_store %arg12[%c0_31, %c0_32, %c0_33, %c0_34], %52 {strides = array<i32>} : memref<1x4x256x32xbf16, #tpu.memory_space<vmem>>, vector<1x1x256x32xbf16>,
    %53 = vector.extract_strided_slice %34 {offsets = [0, 32], sizes = [256, 32], strides = [1, 1]} : vector<256x128xbf16> to vector<256x32xbf16>
    %c0_35 = arith.constant 0 : index
    %c1 = arith.constant 1 : index
    %c0_36 = arith.constant 0 : index
    %c0_37 = arith.constant 0 : index
    %54 = vector.load %arg10[%c0_35, %c1, %c0_36, %c0_37] : memref<1x4x256x32xbf16, #tpu.memory_space<vmem>>, vector<1x1x256x32xbf16>
    %55 = vector.shape_cast %54 : vector<1x1x256x32xbf16> to vector<256x32xbf16>
    %56 = vector.shape_cast %53 : vector<256x32xbf16> to vector<1x1x256x32xbf16>
    tpu.vector_store %arg10[%c0_35, %c1, %c0_36, %c0_37], %56 {strides = array<i32>} : memref<1x4x256x32xbf16, #tpu.memory_space<vmem>>, vector<1x1x256x32xbf16>,
    %57 = vector.extract_strided_slice %40 {offsets = [0, 32], sizes = [256, 32], strides = [1, 1]} : vector<256x256xbf16> to vector<256x32xbf16>
    %c0_38 = arith.constant 0 : index
    %c1_39 = arith.constant 1 : index
    %c0_40 = arith.constant 0 : index
    %c0_41 = arith.constant 0 : index
    %58 = vector.load %arg11[%c0_38, %c1_39, %c0_40, %c0_41] : memref<1x4x256x32xbf16, #tpu.memory_space<vmem>>, vector<1x1x256x32xbf16>
    %59 = vector.shape_cast %58 : vector<1x1x256x32xbf16> to vector<256x32xbf16>
    %60 = vector.shape_cast %57 : vector<256x32xbf16> to vector<1x1x256x32xbf16>
    tpu.vector_store %arg11[%c0_38, %c1_39, %c0_40, %c0_41], %60 {strides = array<i32>} : memref<1x4x256x32xbf16, #tpu.memory_space<vmem>>, vector<1x1x256x32xbf16>,
    %61 = vector.extract_strided_slice %40 {offsets = [0, 160], sizes = [256, 32], strides = [1, 1]} : vector<256x256xbf16> to vector<256x32xbf16>
    %c0_42 = arith.constant 0 : index
    %c1_43 = arith.constant 1 : index
    %c0_44 = arith.constant 0 : index
    %c0_45 = arith.constant 0 : index
    %62 = vector.load %arg12[%c0_42, %c1_43, %c0_44, %c0_45] : memref<1x4x256x32xbf16, #tpu.memory_space<vmem>>, vector<1x1x256x32xbf16>
    %63 = vector.shape_cast %62 : vector<1x1x256x32xbf16> to vector<256x32xbf16>
    %64 = vector.shape_cast %61 : vector<256x32xbf16> to vector<1x1x256x32xbf16>
    tpu.vector_store %arg12[%c0_42, %c1_43, %c0_44, %c0_45], %64 {strides = array<i32>} : memref<1x4x256x32xbf16, #tpu.memory_space<vmem>>, vector<1x1x256x32xbf16>,
    %65 = vector.extract_strided_slice %34 {offsets = [0, 64], sizes = [256, 32], strides = [1, 1]} : vector<256x128xbf16> to vector<256x32xbf16>
    %c0_46 = arith.constant 0 : index
    %c2 = arith.constant 2 : index
    %c0_47 = arith.constant 0 : index
    %c0_48 = arith.constant 0 : index
    %66 = vector.load %arg10[%c0_46, %c2, %c0_47, %c0_48] : memref<1x4x256x32xbf16, #tpu.memory_space<vmem>>, vector<1x1x256x32xbf16>
    %67 = vector.shape_cast %66 : vector<1x1x256x32xbf16> to vector<256x32xbf16>
    %68 = vector.shape_cast %65 : vector<256x32xbf16> to vector<1x1x256x32xbf16>
    tpu.vector_store %arg10[%c0_46, %c2, %c0_47, %c0_48], %68 {strides = array<i32>} : memref<1x4x256x32xbf16, #tpu.memory_space<vmem>>, vector<1x1x256x32xbf16>,
    %69 = vector.extract_strided_slice %40 {offsets = [0, 64], sizes = [256, 32], strides = [1, 1]} : vector<256x256xbf16> to vector<256x32xbf16>
    %c0_49 = arith.constant 0 : index
    %c2_50 = arith.constant 2 : index
    %c0_51 = arith.constant 0 : index
    %c0_52 = arith.constant 0 : index
    %70 = vector.load %arg11[%c0_49, %c2_50, %c0_51, %c0_52] : memref<1x4x256x32xbf16, #tpu.memory_space<vmem>>, vector<1x1x256x32xbf16>
    %71 = vector.shape_cast %70 : vector<1x1x256x32xbf16> to vector<256x32xbf16>
    %72 = vector.shape_cast %69 : vector<256x32xbf16> to vector<1x1x256x32xbf16>
    tpu.vector_store %arg11[%c0_49, %c2_50, %c0_51, %c0_52], %72 {strides = array<i32>} : memref<1x4x256x32xbf16, #tpu.memory_space<vmem>>, vector<1x1x256x32xbf16>,
    %73 = vector.extract_strided_slice %40 {offsets = [0, 192], sizes = [256, 32], strides = [1, 1]} : vector<256x256xbf16> to vector<256x32xbf16>
    %c0_53 = arith.constant 0 : index
    %c2_54 = arith.constant 2 : index
    %c0_55 = arith.constant 0 : index
    %c0_56 = arith.constant 0 : index
    %74 = vector.load %arg12[%c0_53, %c2_54, %c0_55, %c0_56] : memref<1x4x256x32xbf16, #tpu.memory_space<vmem>>, vector<1x1x256x32xbf16>
    %75 = vector.shape_cast %74 : vector<1x1x256x32xbf16> to vector<256x32xbf16>
    %76 = vector.shape_cast %73 : vector<256x32xbf16> to vector<1x1x256x32xbf16>
    tpu.vector_store %arg12[%c0_53, %c2_54, %c0_55, %c0_56], %76 {strides = array<i32>} : memref<1x4x256x32xbf16, #tpu.memory_space<vmem>>, vector<1x1x256x32xbf16>,
    %77 = vector.extract_strided_slice %34 {offsets = [0, 96], sizes = [256, 32], strides = [1, 1]} : vector<256x128xbf16> to vector<256x32xbf16>
    %c0_57 = arith.constant 0 : index
    %c3 = arith.constant 3 : index
    %c0_58 = arith.constant 0 : index
    %c0_59 = arith.constant 0 : index
    %78 = vector.load %arg10[%c0_57, %c3, %c0_58, %c0_59] : memref<1x4x256x32xbf16, #tpu.memory_space<vmem>>, vector<1x1x256x32xbf16>
    %79 = vector.shape_cast %78 : vector<1x1x256x32xbf16> to vector<256x32xbf16>
    %80 = vector.shape_cast %77 : vector<256x32xbf16> to vector<1x1x256x32xbf16>
    tpu.vector_store %arg10[%c0_57, %c3, %c0_58, %c0_59], %80 {strides = array<i32>} : memref<1x4x256x32xbf16, #tpu.memory_space<vmem>>, vector<1x1x256x32xbf16>,
    %81 = vector.extract_strided_slice %40 {offsets = [0, 96], sizes = [256, 32], strides = [1, 1]} : vector<256x256xbf16> to vector<256x32xbf16>
    %c0_60 = arith.constant 0 : index
    %c3_61 = arith.constant 3 : index
    %c0_62 = arith.constant 0 : index
    %c0_63 = arith.constant 0 : index
    %82 = vector.load %arg11[%c0_60, %c3_61, %c0_62, %c0_63] : memref<1x4x256x32xbf16, #tpu.memory_space<vmem>>, vector<1x1x256x32xbf16>
    %83 = vector.shape_cast %82 : vector<1x1x256x32xbf16> to vector<256x32xbf16>
    %84 = vector.shape_cast %81 : vector<256x32xbf16> to vector<1x1x256x32xbf16>
    tpu.vector_store %arg11[%c0_60, %c3_61, %c0_62, %c0_63], %84 {strides = array<i32>} : memref<1x4x256x32xbf16, #tpu.memory_space<vmem>>, vector<1x1x256x32xbf16>,
    %85 = vector.extract_strided_slice %40 {offsets = [0, 224], sizes = [256, 32], strides = [1, 1]} : vector<256x256xbf16> to vector<256x32xbf16>
    %c0_64 = arith.constant 0 : index
    %c3_65 = arith.constant 3 : index
    %c0_66 = arith.constant 0 : index
    %c0_67 = arith.constant 0 : index
    %86 = vector.load %arg12[%c0_64, %c3_65, %c0_66, %c0_67] : memref<1x4x256x32xbf16, #tpu.memory_space<vmem>>, vector<1x1x256x32xbf16>
    %87 = vector.shape_cast %86 : vector<1x1x256x32xbf16> to vector<256x32xbf16>
    %88 = vector.shape_cast %85 : vector<256x32xbf16> to vector<1x1x256x32xbf16>
    tpu.vector_store %arg12[%c0_64, %c3_65, %c0_66, %c0_67], %88 {strides = array<i32>} : memref<1x4x256x32xbf16, #tpu.memory_space<vmem>>, vector<1x1x256x32xbf16>,
    return
  }
  func.func @transform_0(%arg0: i32, %arg1: i32) -> (i32, i32, i32) {
    %c0_i32 = arith.constant 0 : i32
    %c0_i32_0 = arith.constant 0 : i32
    return %arg0, %arg1, %c0_i32 : i32, i32, i32
  }
  func.func @transform_1(%arg0: i32, %arg1: i32) -> (i32, i32) {
    %c0_i32 = arith.constant 0 : i32
    %c0_i32_0 = arith.constant 0 : i32
    return %arg1, %c0_i32 : i32, i32
  }
  func.func @transform_2(%arg0: i32, %arg1: i32) -> (i32, i32) {
    %c0_i32 = arith.constant 0 : i32
    %c0_i32_0 = arith.constant 0 : i32
    %c0_i32_1 = arith.constant 0 : i32
    return %c0_i32, %c0_i32_0 : i32, i32
  }
  func.func @transform_3(%arg0: i32, %arg1: i32) -> (i32, i32) {
    %c0_i32 = arith.constant 0 : i32
    %c0_i32_0 = arith.constant 0 : i32
    %c0_i32_1 = arith.constant 0 : i32
    return %c0_i32, %c0_i32_0 : i32, i32
  }
  func.func @transform_4(%arg0: i32, %arg1: i32) -> (i32, i32) {
    %c0_i32 = arith.constant 0 : i32
    %c0_i32_0 = arith.constant 0 : i32
    %c0_i32_1 = arith.constant 0 : i32
    return %c0_i32, %c0_i32_0 : i32, i32
  }
  func.func @transform_5(%arg0: i32, %arg1: i32) -> (i32, i32) {
    %c0_i32 = arith.constant 0 : i32
    %c0_i32_0 = arith.constant 0 : i32
    %c0_i32_1 = arith.constant 0 : i32
    return %c0_i32, %c0_i32_0 : i32, i32
  }
  func.func @transform_6(%arg0: i32, %arg1: i32) -> (i32, i32) {
    %c0_i32 = arith.constant 0 : i32
    %c0_i32_0 = arith.constant 0 : i32
    %c0_i32_1 = arith.constant 0 : i32
    return %c0_i32, %c0_i32_0 : i32, i32
  }
  func.func @transform_7(%arg0: i32, %arg1: i32) -> (i32, i32) {
    %c0_i32 = arith.constant 0 : i32
    %c0_i32_0 = arith.constant 0 : i32
    %c0_i32_1 = arith.constant 0 : i32
    return %c0_i32, %c0_i32_0 : i32, i32
  }
  func.func @transform_8(%arg0: i32, %arg1: i32) -> (i32, i32, i32, i32) {
    %c0_i32 = arith.constant 0 : i32
    %c0_i32_0 = arith.constant 0 : i32
    %c0_i32_1 = arith.constant 0 : i32
    return %arg0, %c0_i32, %arg1, %c0_i32_0 : i32, i32, i32, i32
  }
  func.func @transform_9(%arg0: i32, %arg1: i32) -> (i32, i32, i32, i32) {
    %c0_i32 = arith.constant 0 : i32
    %c0_i32_0 = arith.constant 0 : i32
    %c0_i32_1 = arith.constant 0 : i32
    return %arg0, %c0_i32, %arg1, %c0_i32_0 : i32, i32, i32, i32
  }
  func.func @transform_10(%arg0: i32, %arg1: i32) -> (i32, i32, i32, i32) {
    %c0_i32 = arith.constant 0 : i32
    %c0_i32_0 = arith.constant 0 : i32
    %c0_i32_1 = arith.constant 0 : i32
    return %arg0, %c0_i32, %arg1, %c0_i32_0 : i32, i32, i32, i32
  }
}

</mosaic_0001>

<bundles_post_ra>
// kernel: tpu_custom_call.1
= control target key start
LH: loop header
LB: loop body
LE: loop exit
PB: predicated region body
PF: predicated region fallthrough
CT: control target
= control target key end

     0   :  { %s7005_s0 = inlined_call_operand.hbm [shape: f32[2,256,128], index: 0, kind: input, shape index: {}]   ;;  %s7006_s1 = inlined_call_operand.hbm [shape: f32[256,128], index: 1, kind: input, shape index: {}]   ;;  %s7007_s2 = inlined_call_operand.vmem [shape: f32[1,128], index: 2, kind: input, shape index: {}]   ;;  %s7008_s3 = inlined_call_operand.vmem [shape: f32[1,128], index: 3, kind: input, shape index: {}]   ;;  %s7009_s4 = inlined_call_operand.hbm [shape: bf16[128,128], index: 4, kind: input, shape index: {}]   ;;  %s7010_s5 = inlined_call_operand.vmem [shape: f32[1,128], index: 5, kind: input, shape index: {}]   ;;  %s7011_s6 = inlined_call_operand.hbm [shape: bf16[128,256], index: 6, kind: input, shape index: {}]   ;;  %s7012_s7 = inlined_call_operand.vmem [shape: f32[1,256], index: 7, kind: input, shape index: {}]   ;;  %s7013_s8 = inlined_call_operand.vmem [shape: bf16[2,4,256,32], index: 8, kind: output, shape index: {0}]   ;;  %s7014_s9 = inlined_call_operand.vmem [shape: bf16[2,4,256,32], index: 9, kind: output, shape index: {1}]   ;;  %s7015_s10 = inlined_call_operand.vmem [shape: bf16[2,4,256,32], index: 10, kind: output, shape index: {2}]  }
   0x1   :  { %7084 = sst [smem:[#allocation41_spill]] %s7006_s1 }
   0x2   :  { %7085 = sst [smem:[#allocation42_spill]] %s7012_s7 }
   0x3   :  { %7086 = sst [smem:[#allocation43_spill]] %s7014_s9 }
   0x4   :  { %7087 = sst [smem:[#allocation44_spill]] %s7015_s10 }
   0x5   :  { %16 = vsyncpa [#allocation3], 0 }
   0x6   :  { %18 = vsyncpa [#allocation3 + $0x1], 0 }
   0x7   :  { %19 = vsyncpa [#allocation5], 0 }
   0x8   :  { %20 = vsyncpa [#allocation8], 0  ;;  %s4538_s13 = smov 0   ;;  %s4540_s14 = smov 0  }
   0x9   :  { %s4542_s15 = smov 0   ;;  %s4544_s16 = smov 0  }
   0xa   :  { %s4546_s17 = smov 0   ;;  %s4548_s18 = smov 0  }
   0xb LB: > { %s3485_s19 = sadd.s32 4294967295, %s4469_s18   ;;  %p60_p0 = scmp.ne.s32.totalorder %s4453_s14, %s4449_s13  ;;  %s4469_s18 = sphi %s4548_s18, %s26_s18   ;;  %s4465_s17 = sphi %s4546_s17, %s7175_s17   ;;  %s4461_s16 = sphi %s4544_s16, %s7174_s16   ;;  %s4457_s15 = sphi %s4542_s15, %s7173_s15   ;;  %s4453_s14 = sphi %s4540_s14, %s7172_s14   ;;  %s4449_s13 = sphi %s4538_s13, %s7171_s13  }
   0xc   : > { %p4568_p1 = scmp.eq.s32.totalorder %s3485_s19, 0  ;;  %p3487_p2 = scmp.ge.s32.totalorder %s4469_s18, 1 }
   0xd   : > { %p307_p3 = scmp.lt.s32.totalorder %s4469_s18, 3  ;;  %s4471_s23 = smov [#allocation4]  }
   0xe   : > { %s7088_s20 = scalar_select %p4568_p1, 1, 0 }
   0xf   : > { %p4576_p4 = por %p4568_p1, %p60_p0  ;;  %p4580_p5 = pnand %p3487_p2, %p307_p3 }
  0x10   : > { %s322_s24 = sshll.u32 %s4471_s23, 4  ;;  %s4472_s26 = smov [#allocation6]   ;;  %s323_s24 = int_to_ptr.vmem [resolvable:$true] %s322_s24 }
  0x11   : > { %s7089_s21 = scalar_select %p4576_p4, 1, 0 }
  0x12   : > { %s7090_s22 = scalar_select %p4580_p5, 1, 0 }
  0x13   : > { %p4121_p6 = pneg %p4580_p5  ;;  %s341_s27 = sshll.u32 %s4472_s26, 4  ;;  %s4592_s27 = int_to_ptr.vmem [resolvable:$true] %s341_s27 }
  0x14   : > { %s7092_s1 = sld [smem:[#allocation41_spill]] }
  0x15   : > { %p4588_p7 = pnand %p4121_p6, %p4568_p1 }
  0x17   : > { %p4602_p9 = pneg %p4588_p7 }
  0x1a   : > { %s4297_s30 = scalar_lea.hbm %s7092_s1, 4096 }
  0x1b   : > { %p4298_p8 = scmp.ne.s32.totalorder %s7092_s1, %s4297_s30  ;;  %p4304_p12 = scmp.lt.u32.totalorder %s4297_s30, %s7092_s1 }
  0x1d   : > { %p4300_p10 = pnand %p4602_p9, %p4298_p8 }
  0x1f   : > { %p4301_p11 = pneg %p4300_p10 }
  0x21   : > { %p4306_p13 = pnand %p4304_p12, %p4301_p11 }
  0x23   : > { %4309 = shalt.err (!%p4306_p13)
}
  0x24   : > { %s4310_s26 = scalar_lea.vmem %s323_s24, 4096  ;;  %p4318_p6 = scmp.lt.s32.totalorder %s323_s24, %s323_s24 }
  0x25   : > { %p4311_p0 = scmp.ne.s32.totalorder %s323_s24, %s4310_s26  ;;  %p4319_p1 = scmp.lt.s32.totalorder %s4310_s26, %s4310_s26 }
  0x27   : > { %p4313_p2 = pnand %p4311_p0, %p4602_p9  ;;  %p4320_p4 = por %p4319_p1, %p4318_p6 }
  0x29   : > { %p4314_p3 = pneg %p4313_p2 }
  0x2b   : > { %p4321_p5 = pnand %p4320_p4, %p4314_p3 }
  0x2d   : > { %4324 = shalt.err (!%p4321_p5)
}
  0x2e   : > { %s7020_s28 = smov 128   ;;  %s7022_s29 = smov 8  }
  0x2f   : > { %4124 = dma.hbm_to_vmem [thread:$0]  (!%p4588_p7), %s7092_s1, 4096, %s323_s24, [#allocation5], %s7020_s28, %s7020_s28, %s7022_s29  }
  0x30   : > { %s4325_s23 = scalar_lea.hbm %s7009_s4, 1024 }
  0x31   : > { %p4326_p1 = scmp.ne.s32.totalorder %s7009_s4, %s4325_s23  ;;  %p4332_p8 = scmp.lt.u32.totalorder %s4325_s23, %s7009_s4 }
  0x33   : > { %p4328_p4 = pnand %p4326_p1, %p4602_p9 }
  0x35   : > { %p4329_p5 = pneg %p4328_p4 }
  0x37   : > { %p4334_p10 = pnand %p4332_p8, %p4329_p5 }
  0x39   : > { %4337 = shalt.err (!%p4334_p10)
}
  0x3a   : > { %s4338_s24 = scalar_lea.vmem %s4592_s27, 1024  ;;  %p4346_p0 = scmp.lt.s32.totalorder %s4592_s27, %s4592_s27 }
  0x3b   : > { %p4339_p11 = scmp.ne.s32.totalorder %s4592_s27, %s4338_s24  ;;  %p4347_p2 = scmp.lt.s32.totalorder %s4338_s24, %s4338_s24 }
  0x3d   : > { %p4341_p12 = pnand %p4339_p11, %p4602_p9  ;;  %p4348_p3 = por %p4347_p2, %p4346_p0 }
  0x3f   : > { %p4342_p13 = pneg %p4341_p12 }
  0x41   : > { %p4349_p6 = pnand %p4348_p3, %p4342_p13 }
  0x43   : > { %4352 = shalt.err (!%p4349_p6)
}
  0x44   : > { %s4475_s10 = smov 64   ;;  %s4476_s7 = smov 4  }
  0x45   : > { %4127 = dma.hbm_to_vmem [thread:$0]  (!%p4588_p7), %s7009_s4, 1024, %s4592_s27, [#allocation5], %s4475_s10, %s4475_s10, %s4476_s7  }
  0x46   : > { %s4477_s11 = smov [#allocation7]   ;;  %s4353_s26 = scalar_lea.hbm %s7011_s6, 2048 }
  0x47   : > { %s357_s12 = sshll.u32 %s4477_s11, 4  ;;  %p4354_p1 = scmp.ne.s32.totalorder %s7011_s6, %s4353_s26  ;;  %s358_s12 = int_to_ptr.vmem [resolvable:$true] %s357_s12 }
  0x48   : > { %p4360_p8 = scmp.lt.u32.totalorder %s4353_s26, %s7011_s6 }
  0x49   : > { %p4356_p4 = pnand %p4354_p1, %p4602_p9 }
  0x4b   : > { %p4357_p5 = pneg %p4356_p4 }
  0x4d   : > { %p4362_p10 = pnand %p4360_p8, %p4357_p5 }
  0x4f   : > { %4365 = shalt.err (!%p4362_p10)
}
  0x50   : > { %s4366_s27 = scalar_lea.vmem %s358_s12, 2048  ;;  %p4374_p0 = scmp.lt.s32.totalorder %s358_s12, %s358_s12 }
  0x51   : > { %p4367_p11 = scmp.ne.s32.totalorder %s358_s12, %s4366_s27  ;;  %p4375_p2 = scmp.lt.s32.totalorder %s4366_s27, %s4366_s27 }
  0x53   : > { %p4369_p12 = pnand %p4367_p11, %p4602_p9  ;;  %p4376_p3 = por %p4375_p2, %p4374_p0 }
  0x55   : > { %p4370_p13 = pneg %p4369_p12 }
  0x57   : > { %p4377_p6 = pnand %p4376_p3, %p4370_p13 }
  0x59   : > { %4380 = shalt.err (!%p4377_p6)
}
  0x5a   : > { %s7094_s28 = smov 8   ;;  %s7095_s10 = smov 128  }
  0x5b   : > { %4130 = dma.hbm_to_vmem [thread:$0]  (!%p4588_p7), %s7011_s6, 2048, %s358_s12, [#allocation8], %s7095_s10, %s7095_s10, %s7094_s28  }
  0x5c   : > { %s38_s13 = sadd.s32 1, %s4465_s17  ;;  %s47_s25 = sadd.s32 1, %s4457_s15 }
  0x5d   : > { %p40_p9 = scmp.ge.s32.totalorder %s38_s13, 2  ;;  %p54_p1 = scmp.ne.s32.totalorder %s4457_s15, %s4453_s14 }
  0x5e   : > { %p55_p4 = scmp.eq.s32.totalorder %s4469_s18, 0  ;;  %p4138_p8 = scmp.lt.s32.totalorder %s4469_s18, 2 }
  0x5f   : > { %s7177_s13 = smov (%p40_p9, %s38_s13), 0  ;;  %s374_s9 = sand.u32 1, %s4457_s15  }
  0x60   : > { %p56_p5 = por %p55_p4, %p54_p1  ;;  %s42_s7 = ssub.s32 %s4465_s17, %s7177_s13 }
  0x61   : > { %p45_p10 = scmp.eq.s32.totalorder %s42_s7, 0  ;;  %s3492_s30 = sshll.u32 %s374_s9, 8 }
  0x62   : > { %s3919_s11 = sshll.u32 %s4465_s17, 12  ;;  %s378_s24 = scalar_lea.vmem [#allocation2], %s3492_s30 }
  0x63   : > { %s4678_s19 = scalar_select %p45_p10, %s4457_s15, %s47_s25  }
  0x64   : > { %s4683_s12 = scalar_lea.hbm %s7005_s0, %s3919_s11  ;;  %s387_s27 = sshll.u32 %s378_s24, 4  ;;  %s4689_s27 = int_to_ptr.vmem [resolvable:$true] %s387_s27 }
  0x65   : > { %p4685_p7 = pnand %p4138_p8, %p56_p5  ;;  %s4691_s29 = scalar_lea.sflag [#allocation3], %s374_s9 }
  0x66   : > { %s4381_s25 = scalar_lea.hbm %s4683_s12, 4096  ;;  %s4386_s11 = scalar_lea.hbm %s7005_s0, 8192 }
  0x67   : > { %p4382_p11 = scmp.ne.s32.totalorder %s4683_s12, %s4381_s25  ;;  %p4383_p12 = pneg %p4685_p7 }
  0x68   : > { %p4387_p2 = scmp.lt.u32.totalorder %s4683_s12, %s7005_s0  ;;  %p4388_p3 = scmp.lt.u32.totalorder %s4386_s11, %s4381_s25 }
  0x69   : > { %p4384_p13 = pnand %p4383_p12, %p4382_p11  ;;  %p4390_p9 = scmp.lt.u32.totalorder %s4381_s25, %s4683_s12 }
  0x6a   : > { %p4389_p6 = por %p4388_p3, %p4387_p2 }
  0x6b   : > { %p4385_p0 = pneg %p4384_p13 }
  0x6c   : > { %p4391_p1 = por %p4390_p9, %p4389_p6 }
  0x6e   : > { %p4392_p4 = pnand %p4391_p1, %p4385_p0 }
  0x70   : > { %4395 = shalt.err (!%p4392_p4)
}
  0x71   : > { %s4396_s9 = scalar_lea.vmem %s4689_s27, 4096  ;;  %s4478_s24 = smov [#allocation2]  }
  0x72   : > { %p4397_p5 = scmp.ne.s32.totalorder %s4689_s27, %s4396_s9  ;;  %s4401_s7 = sshll.u32 %s4478_s24, 4  ;;  %s4402_s7 = int_to_ptr.vmem [resolvable:$false] %s4401_s7 }
  0x73   : > { %s4403_s30 = scalar_lea.vmem %s4402_s7, 8192  ;;  %p4404_p11 = scmp.lt.s32.totalorder %s4689_s27, %s4402_s7 }
  0x74   : > { %p4399_p8 = pnand %p4397_p5, %p4383_p12  ;;  %p4405_p13 = scmp.lt.s32.totalorder %s4403_s30, %s4396_s9 }
  0x76   : > { %p4400_p10 = pneg %p4399_p8  ;;  %p4406_p2 = por %p4405_p13, %p4404_p11 }
  0x78   : > { %p4407_p3 = pnand %p4406_p2, %p4400_p10 }
  0x7a   : > { %4410 = shalt.err (!%p4407_p3)
}
  0x7b   : > { %4134 = dma.hbm_to_vmem [thread:$0]  (!%p4685_p7), %s4683_s12, 4096, %s4689_s27, %s4691_s29, %s7095_s10, %s7095_s10, %s7094_s28  }
  0x7c   : > { %p7097_p12 = scmp.ne.s32.totalorder %s7090_s22, 0 }
  0x7e   : > { %399 = sbr.rel (%p7097_p12) target bundleno = 1386 (0x56a), region = 52 }
  0x85   : > { %s401_s25 = sand.u32 1, %s4453_s14   ;;  %p7098_p0 = scmp.ne.s32.totalorder %s7089_s21, 0 }
  0x86   : > { %s3496_s11 = sshll.u32 %s401_s25, 8  ;;  %s402_s23 = scalar_lea.sflag [#allocation3], %s401_s25 }
  0x87   : > { %s4725_s26 = scalar_lea.vmem [#allocation2], %s3496_s11 }
  0x88   : > { %4436 = dma.done.wait (%p7098_p0), %s402_s23, 4096  }
  0x89   : > { %4438 = vsyncadd (%p7098_p0), %s402_s23, 4294963200  ;;  %p7099_p6 = scmp.ne.s32.totalorder %s7088_s20, 0 }
  0x8b   : > { %4440 = dma.done.wait (%p7099_p6), [#allocation5], 5120  }
  0x8c   : > { %4442 = vsyncadd (%p7099_p6), [#allocation5], 4294962176 }
  0x8d   : > { %4444 = dma.done.wait (%p7099_p6), [#allocation8], 2048  }
  0x8e   : > { %4446 = vsyncadd (%p7099_p6), [#allocation8], 4294965248  ;;  %v509_v0 = vld [vmem:[%s4725_s26] sm:$0xff]  ;;  %v511_v2 = vld [vmem:[%s4725_s26 + $0x10] sm:$0xff]  ;;  %p479_p7 = scmp.lt.s32.totalorder %s4461_s16, 1  ;;  %vm1777_vm0 = vcmask 257024  }
  0x8f   : > { %v573_v1 = vld [vmem:[#allocation4] sm:$0xff]  ;;  %v541_v3 = vmul.f32 11.313708, %v509_v0  ;;  %v543_v4 = vmul.f32 11.313708, %v511_v2  ;;  %v575_v5 = vld [vmem:[#allocation4 + $0x10] sm:$0xff] }
  0x90   : > { %v510_v6 = vld [vmem:[%s4725_s26 + $0x8] sm:$0xff]  ;;  %v512_v9 = vld [vmem:[%s4725_s26 + $0x18] sm:$0xff]  ;;  %v513_v14 = vld [vmem:[%s4725_s26 + $0x20] sm:$0xff]  ;;  %s7179_s16 = smov (!%p479_p7, %s4461_s16), 1  ;;  %s7109_s30 = sld [smem:[#allocation42_spill]] }
  0x91   : > { %v542_v7 = vmul.f32 11.313708, %v510_v6  ;;  %v574_v8 = vld [vmem:[#allocation4 + $0x8] sm:$0xff]  ;;  %v576_v10 = vld [vmem:[#allocation4 + $0x18] sm:$0xff]  ;;  %v4743_v11 = vadd.f32 %v573_v1, %v541_v3  ;;  %v4745_v12 = vadd.f32 %v575_v5, %v543_v4  ;;  %v544_v13 = vmul.f32 11.313708, %v512_v9 }
  0x92   : > { %v514_v15 = vld [vmem:[%s4725_s26 + $0x28] sm:$0xff]  ;;  %v545_v18 = vmul.f32 11.313708, %v513_v14  ;;  %v577_v19 = vld [vmem:[#allocation4 + $0x20] sm:$0xff]  ;;  %v515_v22 = vld [vmem:[%s4725_s26 + $0x30] sm:$0xff]  ;;  %s5244_s27 = sshll.u32 %s7179_s16, 9 }
  0x93   : > { %639 = vadd.xlane.f32.xlu0 %v4743_v11  ;;  %643 = vadd.xlane.f32.xlu1 %v4745_v12  ;;  %v4751_v16 = vadd.f32 %v574_v8, %v542_v7  ;;  %v4753_v17 = vadd.f32 %v576_v10, %v544_v13  ;;  %v546_v20 = vmul.f32 11.313708, %v514_v15  ;;  %v578_v21 = vld [vmem:[#allocation4 + $0x28] sm:$0xff]  ;;  %v516_v23 = vld [vmem:[%s4725_s26 + $0x38] sm:$0xff]  ;;  %v547_v26 = vmul.f32 11.313708, %v515_v22  ;;  %s5251_s9 = scalar_lea.vmem %s7013_s8, %s5244_s27 }
  0x94   : > { %v4759_v24 = vadd.f32 %v577_v19, %v545_v18  ;;  %v579_v27 = vld [vmem:[#allocation4 + $0x30] sm:$0xff]  ;;  %v548_v28 = vmul.f32 11.313708, %v516_v23  ;;  %v580_v29 = vld [vmem:[#allocation4 + $0x38] sm:$0xff]  ;;  %v517_v30 = vld [vmem:[%s4725_s26 + $0x40] sm:$0xff]  ;;  %s4480_s16 = smov 96  }
  0x95   : > { %v4761_v25 = vadd.f32 %v578_v21, %v546_v20  ;;  %v518_v31 = vld [vmem:[%s4725_s26 + $0x48] sm:$0xff]  ;;  %v4767_v32 = vadd.f32 %v579_v27, %v547_v26  ;;  %v549_v34 = vmul.f32 11.313708, %v517_v30  ;;  %v581_v35 = vld [vmem:[#allocation4 + $0x40] sm:$0xff]  ;;  %v519_v38 = vld [vmem:[%s4725_s26 + $0x50] sm:$0xff]  ;;  %s7110_s23 = sld [smem:[#allocation43_spill]] }
  0x96   : > { %v4769_v33 = vadd.f32 %v580_v29, %v548_v28  ;;  %v550_v36 = vmul.f32 11.313708, %v518_v31  ;;  %v582_v37 = vld [vmem:[#allocation4 + $0x48] sm:$0xff]  ;;  %v520_v39 = vld [vmem:[%s4725_s26 + $0x58] sm:$0xff]  ;;  %v551_v42 = vmul.f32 11.313708, %v519_v38 }
  0x97   : > { %641 = vadd.xlane.f32.xlu0 %v4751_v16  ;;  %645 = vadd.xlane.f32.xlu1 %v4753_v17  ;;  %v4775_v40 = vadd.f32 %v581_v35, %v549_v34  ;;  %v583_v43 = vld [vmem:[#allocation4 + $0x50] sm:$0xff]  ;;  %v552_v44 = vmul.f32 11.313708, %v520_v39  ;;  %v584_v45 = vld [vmem:[#allocation4 + $0x58] sm:$0xff]  ;;  %v521_v46 = vld [vmem:[%s4725_s26 + $0x60] sm:$0xff]  ;;  %s7111_s22 = sld [smem:[#allocation44_spill]] }
  0x98   : > { %v4777_v41 = vadd.f32 %v582_v37, %v550_v36  ;;  %v522_v47 = vld [vmem:[%s4725_s26 + $0x68] sm:$0xff]  ;;  %v523_v48 = vld [vmem:[%s4725_s26 + $0x70] sm:$0xff]  ;;  %v524_v49 = vld [vmem:[%s4725_s26 + $0x78] sm:$0xff]  ;;  %v4785_v50 = vadd.f32 %v583_v43, %v551_v42  ;;  %v553_v52 = vmul.f32 11.313708, %v521_v46  ;;  %s4481_s10 = smov 64  }
  0x99   : > { %v4787_v51 = vadd.f32 %v584_v45, %v552_v44  ;;  %v554_v53 = vmul.f32 11.313708, %v522_v47  ;;  %v585_v54 = vld [vmem:[#allocation4 + $0x60] sm:$0xff]  ;;  %v586_v55 = vld [vmem:[#allocation4 + $0x68] sm:$0xff]  ;;  %v555_v56 = vmul.f32 11.313708, %v523_v48 }
  0x9a   : > { %v556_v57 = vmul.f32 11.313708, %v524_v49  ;;  %v525_v58 = vld [vmem:[%s4725_s26 + $0x80] sm:$0xff]  ;;  %v587_v59 = vld [vmem:[#allocation4 + $0x70] sm:$0xff]  ;;  %v588_v60 = vld [vmem:[#allocation4 + $0x78] sm:$0xff]  ;;  %v4793_v62 = vadd.f32 %v585_v54, %v553_v52  ;;  %s4482_s12 = smov 32  }
  0x9b   : > { %647 = vadd.xlane.f32.xlu0 %v4759_v24  ;;  %649 = vadd.xlane.f32.xlu1 %v4761_v25  ;;  %v526_v61 = vld [vmem:[%s4725_s26 + $0x88] sm:$0xff]  ;;  %v4795_v63 = vadd.f32 %v586_v55, %v554_v53  ;;  %v557_v0 = vmul.f32 11.313708, %v525_v58  ;;  %v527_v1 = vld [vmem:[%s4725_s26 + $0x90] sm:$0xff]  ;;  %v589_v2 = vld [vmem:[#allocation4 + $0x80] sm:$0xff]  ;;  %v4801_v6 = vadd.f32 %v587_v59, %v555_v56 }
  0x9c   : > { %v558_v3 = vmul.f32 11.313708, %v526_v61  ;;  %v590_v4 = vld [vmem:[#allocation4 + $0x88] sm:$0xff]  ;;  %v528_v5 = vld [vmem:[%s4725_s26 + $0x98] sm:$0xff]  ;;  %v4803_v7 = vadd.f32 %v588_v60, %v556_v57  ;;  %v559_v8 = vmul.f32 11.313708, %v527_v1 }
  0x9d   : > { %v591_v9 = vld [vmem:[#allocation4 + $0x90] sm:$0xff]  ;;  %v592_v10 = vld [vmem:[#allocation4 + $0x98] sm:$0xff]  ;;  %v529_v13 = vld [vmem:[%s4725_s26 + $0xa0] sm:$0xff]  ;;  %v4809_v15 = vadd.f32 %v589_v2, %v557_v0  ;;  %v560_v19 = vmul.f32 11.313708, %v528_v5  ;;  %s5318_s28 = scalar_lea.vmem %s7111_s22, %s5244_s27 }
  0x9e   : > { %v530_v14 = vld [vmem:[%s4725_s26 + $0xa8] sm:$0xff]  ;;  %v4811_v18 = vadd.f32 %v590_v4, %v558_v3  ;;  %v4815_v20 = vadd.f32 %v591_v9, %v559_v8  ;;  %v561_v22 = vmul.f32 11.313708, %v529_v13  ;;  %v593_v23 = vld [vmem:[#allocation4 + $0xa0] sm:$0xff]  ;;  %v531_v28 = vld [vmem:[%s4725_s26 + $0xb0] sm:$0xff] }
  0x9f   : > { %651 = vadd.xlane.f32.xlu0 %v4767_v32  ;;  %653 = vadd.xlane.f32.xlu1 %v4769_v33  ;;  %v4817_v21 = vadd.f32 %v592_v10, %v560_v19  ;;  %v562_v26 = vmul.f32 11.313708, %v530_v14  ;;  %v594_v27 = vld [vmem:[#allocation4 + $0xa8] sm:$0xff]  ;;  %v532_v29 = vld [vmem:[%s4725_s26 + $0xb8] sm:$0xff]  ;;  %v563_v34 = vmul.f32 11.313708, %v531_v28 }
  0xa0   : > { %v4823_v30 = vadd.f32 %v593_v23, %v561_v22  ;;  %v595_v35 = vld [vmem:[#allocation4 + $0xb0] sm:$0xff]  ;;  %v564_v36 = vmul.f32 11.313708, %v532_v29  ;;  %v596_v37 = vld [vmem:[#allocation4 + $0xb8] sm:$0xff]  ;;  %v533_v38 = vld [vmem:[%s4725_s26 + $0xc0] sm:$0xff] }
  0xa1   : > { %v4825_v31 = vadd.f32 %v594_v27, %v562_v26  ;;  %v534_v39 = vld [vmem:[%s4725_s26 + $0xc8] sm:$0xff]  ;;  %v4831_v42 = vadd.f32 %v595_v35, %v563_v34  ;;  %v565_v44 = vmul.f32 11.313708, %v533_v38  ;;  %v597_v45 = vld [vmem:[#allocation4 + $0xc0] sm:$0xff]  ;;  %v535_v48 = vld [vmem:[%s4725_s26 + $0xd0] sm:$0xff] }
  0xa2   : > { %v4833_v43 = vadd.f32 %v596_v37, %v564_v36  ;;  %v566_v46 = vmul.f32 11.313708, %v534_v39  ;;  %v598_v47 = vld [vmem:[#allocation4 + $0xc8] sm:$0xff]  ;;  %v536_v49 = vld [vmem:[%s4725_s26 + $0xd8] sm:$0xff]  ;;  %v567_v54 = vmul.f32 11.313708, %v535_v48 }
  0xa3   : > { %655 = vadd.xlane.f32.xlu0 %v4775_v40  ;;  %657 = vadd.xlane.f32.xlu1 %v4777_v41  ;;  %v4839_v52 = vadd.f32 %v597_v45, %v565_v44  ;;  %v599_v55 = vld [vmem:[#allocation4 + $0xd0] sm:$0xff]  ;;  %v568_v56 = vmul.f32 11.313708, %v536_v49  ;;  %v600_v57 = vld [vmem:[#allocation4 + $0xd8] sm:$0xff]  ;;  %v537_v58 = vld [vmem:[%s4725_s26 + $0xe0] sm:$0xff] }
  0xa4   : > { %v4841_v53 = vadd.f32 %v598_v47, %v566_v46  ;;  %v538_v59 = vld [vmem:[%s4725_s26 + $0xe8] sm:$0xff]  ;;  %v4847_v60 = vadd.f32 %v599_v55, %v567_v54  ;;  %v569_v0 = vmul.f32 11.313708, %v537_v58  ;;  %v601_v1 = vld [vmem:[#allocation4 + $0xe0] sm:$0xff]  ;;  %v539_v4 = vld [vmem:[%s4725_s26 + $0xf0] sm:$0xff] }
  0xa5   : > { %v4849_v61 = vadd.f32 %v600_v57, %v568_v56  ;;  %v570_v2 = vmul.f32 11.313708, %v538_v59  ;;  %v602_v3 = vld [vmem:[#allocation4 + $0xe8] sm:$0xff]  ;;  %v540_v5 = vld [vmem:[%s4725_s26 + $0xf8] sm:$0xff]  ;;  %v571_v10 = vmul.f32 11.313708, %v539_v4  ;;  %s5308_s26 = scalar_lea.vmem %s7110_s23, %s5244_s27 }
  0xa6   : > { %v4855_v8 = vadd.f32 %v601_v1, %v569_v0  ;;  %v572_v13 = vmul.f32 11.313708, %v540_v5  ;;  %v603_v14 = vld [vmem:[#allocation4 + $0xf0] sm:$0xff]  ;;  %v604_v19 = vld [vmem:[#allocation4 + $0xf8] sm:$0xff]  ;;  %v4201_v26 = vld [vmem:[#allocation6] sm:$0xff]  }
  0xa7   : > { %659 = vadd.xlane.f32.xlu0 %v4785_v50  ;;  %661 = vadd.xlane.f32.xlu1 %v4787_v51  ;;  %v4857_v9 = vadd.f32 %v602_v3, %v570_v2  ;;  %v4861_v22 = vadd.f32 %v603_v14, %v571_v10 }
  0xa8   : > { %v4863_v23 = vadd.f32 %v604_v19, %v572_v13  ;;  %4043 = vmatprep.subr.bf16.mxu0 %v4201_v26 }
  0xa9   : > { %4044 = vmatpush3.bf16.msra.mxu0 %v4201_v26 }
  0xab   : > { %663 = vadd.xlane.f32.xlu0 %v4793_v62  ;;  %665 = vadd.xlane.f32.xlu1 %v4795_v63 }
  0xaf   : > { %667 = vadd.xlane.f32.xlu0 %v4801_v6  ;;  %669 = vadd.xlane.f32.xlu1 %v4803_v7 }
  0xb3   : > { %671 = vadd.xlane.f32.xlu0 %v4809_v15  ;;  %673 = vadd.xlane.f32.xlu1 %v4811_v18 }
  0xb7   : > { %675 = vadd.xlane.f32.xlu0 %v4815_v20  ;;  %677 = vadd.xlane.f32.xlu1 %v4817_v21 }
  0xbb   : > { %679 = vadd.xlane.f32.xlu0 %v4823_v30  ;;  %681 = vadd.xlane.f32.xlu1 %v4825_v31 }
  0xbf   : > { %683 = vadd.xlane.f32.xlu0 %v4831_v42  ;;  %685 = vadd.xlane.f32.xlu1 %v4833_v43 }
  0xc3   : > { %687 = vadd.xlane.f32.xlu0 %v4839_v52  ;;  %689 = vadd.xlane.f32.xlu1 %v4841_v53 }
  0xc7   : > { %691 = vadd.xlane.f32.xlu0 %v4847_v60  ;;  %693 = vadd.xlane.f32.xlu1 %v4849_v61 }
  0xcb   : > { %695 = vadd.xlane.f32.xlu0 %v4855_v8  ;;  %697 = vadd.xlane.f32.xlu1 %v4857_v9 }
  0xcf   : > { %699 = vadd.xlane.f32.xlu0 %v4861_v22  ;;  %701 = vadd.xlane.f32.xlu1 %v4863_v23 }
 0x120   : > { %v640_v27 = vpop.xlane.xlu0 %639  ;;  %v644_v28 = vpop.xlane.xlu1 %643 }
 0x121   : > { %v704_v29 = vmul.f32 0.0078125, %v640_v27  ;;  %v706_v34 = vmul.f32 0.0078125, %v644_v28 }
 0x123   : > { %v4868_v35 = vsub.f32 %v4743_v11, %v704_v29  ;;  %v4871_v36 = vsub.f32 %v4745_v12, %v706_v34  ;;  %v4202_v34 = vld [vmem:[#allocation6 + $0x8] sm:$0xff]  }
 0x124   : > { %v642_v37 = vpop.xlane.xlu0 %641  ;;  %v646_v38 = vpop.xlane.xlu1 %645  ;;  %4045 = vmatprep.subr.bf16.mxu0 %v4202_v34 }
 0x125   : > { %v705_v39 = vmul.f32 0.0078125, %v642_v37  ;;  %v768_v44 = vmul.f32 %v4868_v35, %v4868_v35  ;;  %v707_v45 = vmul.f32 0.0078125, %v646_v38  ;;  %v770_v46 = vmul.f32 %v4871_v36, %v4871_v36  ;;  %4046 = vmatpush3.bf16.msra.mxu0 %v4202_v34 }
 0x127   : > { %800 = vadd.xlane.f32.xlu0 %v768_v44  ;;  %v4878_v47 = vsub.f32 %v4751_v16, %v705_v39  ;;  %v4881_v11 = vsub.f32 %v4753_v17, %v707_v45 }
 0x128   : > { %v648_v48 = vpop.xlane.xlu0 %647  ;;  %v650_v12 = vpop.xlane.xlu1 %649 }
 0x129   : > { %v708_v49 = vmul.f32 0.0078125, %v648_v48  ;;  %v769_v54 = vmul.f32 %v4878_v47, %v4878_v47  ;;  %v709_v55 = vmul.f32 0.0078125, %v650_v12  ;;  %v771_v56 = vmul.f32 %v4881_v11, %v4881_v11  ;;  %v4203_v12 = vld [vmem:[#allocation6 + $0x10] sm:$0xff]  }
 0x12a   : > { %4047 = vmatprep.subr.bf16.mxu0 %v4203_v12 }
 0x12b   : > { %804 = vadd.xlane.f32.xlu0 %v770_v46  ;;  %802 = vadd.xlane.f32.xlu1 %v769_v54  ;;  %v4888_v57 = vsub.f32 %v4759_v24, %v708_v49  ;;  %v4891_v16 = vsub.f32 %v4761_v25, %v709_v55 }
 0x12c   : > { %v652_v17 = vpop.xlane.xlu0 %651  ;;  %v654_v58 = vpop.xlane.xlu1 %653  ;;  %4048 = vmatpush3.bf16.msra.mxu0 %v4203_v12 }
 0x12d   : > { %v710_v59 = vmul.f32 0.0078125, %v652_v17  ;;  %v772_v0 = vmul.f32 %v4888_v57, %v4888_v57  ;;  %v711_v1 = vmul.f32 0.0078125, %v654_v58  ;;  %v773_v2 = vmul.f32 %v4891_v16, %v4891_v16 }
 0x12f   : > { %806 = vadd.xlane.f32.xlu1 %v771_v56  ;;  %808 = vadd.xlane.f32.xlu0 %v772_v0  ;;  %v4898_v3 = vsub.f32 %v4767_v32, %v710_v59  ;;  %v4901_v24 = vsub.f32 %v4769_v33, %v711_v1  ;;  %v4204_v59 = vld [vmem:[#allocation6 + $0x18] sm:$0xff]   ;;  %v4943_v0 = vld [vmem:[#allocation7 + $0x4] ss:$8 sps:$4 sm:$0xff]  }
 0x130   : > { %v656_v25 = vpop.xlane.xlu0 %655  ;;  %v658_v4 = vpop.xlane.xlu1 %657  ;;  %4049 = vmatprep.subr.bf16.mxu0 %v4204_v59  ;;  %4091 = vmatprep.subr.bf16.mxu1 %v4943_v0 }
 0x131   : > { %v712_v5 = vmul.f32 0.0078125, %v656_v25  ;;  %v774_v10 = vmul.f32 %v4898_v3, %v4898_v3  ;;  %v713_v13 = vmul.f32 0.0078125, %v658_v4  ;;  %v775_v14 = vmul.f32 %v4901_v24, %v4901_v24  ;;  %v4945_v25 = vld [vmem:[#allocation7] ss:$8 sps:$4 sm:$0xff]   ;;  %4050 = vmatpush3.bf16.msra.mxu0 %v4204_v59 }
 0x132   : > { %4099 = vmatpush1.bf16.msra.mxu1 %v4945_v25 }
 0x133   : > { %810 = vadd.xlane.f32.xlu1 %v773_v2  ;;  %812 = vadd.xlane.f32.xlu0 %v774_v10  ;;  %v4908_v19 = vsub.f32 %v4775_v40, %v712_v5  ;;  %v4911_v32 = vsub.f32 %v4777_v41, %v713_v13 }
 0x134   : > { %v660_v33 = vpop.xlane.xlu0 %659  ;;  %v662_v26 = vpop.xlane.xlu1 %661 }
 0x135   : > { %v714_v27 = vmul.f32 0.0078125, %v660_v33  ;;  %v776_v28 = vmul.f32 %v4908_v19, %v4908_v19  ;;  %v715_v29 = vmul.f32 0.0078125, %v662_v26  ;;  %v777_v37 = vmul.f32 %v4911_v32, %v4911_v32  ;;  %v4959_v33 = vld [vmem:[#allocation7 + $0x14] ss:$8 sps:$4 sm:$0xff]  }
 0x136   : > { %4092 = vmatprep.subr.bf16.mxu1 %v4959_v33 }
 0x137   : > { %814 = vadd.xlane.f32.xlu1 %v775_v14  ;;  %816 = vadd.xlane.f32.xlu0 %v776_v28  ;;  %v4918_v38 = vsub.f32 %v4785_v50, %v714_v27  ;;  %v4921_v40 = vsub.f32 %v4787_v51, %v715_v29  ;;  %v4208_v14 = vld [vmem:[#allocation6 + $0x20] sm:$0xff]   ;;  %v4961_v28 = vld [vmem:[#allocation7 + $0x10] ss:$8 sps:$4 sm:$0xff]  }
 0x138   : > { %v664_v41 = vpop.xlane.xlu0 %663  ;;  %v666_v39 = vpop.xlane.xlu1 %665  ;;  %4051 = vmatprep.subr.bf16.mxu0 %v4208_v14  ;;  %4100 = vmatpush1.bf16.msra.mxu1 %v4961_v28 }
 0x139   : > { %v716_v44 = vmul.f32 0.0078125, %v664_v41  ;;  %v778_v45 = vmul.f32 %v4918_v38, %v4918_v38  ;;  %v717_v46 = vmul.f32 0.0078125, %v666_v39  ;;  %v779_v48 = vmul.f32 %v4921_v40, %v4921_v40  ;;  %4052 = vmatpush3.bf16.msra.mxu0 %v4208_v14  ;;  %v4212_v39 = vld [vmem:[#allocation6 + $0x28] sm:$0xff]  }
 0x13a   : > { %4053 = vmatprep.subr.bf16.mxu0 %v4212_v39  ;;  %v5007_v14 = vld [vmem:[#allocation7 + $0x44] ss:$8 sps:$4 sm:$0xff]  }
 0x13b   : > { %818 = vadd.xlane.f32.xlu1 %v777_v37  ;;  %820 = vadd.xlane.f32.xlu0 %v778_v45  ;;  %v4928_v50 = vsub.f32 %v4793_v62, %v716_v44  ;;  %v4931_v51 = vsub.f32 %v4795_v63, %v717_v46  ;;  %v4975_v44 = vld [vmem:[#allocation7 + $0x24] ss:$8 sps:$4 sm:$0xff]  }
 0x13c   : > { %v668_v49 = vpop.xlane.xlu0 %667  ;;  %v670_v54 = vpop.xlane.xlu1 %669  ;;  %4093 = vmatprep.subr.bf16.mxu1 %v4975_v44 }
 0x13d   : > { %v718_v55 = vmul.f32 0.0078125, %v668_v49  ;;  %v780_v56 = vmul.f32 %v4928_v50, %v4928_v50  ;;  %v719_v17 = vmul.f32 0.0078125, %v670_v54  ;;  %v781_v58 = vmul.f32 %v4931_v51, %v4931_v51  ;;  %4054 = vmatpush3.bf16.msra.mxu0 %v4212_v39 }
 0x13f   : > { %822 = vadd.xlane.f32.xlu1 %v779_v48  ;;  %824 = vadd.xlane.f32.xlu0 %v780_v56  ;;  %v4938_v62 = vsub.f32 %v4801_v6, %v718_v55  ;;  %v4941_v63 = vsub.f32 %v4803_v7, %v719_v17  ;;  %v4977_v48 = vld [vmem:[#allocation7 + $0x20] ss:$8 sps:$4 sm:$0xff]   ;;  %v4216_v56 = vld [vmem:[#allocation6 + $0x30] sm:$0xff]  }
 0x140   : > { %v672_v1 = vpop.xlane.xlu0 %671  ;;  %v674_v2 = vpop.xlane.xlu1 %673  ;;  %4101 = vmatpush1.bf16.msra.mxu1 %v4977_v48  ;;  %v4991_v17 = vld [vmem:[#allocation7 + $0x34] ss:$8 sps:$4 sm:$0xff]   ;;  %4055 = vmatprep.subr.bf16.mxu0 %v4216_v56 }
 0x141   : > { %v720_v4 = vmul.f32 0.0078125, %v672_v1  ;;  %v782_v5 = vmul.f32 %v4938_v62, %v4938_v62  ;;  %v721_v10 = vmul.f32 0.0078125, %v674_v2  ;;  %v783_v6 = vmul.f32 %v4941_v63, %v4941_v63  ;;  %v4993_v1 = vld [vmem:[#allocation7 + $0x30] ss:$8 sps:$4 sm:$0xff]   ;;  %4094 = vmatprep.subr.bf16.mxu1 %v4991_v17  ;;  %4056 = vmatpush3.bf16.msra.mxu0 %v4216_v56 }
 0x143   : > { %826 = vadd.xlane.f32.xlu1 %v781_v58  ;;  %828 = vadd.xlane.f32.xlu0 %v782_v5  ;;  %v4954_v7 = vsub.f32 %v4809_v15, %v720_v4  ;;  %v4957_v13 = vsub.f32 %v4811_v18, %v721_v10 }
 0x144   : > { %v676_v26 = vpop.xlane.xlu0 %675  ;;  %v678_v27 = vpop.xlane.xlu1 %677  ;;  %4102 = vmatpush1.bf16.msra.mxu1 %v4993_v1 }
 0x145   : > { %v722_v29 = vmul.f32 0.0078125, %v676_v26  ;;  %v784_v34 = vmul.f32 %v4954_v7, %v4954_v7  ;;  %v723_v37 = vmul.f32 0.0078125, %v678_v27  ;;  %v785_v15 = vmul.f32 %v4957_v13, %v4957_v13  ;;  %4095 = vmatprep.subr.bf16.mxu1 %v5007_v14 }
 0x147   : > { %830 = vadd.xlane.f32.xlu1 %v783_v6  ;;  %832 = vadd.xlane.f32.xlu0 %v784_v34  ;;  %v4970_v18 = vsub.f32 %v4815_v20, %v722_v29  ;;  %v4973_v41 = vsub.f32 %v4817_v21, %v723_v37  ;;  %v4220_v6 = vld [vmem:[#allocation6 + $0x38] sm:$0xff]   ;;  %v5009_v29 = vld [vmem:[#allocation7 + $0x40] ss:$8 sps:$4 sm:$0xff]  }
 0x148   : > { %v680_v45 = vpop.xlane.xlu0 %679  ;;  %v682_v46 = vpop.xlane.xlu1 %681  ;;  %4057 = vmatprep.subr.bf16.mxu0 %v4220_v6  ;;  %4103 = vmatpush1.bf16.msra.mxu1 %v5009_v29 }
 0x149   : > { %v724_v12 = vmul.f32 0.0078125, %v680_v45  ;;  %v786_v49 = vmul.f32 %v4970_v18, %v4970_v18  ;;  %v725_v54 = vmul.f32 0.0078125, %v682_v46  ;;  %v787_v20 = vmul.f32 %v4973_v41, %v4973_v41  ;;  %4058 = vmatpush3.bf16.msra.mxu0 %v4220_v6  ;;  %v5023_v45 = vld [vmem:[#allocation7 + $0x54] ss:$8 sps:$4 sm:$0xff]   ;;  %v5045_v6 = vld [vmem:[#allocation7 + $0x60] ss:$8 sps:$4 sm:$0xff]  }
 0x14a   : > { %1440 = vmatprep.subr.bf16.mxu0 %v4943_v0  ;;  %4096 = vmatprep.subr.bf16.mxu1 %v5023_v45  ;;  %v5040_v0 = vld [vmem:[#allocation7 + $0x64] ss:$8 sps:$4 sm:$0xff]  }
 0x14b   : > { %834 = vadd.xlane.f32.xlu1 %v785_v15  ;;  %836 = vadd.xlane.f32.xlu0 %v786_v49  ;;  %v4986_v21 = vsub.f32 %v4823_v30, %v724_v12  ;;  %v4989_v55 = vsub.f32 %v4825_v31, %v725_v54  ;;  %v5025_v49 = vld [vmem:[#allocation7 + $0x50] ss:$8 sps:$4 sm:$0xff]  }
 0x14c   : > { %v684_v58 = vpop.xlane.xlu0 %683  ;;  %v686_v59 = vpop.xlane.xlu1 %685  ;;  %4104 = vmatpush1.bf16.msra.mxu1 %v5025_v49 }
 0x14d   : > { %v726_v2 = vmul.f32 0.0078125, %v684_v58  ;;  %v788_v4 = vmul.f32 %v4986_v21, %v4986_v21  ;;  %v727_v5 = vmul.f32 0.0078125, %v686_v59  ;;  %v789_v30 = vmul.f32 %v4989_v55, %v4989_v55  ;;  %4097 = vmatprep.subr.bf16.mxu1 %v5040_v0 }
 0x14f   : > { %838 = vadd.xlane.f32.xlu1 %v787_v20  ;;  %840 = vadd.xlane.f32.xlu0 %v788_v4  ;;  %v5002_v31 = vsub.f32 %v4831_v42, %v726_v2  ;;  %v5005_v10 = vsub.f32 %v4833_v43, %v727_v5 }
 0x150   : > { %v688_v26 = vpop.xlane.xlu0 %687  ;;  %v690_v27 = vpop.xlane.xlu1 %689  ;;  %4105 = vmatpush1.bf16.msra.mxu1 %v5045_v6 }
 0x151   : > { %v728_v34 = vmul.f32 0.0078125, %v688_v26  ;;  %v790_v37 = vmul.f32 %v5002_v31, %v5002_v31  ;;  %v729_v15 = vmul.f32 0.0078125, %v690_v27  ;;  %v791_v42 = vmul.f32 %v5005_v10, %v5005_v10 }
 0x153   : > { %842 = vadd.xlane.f32.xlu1 %v789_v30  ;;  %844 = vadd.xlane.f32.xlu0 %v790_v37  ;;  %v5018_v43 = vsub.f32 %v4839_v52, %v728_v34  ;;  %v5021_v39 = vsub.f32 %v4841_v53, %v729_v15  ;;  %v5056_v37 = vld [vmem:[#allocation7 + $0x74] ss:$8 sps:$4 sm:$0xff]  }
 0x154   : > { %v692_v46 = vpop.xlane.xlu0 %691  ;;  %v694_v12 = vpop.xlane.xlu1 %693  ;;  %4098 = vmatprep.subr.bf16.mxu1 %v5056_v37 }
 0x155   : > { %v730_v54 = vmul.f32 0.0078125, %v692_v46  ;;  %v792_v20 = vmul.f32 %v5018_v43, %v5018_v43  ;;  %v731_v56 = vmul.f32 0.0078125, %v694_v12  ;;  %v793_v52 = vmul.f32 %v5021_v39, %v5021_v39  ;;  %v5060_v12 = vld [vmem:[#allocation7 + $0x70] ss:$8 sps:$4 sm:$0xff]  }
 0x156   : > { %4106 = vmatpush1.bf16.msra.mxu1 %v5060_v12 }
 0x157   : > { %846 = vadd.xlane.f32.xlu1 %v791_v42  ;;  %848 = vadd.xlane.f32.xlu0 %v792_v20  ;;  %v5035_v53 = vsub.f32 %v4847_v60, %v730_v54  ;;  %v5038_v58 = vsub.f32 %v4849_v61, %v731_v56  ;;  %v7024_v56 = vmov 0  }
 0x158   : > { %v696_v59 = vpop.xlane.xlu0 %695  ;;  %v698_v2 = vpop.xlane.xlu1 %697  ;;  %1512 = vmatprep.mubr.bf16.mxu1 %v7024_v56 }
 0x159   : > { %v732_v4 = vmul.f32 0.0078125, %v696_v59  ;;  %v794_v5 = vmul.f32 %v5035_v53, %v5035_v53  ;;  %v733_v30 = vmul.f32 0.0078125, %v698_v2  ;;  %v795_v60 = vmul.f32 %v5038_v58, %v5038_v58 }
 0x15b   : > { %850 = vadd.xlane.f32.xlu1 %v793_v52  ;;  %852 = vadd.xlane.f32.xlu0 %v794_v5  ;;  %v5050_v61 = vsub.f32 %v4855_v8, %v732_v4  ;;  %v5053_v26 = vsub.f32 %v4857_v9, %v733_v30 }
 0x15c   : > { %v700_v27 = vpop.xlane.xlu0 %699  ;;  %v702_v34 = vpop.xlane.xlu1 %701 }
 0x15d   : > { %7100 = vst [vmem:[#allocation12_spill] sm:$0xff] %v5050_v61  ;;  %7101 = vst [vmem:[#allocation13_spill] sm:$0xff] %v5053_v26  ;;  %v734_v15 = vmul.f32 0.0078125, %v700_v27  ;;  %v796_v42 = vmul.f32 %v5050_v61, %v5050_v61  ;;  %v735_v46 = vmul.f32 0.0078125, %v702_v34  ;;  %v797_v8 = vmul.f32 %v5053_v26, %v5053_v26 }
 0x15f   : > { %854 = vadd.xlane.f32.xlu1 %v795_v60  ;;  %856 = vadd.xlane.f32.xlu0 %v796_v42  ;;  %v5066_v9 = vsub.f32 %v4861_v22, %v734_v15  ;;  %v5069_v54 = vsub.f32 %v4863_v23, %v735_v46 }
 0x161   : > { %7102 = vst [vmem:[#allocation14_spill] sm:$0xff] %v5066_v9  ;;  %7103 = vst [vmem:[#allocation15_spill] sm:$0xff] %v5069_v54  ;;  %v798_v20 = vmul.f32 %v5066_v9, %v5066_v9  ;;  %v799_v52 = vmul.f32 %v5069_v54, %v5069_v54 }
 0x163   : > { %858 = vadd.xlane.f32.xlu1 %v797_v8  ;;  %860 = vadd.xlane.f32.xlu0 %v798_v20 }
 0x167   : > { %862 = vadd.xlane.f32.xlu1 %v799_v52 }
 0x1b4   : > { %v801_v59 = vpop.xlane.xlu0 %800 }
 0x1b5   : > { %v864_v22 = vmul.f32 0.0078125, %v801_v59 }
 0x1b7   : > { %v896_v2 = vadd.f32 1e-05, %v864_v22 }
 0x1b8   : > { %v803_v4 = vpop.xlane.xlu1 %802  ;;  %v805_v23 = vpop.xlane.xlu0 %804 }
 0x1b9   : > { %4233 = vrsqrt.f32 %v896_v2  ;;  %v865_v5 = vmul.f32 0.0078125, %v803_v4  ;;  %v866_v30 = vmul.f32 0.0078125, %v805_v23 }
 0x1bb   : > { %v897_v60 = vadd.f32 1e-05, %v865_v5  ;;  %v898_v27 = vadd.f32 1e-05, %v866_v30 }
 0x1bc   : > { %v807_v34 = vpop.xlane.xlu1 %806  ;;  %v809_v15 = vpop.xlane.xlu0 %808 }
 0x1bd   : > { %4235 = vrsqrt.f32 %v897_v60  ;;  %v867_v42 = vmul.f32 0.0078125, %v807_v34  ;;  %v868_v46 = vmul.f32 0.0078125, %v809_v15 }
 0x1be   : > { %4237 = vrsqrt.f32 %v898_v27  ;;  %v5081_v27 = vld [vmem:[%s7007_s2] ss:$0 sm:$0xff] }
 0x1bf   : > { %v899_v8 = vadd.f32 1e-05, %v867_v42  ;;  %v900_v20 = vadd.f32 1e-05, %v868_v46 }
 0x1c0   : > { %v811_v56 = vpop.xlane.xlu1 %810  ;;  %v813_v52 = vpop.xlane.xlu0 %812 }
 0x1c1   : > { %4239 = vrsqrt.f32 %v899_v8  ;;  %v869_v59 = vmul.f32 0.0078125, %v811_v56  ;;  %v870_v22 = vmul.f32 0.0078125, %v813_v52 }
 0x1c2   : > { %4241 = vrsqrt.f32 %v900_v20 }
 0x1c3   : > { %v4234_v54 = vpop.eup %4233  ;;  %v901_v2 = vadd.f32 1e-05, %v869_v59  ;;  %v902_v4 = vadd.f32 1e-05, %v870_v22  ;;  %v5088_v22 = vld [vmem:[%s7008_s3] ss:$0 sm:$0xff] }
 0x1c4   : > { %v815_v23 = vpop.xlane.xlu1 %814  ;;  %v817_v5 = vpop.xlane.xlu0 %816  ;;  %v960_v30 = vmul.f32 %v4234_v54, %v4868_v35 }
 0x1c5   : > { %4243 = vrsqrt.f32 %v901_v2  ;;  %v871_v60 = vmul.f32 0.0078125, %v815_v23  ;;  %v872_v34 = vmul.f32 0.0078125, %v817_v5 }
 0x1c6   : > { %4245 = vrsqrt.f32 %v902_v4  ;;  %v998_v59 = vmul.f32 %v5081_v27, %v960_v30 }
 0x1c7   : > { %v4236_v15 = vpop.eup %4235  ;;  %v903_v56 = vadd.f32 1e-05, %v871_v60  ;;  %v904_v42 = vadd.f32 1e-05, %v872_v34 }
 0x1c8   : > { %v4238_v46 = vpop.eup %4237  ;;  %v819_v8 = vpop.xlane.xlu1 %818  ;;  %v961_v52 = vmul.f32 %v4236_v15, %v4878_v47  ;;  %v1036_v30 = vadd.f32 %v5088_v22, %v998_v59 }
 0x1c9   : > { %v821_v20 = vpop.xlane.xlu0 %820  ;;  %4247 = vrsqrt.f32 %v903_v56  ;;  %v873_v35 = vmul.f32 0.0078125, %v819_v8  ;;  %v962_v2 = vmul.f32 %v4238_v46, %v4871_v36 }
 0x1ca   : > { %v874_v54 = vmul.f32 0.0078125, %v821_v20  ;;  %4249 = vrsqrt.f32 %v904_v42  ;;  %v999_v4 = vmul.f32 %v5081_v27, %v961_v52 }
 0x1cb   : > { %v4240_v23 = vpop.eup %4239  ;;  %v905_v5 = vadd.f32 1e-05, %v873_v35  ;;  %v1000_v20 = vmul.f32 %v5081_v27, %v962_v2 }
 0x1cc   : > { %v906_v60 = vadd.f32 1e-05, %v874_v54  ;;  %v4242_v34 = vpop.eup %4241  ;;  %v823_v47 = vpop.xlane.xlu1 %822  ;;  %v1037_v56 = vadd.f32 %v5088_v22, %v999_v4  ;;  %v963_v8 = vmul.f32 %v4240_v23, %v4881_v11 }
 0x1cd   : > { %v825_v15 = vpop.xlane.xlu0 %824  ;;  %4251 = vrsqrt.f32 %v905_v5  ;;  %v875_v9 = vmul.f32 0.0078125, %v823_v47  ;;  %v964_v52 = vmul.f32 %v4242_v34, %v4888_v57  ;;  %v1038_v2 = vadd.f32 %v5088_v22, %v1000_v20 }
 0x1ce   : > { %v876_v36 = vmul.f32 0.0078125, %v825_v15  ;;  %4253 = vrsqrt.f32 %v906_v60  ;;  %v5096_v42 = vpack.c.bf16 %v1037_v56, %v1036_v30  ;;  %v1001_v46 = vmul.f32 %v5081_v27, %v963_v8 }
 0x1cf   : > { %v4244_v35 = vpop.eup %4243  ;;  %v907_v54 = vadd.f32 1e-05, %v875_v9  ;;  %v1002_v5 = vmul.f32 %v5081_v27, %v964_v52 }
 0x1d0   : > { %v908_v26 = vadd.f32 1e-05, %v876_v36  ;;  %v4246_v59 = vpop.eup %4245  ;;  %v827_v61 = vpop.xlane.xlu1 %826  ;;  %4059 = vmatprep.mubr.bf16.mxu0 %v5096_v42  ;;  %v1039_v4 = vadd.f32 %v5088_v22, %v1001_v46  ;;  %v965_v23 = vmul.f32 %v4244_v35, %v4891_v16 }
 0x1d1   : > { %v829_v11 = vpop.xlane.xlu0 %828  ;;  %4255 = vrsqrt.f32 %v907_v54  ;;  %v877_v60 = vmul.f32 0.0078125, %v827_v61  ;;  %v966_v57 = vmul.f32 %v4246_v59, %v4898_v3  ;;  %v1040_v36 = vadd.f32 %v5088_v22, %v1002_v5 }
 0x1d2   : > { %v878_v47 = vmul.f32 0.0078125, %v829_v11  ;;  %4257 = vrsqrt.f32 %v908_v26  ;;  %v5106_v9 = vpack.c.bf16 %v1039_v4, %v1038_v2  ;;  %v1003_v34 = vmul.f32 %v5081_v27, %v965_v23 }
 0x1d3   : > { %v4248_v15 = vpop.eup %4247  ;;  %v909_v30 = vadd.f32 1e-05, %v877_v60  ;;  %v1004_v3 = vmul.f32 %v5081_v27, %v966_v57 }
 0x1d4   : > { %v910_v56 = vadd.f32 1e-05, %v878_v47  ;;  %v4250_v8 = vpop.eup %4249  ;;  %v831_v20 = vpop.xlane.xlu1 %830  ;;  %4060 = vmatmul.mubr.bf16.vlgmr.msra.gmra.mrb[0].mxu0 %v5106_v9  ;;  %v1041_v61 = vadd.f32 %v5088_v22, %v1003_v34  ;;  %v967_v46 = vmul.f32 %v4248_v15, %v4901_v24 }
 0x1d5   : > { %v833_v16 = vpop.xlane.xlu0 %832  ;;  %4259 = vrsqrt.f32 %v909_v30  ;;  %v879_v26 = vmul.f32 0.0078125, %v831_v20  ;;  %1441 = vmatpush1.bf16.msra.mxu0 %v4945_v25  ;;  %v968_v59 = vmul.f32 %v4250_v8, %v4908_v19  ;;  %v1042_v60 = vadd.f32 %v5088_v22, %v1004_v3 }
 0x1d6   : > { %v880_v52 = vmul.f32 0.0078125, %v833_v16  ;;  %4261 = vrsqrt.f32 %v910_v56  ;;  %v5115_v35 = vpack.c.bf16 %v1041_v61, %v1040_v36  ;;  %v1005_v54 = vmul.f32 %v5081_v27, %v967_v46  ;;  %1442 = vmatprep.subr.bf16.mxu0 %v4959_v33 }
 0x1d7   : > { %v4252_v11 = vpop.eup %4251  ;;  %v911_v2 = vadd.f32 1e-05, %v879_v26  ;;  %v1006_v57 = vmul.f32 %v5081_v27, %v968_v59 }
 0x1d8   : > { %v912_v4 = vadd.f32 1e-05, %v880_v52  ;;  %v4254_v24 = vpop.eup %4253  ;;  %v835_v23 = vpop.xlane.xlu1 %834  ;;  %4063 = vmatprep.mubr.bf16.mxu0 %v5115_v35  ;;  %v1043_v25 = vadd.f32 %v5088_v22, %v1005_v54  ;;  %v969_v47 = vmul.f32 %v4252_v11, %v4911_v32 }
 0x1d9   : > { %v837_v5 = vpop.xlane.xlu0 %836  ;;  %4263 = vrsqrt.f32 %v911_v2  ;;  %v881_v19 = vmul.f32 0.0078125, %v835_v23  ;;  %v970_v33 = vmul.f32 %v4254_v24, %v4918_v38  ;;  %1443 = vmatpush1.bf16.msra.mxu0 %v4961_v28  ;;  %v1044_v38 = vadd.f32 %v5088_v22, %v1006_v57 }
 0x1da   : > { %v882_v34 = vmul.f32 0.0078125, %v837_v5  ;;  %4265 = vrsqrt.f32 %v912_v4  ;;  %v5127_v15 = vpack.c.bf16 %v1043_v25, %v1042_v60  ;;  %v1007_v30 = vmul.f32 %v5081_v27, %v969_v47  ;;  %1444 = vmatprep.subr.bf16.mxu0 %v4975_v44 }
 0x1db   : > { %v4256_v56 = vpop.eup %4255  ;;  %v913_v8 = vadd.f32 1e-05, %v881_v19  ;;  %v1008_v32 = vmul.f32 %v5081_v27, %v970_v33 }
 0x1dc   : > { %v914_v20 = vadd.f32 1e-05, %v882_v34  ;;  %v4258_v16 = vpop.eup %4257  ;;  %v839_v36 = vpop.xlane.xlu1 %838  ;;  %4064 = vmatmul.mubr.bf16.gmra.mrb[4].mxu0 %v5127_v15  ;;  %v1045_v28 = vadd.f32 %v5088_v22, %v1007_v30  ;;  %v971_v46 = vmul.f32 %v4256_v56, %v4921_v40 }
 0x1dd   : > { %v841_v61 = vpop.xlane.xlu0 %840  ;;  %4267 = vrsqrt.f32 %v913_v8  ;;  %v883_v3 = vmul.f32 0.0078125, %v839_v36  ;;  %1445 = vmatpush1.bf16.msra.mxu0 %v4977_v48  ;;  %v972_v54 = vmul.f32 %v4258_v16, %v4928_v50  ;;  %v1046_v4 = vadd.f32 %v5088_v22, %v1008_v32 }
 0x1de   : > { %v884_v26 = vmul.f32 0.0078125, %v841_v61  ;;  %4269 = vrsqrt.f32 %v914_v20  ;;  %v1072_v44 = vpack.c.bf16 %v1045_v28, %v1044_v38  ;;  %v1009_v52 = vmul.f32 %v5081_v27, %v971_v46  ;;  %1446 = vmatprep.subr.bf16.mxu0 %v4991_v17 }
 0x1df   : > { %v4260_v59 = vpop.eup %4259  ;;  %v915_v11 = vadd.f32 1e-05, %v883_v3  ;;  %v1010_v60 = vmul.f32 %v5081_v27, %v972_v54  ;;  %v7104_v17 = vmov 0  }
 0x1e0   : > { %v916_v2 = vadd.f32 1e-05, %v884_v26  ;;  %v4262_v24 = vpop.eup %4261  ;;  %v843_v40 = vpop.xlane.xlu1 %842  ;;  %4067 = vmatprep.mubr.bf16.mxu0 %v1072_v44  ;;  %1513 = vmatmul.mubr.bf16.vlgmr.msra.gmra.mrb[0].mxu1 %v1072_v44  ;;  %v1047_v48 = vadd.f32 %v5088_v22, %v1009_v52  ;;  %v973_v5 = vmul.f32 %v4260_v59, %v4931_v51 }
 0x1e1   : > { %v845_v23 = vpop.xlane.xlu0 %844  ;;  %4271 = vrsqrt.f32 %v915_v11  ;;  %v885_v50 = vmul.f32 0.0078125, %v843_v40  ;;  %1522 = vmatprep.mubr.bf16.mxu1 %v7104_v17  ;;  %v974_v47 = vmul.f32 %v4262_v24, %v4938_v62  ;;  %1447 = vmatpush1.bf16.msra.mxu0 %v4993_v1  ;;  %v1048_v32 = vadd.f32 %v5088_v22, %v1010_v60 }
 0x1e2   : > { %v886_v25 = vmul.f32 0.0078125, %v845_v23  ;;  %4273 = vrsqrt.f32 %v916_v2  ;;  %v1073_v57 = vpack.c.bf16 %v1047_v48, %v1046_v4  ;;  %v1011_v19 = vmul.f32 %v5081_v27, %v973_v5  ;;  %1448 = vmatprep.subr.bf16.mxu0 %v5007_v14 }
 0x1e3   : > { %v4264_v34 = vpop.eup %4263  ;;  %v917_v33 = vadd.f32 1e-05, %v885_v50  ;;  %v1012_v30 = vmul.f32 %v5081_v27, %v974_v47 }
 0x1e4   : > { %v918_v51 = vadd.f32 1e-05, %v886_v25  ;;  %v4266_v56 = vpop.eup %4265  ;;  %v847_v8 = vpop.xlane.xlu1 %846  ;;  %4068 = vmatmul.mubr.bf16.gmra.mrb[8].mxu0 %v1073_v57  ;;  %v1049_v62 = vadd.f32 %v5088_v22, %v1011_v19  ;;  %v975_v1 = vmul.f32 %v4264_v34, %v4941_v63 }
 0x1e5   : > { %v849_v20 = vpop.xlane.xlu0 %848  ;;  %4275 = vrsqrt.f32 %v917_v33  ;;  %v887_v16 = vmul.f32 0.0078125, %v847_v8  ;;  %1449 = vmatpush1.bf16.msra.mxu0 %v5009_v29  ;;  %v976_v38 = vmul.f32 %v4266_v56, %v4954_v7  ;;  %v1050_v26 = vadd.f32 %v5088_v22, %v1012_v30 }
 0x1e6   : > { %v888_v36 = vmul.f32 0.0078125, %v849_v20  ;;  %4277 = vrsqrt.f32 %v918_v51  ;;  %v1074_v14 = vpack.c.bf16 %v1049_v62, %v1048_v32  ;;  %v1013_v61 = vmul.f32 %v5081_v27, %v975_v1  ;;  %1450 = vmatprep.subr.bf16.mxu0 %v5023_v45 }
 0x1e7   : > { %v4268_v28 = vpop.eup %4267  ;;  %v919_v46 = vadd.f32 1e-05, %v887_v16  ;;  %v1014_v59 = vmul.f32 %v5081_v27, %v976_v38 }
 0x1e8   : > { %v920_v3 = vadd.f32 1e-05, %v888_v36  ;;  %v4270_v44 = vpop.eup %4269  ;;  %v851_v63 = vpop.xlane.xlu1 %850  ;;  %4071 = vmatprep.mubr.bf16.mxu0 %v1074_v14  ;;  %1523 = vmatmul.mubr.bf16.gmra.mrb[4].mxu1 %v1073_v57  ;;  %v1051_v29 = vadd.f32 %v5088_v22, %v1013_v61  ;;  %v977_v54 = vmul.f32 %v4268_v28, %v4957_v13 }
 0x1e9   : > { %v853_v52 = vpop.xlane.xlu0 %852  ;;  %4279 = vrsqrt.f32 %v919_v46  ;;  %v889_v7 = vmul.f32 0.0078125, %v851_v63  ;;  %1532 = vmatprep.mubr.bf16.mxu1 %v7104_v17  ;;  %v978_v45 = vmul.f32 %v4270_v44, %v4970_v18  ;;  %1451 = vmatpush1.bf16.msra.mxu0 %v5025_v49  ;;  %v1052_v18 = vadd.f32 %v5088_v22, %v1014_v59 }
 0x1ea   : > { %v890_v11 = vmul.f32 0.0078125, %v853_v52  ;;  %4281 = vrsqrt.f32 %v920_v3  ;;  %v5164_v2 = vpack.c.bf16 %v1051_v29, %v1050_v26  ;;  %v1015_v4 = vmul.f32 %v5081_v27, %v977_v54  ;;  %1452 = vmatprep.subr.bf16.mxu0 %v5040_v0 }
 0x1eb   : > { %v4272_v24 = vpop.eup %4271  ;;  %v921_v13 = vadd.f32 1e-05, %v889_v7  ;;  %v1016_v23 = vmul.f32 %v5081_v27, %v978_v45 }
 0x1ec   : > { %v922_v40 = vadd.f32 1e-05, %v890_v11  ;;  %v4274_v48 = vpop.eup %4273  ;;  %v855_v5 = vpop.xlane.xlu1 %854  ;;  %4072 = vmatmul.mubr.bf16.gmra.mrb[12].mxu0 %v5164_v2  ;;  %v1053_v49 = vadd.f32 %v5088_v22, %v1015_v4  ;;  %v979_v50 = vmul.f32 %v4272_v24, %v4973_v41 }
 0x1ed   : > { %v857_v60 = vpop.xlane.xlu0 %856  ;;  %4283 = vrsqrt.f32 %v921_v13  ;;  %v891_v25 = vmul.f32 0.0078125, %v855_v5  ;;  %1453 = vmatpush1.bf16.msra.mxu0 %v5045_v6  ;;  %v980_v19 = vmul.f32 %v4274_v48, %v4986_v21  ;;  %v1054_v30 = vadd.f32 %v5088_v22, %v1016_v23  ;;  %v7105_v48 = vld [vmem:[#allocation12_spill] sm:$0xff] }
 0x1ee   : > { %v892_v47 = vmul.f32 0.0078125, %v857_v60  ;;  %4285 = vrsqrt.f32 %v922_v40  ;;  %v5174_v0 = vpack.c.bf16 %v1053_v49, %v1052_v18  ;;  %v1017_v57 = vmul.f32 %v5081_v27, %v979_v50  ;;  %1454 = vmatprep.subr.bf16.mxu0 %v5056_v37 }
 0x1ef   : > { %v4276_v34 = vpop.eup %4275  ;;  %v923_v33 = vadd.f32 1e-05, %v891_v25  ;;  %v1018_v32 = vmul.f32 %v5081_v27, %v980_v19 }
 0x1f0   : > { %v924_v51 = vadd.f32 1e-05, %v892_v47  ;;  %v4278_v41 = vpop.eup %4277  ;;  %v859_v56 = vpop.xlane.xlu1 %858  ;;  %4075 = vmatprep.mubr.bf16.mxu0 %v5174_v0  ;;  %1533 = vmatmul.mubr.bf16.gmra.mrb[8].mxu1 %v1074_v14  ;;  %v1055_v8 = vadd.f32 %v5088_v22, %v1017_v57  ;;  %v981_v20 = vmul.f32 %v4276_v34, %v4989_v55  ;;  %v7106_v47 = vld [vmem:[#allocation13_spill] sm:$0xff] }
 0x1f1   : > { %v861_v6 = vpop.xlane.xlu0 %860  ;;  %4287 = vrsqrt.f32 %v923_v33  ;;  %v893_v21 = vmul.f32 0.0078125, %v859_v56  ;;  %1542 = vmatprep.mubr.bf16.mxu1 %v7104_v17  ;;  %v982_v62 = vmul.f32 %v4278_v41, %v5002_v31  ;;  %1455 = vmatpush1.bf16.msra.mxu0 %v5060_v12  ;;  %v1056_v46 = vadd.f32 %v5088_v22, %v1018_v32 }
 0x1f2   : > { %v894_v37 = vmul.f32 0.0078125, %v861_v6  ;;  %4289 = vrsqrt.f32 %v924_v51  ;;  %v1077_v1 = vpack.c.bf16 %v1055_v8, %v1054_v30  ;;  %v1019_v16 = vmul.f32 %v5081_v27, %v981_v20 }
 0x1f3   : > { %v4280_v36 = vpop.eup %4279  ;;  %v925_v14 = vadd.f32 1e-05, %v893_v21  ;;  %v1020_v55 = vmul.f32 %v5081_v27, %v982_v62 }
 0x1f4   : > { %v926_v61 = vadd.f32 1e-05, %v894_v37  ;;  %v4282_v38 = vpop.eup %4281  ;;  %v863_v28 = vpop.xlane.xlu1 %862  ;;  %4076 = vmatmul.mubr.bf16.gmra.mrb[16].mxu0 %v1077_v1  ;;  %v1057_v3 = vadd.f32 %v5088_v22, %v1019_v16  ;;  %v983_v31 = vmul.f32 %v4280_v36, %v5005_v10 }
 0x1f5   : > { %4291 = vrsqrt.f32 %v925_v14  ;;  %v895_v12 = vmul.f32 0.0078125, %v863_v28  ;;  %v984_v26 = vmul.f32 %v4282_v38, %v5018_v43  ;;  %v1058_v54 = vadd.f32 %v5088_v22, %v1020_v55 }
 0x1f6   : > { %4293 = vrsqrt.f32 %v926_v61  ;;  %v1078_v44 = vpack.c.bf16 %v1057_v3, %v1056_v46  ;;  %v1021_v63 = vmul.f32 %v5081_v27, %v983_v31  ;;  %v1348_v3 = vld [vmem:[%s7109_s30] sm:$0x3] }
 0x1f7   : > { %v4284_v52 = vpop.eup %4283  ;;  %v927_v29 = vadd.f32 1e-05, %v895_v12  ;;  %v1022_v11 = vmul.f32 %v5081_v27, %v984_v26 }
 0x1f8   : > { %v4286_v59 = vpop.eup %4285  ;;  %4079 = vmatprep.mubr.bf16.mxu0 %v1078_v44  ;;  %1543 = vmatmul.mubr.bf16.gmra.mrb[12].mxu1 %v5164_v2  ;;  %v1059_v7 = vadd.f32 %v5088_v22, %v1021_v63  ;;  %v985_v10 = vmul.f32 %v4284_v52, %v5021_v39 }
 0x1f9   : > { %4295 = vrsqrt.f32 %v927_v29  ;;  %1552 = vmatprep.mubr.bf16.mxu1 %v7104_v17  ;;  %v986_v43 = vmul.f32 %v4286_v59, %v5035_v53  ;;  %v1060_v2 = vadd.f32 %v5088_v22, %v1022_v11 }
 0x1fa   : > { %v1079_v45 = vpack.c.bf16 %v1059_v7, %v1058_v54  ;;  %v1023_v4 = vmul.f32 %v5081_v27, %v985_v10 }
 0x1fb   : > { %v4288_v24 = vpop.eup %4287  ;;  %v1024_v13 = vmul.f32 %v5081_v27, %v986_v43 }
 0x1fc   : > { %v4290_v40 = vpop.eup %4289  ;;  %4080 = vmatmul.mubr.bf16.gmra.mrb[20].mxu0 %v1079_v45  ;;  %v1061_v23 = vadd.f32 %v5088_v22, %v1023_v4  ;;  %v987_v39 = vmul.f32 %v4288_v24, %v5038_v58  ;;  %v7107_v58 = vld [vmem:[#allocation14_spill] sm:$0xff] }
 0x1fd   : > { %v988_v5 = vmul.f32 %v4290_v40, %v7105_v48  ;;  %v1062_v49 = vadd.f32 %v5088_v22, %v1024_v13 }
 0x1fe   : > { %v1080_v60 = vpack.c.bf16 %v1061_v23, %v1060_v2  ;;  %v1025_v18 = vmul.f32 %v5081_v27, %v987_v39 }
 0x1ff   : > { %v4292_v53 = vpop.eup %4291  ;;  %v1026_v19 = vmul.f32 %v5081_v27, %v988_v5 }
 0x200   : > { %v4294_v50 = vpop.eup %4293  ;;  %4083 = vmatprep.mubr.bf16.mxu0 %v1080_v60  ;;  %1553 = vmatmul.mubr.bf16.gmra.mrb[16].mxu1 %v5174_v0  ;;  %v1063_v25 = vadd.f32 %v5088_v22, %v1025_v18  ;;  %v989_v57 = vmul.f32 %v4292_v53, %v7106_v47  ;;  %v7108_v0 = vld [vmem:[#allocation15_spill] sm:$0xff] }
 0x201   : > { %1562 = vmatprep.mubr.bf16.mxu1 %v7104_v17  ;;  %v990_v34 = vmul.f32 %v4294_v50, %v7107_v58  ;;  %v1064_v41 = vadd.f32 %v5088_v22, %v1026_v19 }
 0x202   : > { %v1081_v33 = vpack.c.bf16 %v1063_v25, %v1062_v49  ;;  %v1027_v51 = vmul.f32 %v5081_v27, %v989_v57 }
 0x203   : > { %v4296_v30 = vpop.eup %4295  ;;  %v1028_v8 = vmul.f32 %v5081_v27, %v990_v34 }
 0x204   : > { %4084 = vmatmul.mubr.bf16.gmra.mrb[24].mxu0 %v1081_v33  ;;  %v1065_v56 = vadd.f32 %v5088_v22, %v1027_v51  ;;  %v991_v6 = vmul.f32 %v4296_v30, %v7108_v0 }
 0x205   : > { %v1066_v21 = vadd.f32 %v5088_v22, %v1028_v8 }
 0x206   : > { %v1082_v20 = vpack.c.bf16 %v1065_v56, %v1064_v41  ;;  %v1029_v32 = vmul.f32 %v5081_v27, %v991_v6  ;;  %v1350_v27 = vlaneseq }
 0x208   : > { %4087 = vmatprep.mubr.bf16.mxu0 %v1082_v20  ;;  %1563 = vmatmul.mubr.bf16.gmra.mrb[20].mxu1 %v1077_v1  ;;  %v1067_v37 = vadd.f32 %v5088_v22, %v1029_v32  ;;  %v5242_v22 = vld [vmem:[%s7010_s5] ss:$0 sm:$0xff] }
 0x209   : > { %1572 = vmatprep.mubr.bf16.mxu1 %v7104_v17 }
 0x20a   : > { %v1083_v62 = vpack.c.bf16 %v1067_v37, %v1066_v21 }
 0x20c   : > { %4088 = vmatmul.mubr.bf16.gmra.mrb[28].mxu0 %v1083_v62 }
 0x20d   : > { %1472 = vmatprep.mubr.bf16.mxu0 %v7104_v17 }
 0x210   : > { %1573 = vmatmul.mubr.bf16.gmra.mrb[24].mxu1 %v1078_v44 }
 0x211   : > { %1582 = vmatprep.mubr.bf16.mxu1 %v7104_v17 }
 0x214   : > { %1473 = vmatmul.mubr.bf16.vlgmr.msra.gmra.mrb[32].mxu0 %v5096_v42 }
 0x215   : > { %1482 = vmatprep.mubr.bf16.mxu0 %v7104_v17 }
 0x218   : > { %1583 = vmatmul.mubr.bf16.gmra.mrb[28].mxu1 %v1079_v45 }
 0x219   : > { %1592 = vmatprep.mubr.bf16.mxu1 %v7104_v17 }
 0x21c   : > { %1483 = vmatmul.mubr.bf16.gmra.mrb[36].mxu0 %v5106_v9 }
 0x21d   : > { %1492 = vmatprep.mubr.bf16.mxu0 %v7104_v17 }
 0x220   : > { %1593 = vmatmul.mubr.bf16.gmra.mrb[32].mxu1 %v1080_v60 }
 0x221   : > { %1602 = vmatprep.mubr.bf16.mxu1 %v7104_v17 }
 0x224   : > { %1493 = vmatmul.mubr.bf16.gmra.mrb[40].mxu0 %v5115_v35 }
 0x225   : > { %1502 = vmatprep.mubr.bf16.mxu0 %v7104_v17 }
 0x228   : > { %1603 = vmatmul.mubr.bf16.gmra.mrb[36].mxu1 %v1081_v33 }
 0x229   : > { %1612 = vmatprep.mubr.bf16.mxu1 %v7104_v17 }
 0x22c   : > { %1503 = vmatmul.mubr.bf16.gmra.mrb[44].mxu0 %v5127_v15  ;;  %v1351_v15 = vshrl.u32 %v1350_v27, 7 }
 0x22e   : > { %v1352_v28 = vsub.s32 0, %v1351_v15  ;;  %v1356_v31 = vsub.s32 1, %v1351_v15 }
 0x230   : > { %1613 = vmatmul.mubr.bf16.gmra.mrb[40].mxu1 %v1082_v20  ;;  %v5282_v63 = vrot.slane %v1348_v3, %v1352_v28  ;;  %v5285_v54 = vrot.slane %v1348_v3, %v1356_v31 }
 0x231   : > { %1622 = vmatprep.mubr.bf16.mxu1 %v7104_v17 }
 0x238   : > { %1623 = vmatmul.mubr.bf16.gmra.mrb[44].mxu1 %v1083_v62 }
 0x2a7   : > { %v4061_v42 = vpop.f32.mrb[0].mxu0 }
 0x2a8   : > { %v1198_v9 = vadd.f32 %v4061_v42, %v5242_v22  ;;  %v1189_v35 = vpop.f32.mrb[1].mxu0 }
 0x2a9   : > { %v1190_v17 = vadd.f32 %v5242_v22, %v1189_v35  ;;  %v4062_v1 = vpop.f32.mrb[2].mxu0 }
 0x2aa   : > { %v5254_v16 = vpack.c.bf16 %v1198_v9, %v1198_v9  ;;  %v1201_v36 = vadd.f32 %v4062_v1, %v5242_v22  ;;  %v1192_v14 = vpop.f32.mrb[3].mxu0 }
 0x2ab   : > { %v5257_v61 = vpack.c.bf16 %v1190_v17, %v1190_v17  ;;  %v1193_v55 = vadd.f32 %v5242_v22, %v1192_v14 }
 0x2ac   : > { %1780 = vst.msk [vmem:[%s5251_s9 + $0x8] sm:$0xf] %vm1777_vm0, %v5254_v16  ;;  %v5263_v38 = vpack.c.bf16 %v1201_v36, %v1201_v36  ;;  %2102 = vrot.lane.b32.xlu1 %v5254_v16, %s4480_s16 }
 0x2ad   : > { %1778 = vst.msk [vmem:[%s5251_s9] sm:$0xf] %vm1777_vm0, %v5257_v61  ;;  %v5270_v46 = vpack.c.bf16 %v1193_v55, %v1193_v55 }
 0x2ae   : > { %1781 = vst.msk [vmem:[%s5251_s9 + $0xc] sm:$0xf] %vm1777_vm0, %v5263_v38 }
 0x2af   : > { %1779 = vst.msk [vmem:[%s5251_s9 + $0x4] sm:$0xf] %vm1777_vm0, %v5270_v46  ;;  %v4065_v12 = vpop.f32.mrb[4].mxu0 }
 0x2b0   : > { %v1214_v26 = vadd.f32 %v4065_v12, %v5242_v22  ;;  %v1205_v44 = vpop.f32.mrb[5].mxu0 }
 0x2b1   : > { %v1206_v52 = vadd.f32 %v5242_v22, %v1205_v44  ;;  %v4066_v29 = vpop.f32.mrb[6].mxu0 }
 0x2b2   : > { %v5287_v59 = vpack.c.bf16 %v1214_v26, %v1214_v26  ;;  %v1217_v7 = vadd.f32 %v4066_v29, %v5242_v22  ;;  %v1208_v10 = vpop.f32.mrb[7].mxu0 }
 0x2b3   : > { %v5290_v11 = vpack.c.bf16 %v1206_v52, %v1206_v52  ;;  %v1209_v43 = vadd.f32 %v5242_v22, %v1208_v10  ;;  %v1514_v45 = vpop.f32.mrb[0].mxu1 }
 0x2b4   : > { %1784 = vst.msk [vmem:[%s5251_s9 + $0x18] sm:$0xf] %vm1777_vm0, %v5287_v59  ;;  %v5296_v4 = vpack.c.bf16 %v1217_v7, %v1217_v7  ;;  %v1515_v24 = vadd.f32 %v1514_v45, %v5282_v63  ;;  %v1516_v13 = vpop.f32.mrb[1].mxu1 }
 0x2b5   : > { %1782 = vst.msk [vmem:[%s5251_s9 + $0x10] sm:$0xf] %vm1777_vm0, %v5290_v11  ;;  %v5302_v40 = vpack.c.bf16 %v1209_v43, %v1209_v43  ;;  %v1517_v2 = vadd.f32 %v1516_v13, %v5285_v54  ;;  %v1518_v23 = vpop.f32.mrb[2].mxu1 }
 0x2b6   : > { %1785 = vst.msk [vmem:[%s5251_s9 + $0x1c] sm:$0xf] %vm1777_vm0, %v5296_v4  ;;  %v3963_v39 = vpack.c.bf16 %v1515_v24, %v1515_v24  ;;  %v1519_v48 = vadd.f32 %v1518_v23, %v5282_v63  ;;  %v1520_v5 = vpop.f32.mrb[3].mxu1 }
 0x2b7   : > { %1783 = vst.msk [vmem:[%s5251_s9 + $0x14] sm:$0xf] %vm1777_vm0, %v5302_v40  ;;  %v5324_v60 = vpack.c.bf16 %v1517_v2, %v1517_v2  ;;  %v1521_v18 = vadd.f32 %v1520_v5, %v5285_v54  ;;  %v4069_v53 = vpop.f32.mrb[8].mxu0 }
 0x2b8   : > { %1930 = vst.msk [vmem:[%s5308_s26 + $0x20] sm:$0xf] %vm1777_vm0, %v3963_v39  ;;  %v3964_v49 = vpack.c.bf16 %v1519_v48, %v1519_v48  ;;  %v1230_v50 = vadd.f32 %v4069_v53, %v5242_v22  ;;  %2243 = vrot.lane.b32.xlu0 %v3963_v39, %s4480_s16  ;;  %v1221_v25 = vpop.f32.mrb[9].mxu0 }
 0x2b9   : > { %7112 = vst [vmem:[#allocation12_spill] sm:$0xff] %v5324_v60  ;;  %2074 = vst.msk [vmem:[%s5318_s28 + $0x20] sm:$0xf] %vm1777_vm0, %v5324_v60  ;;  %v5334_v47 = vpack.c.bf16 %v1521_v18, %v1521_v18  ;;  %v1222_v57 = vadd.f32 %v5242_v22, %v1221_v25  ;;  %v4070_v19 = vpop.f32.mrb[10].mxu0 }
 0x2ba   : > { %1931 = vst.msk [vmem:[%s5308_s26 + $0x24] sm:$0xf] %vm1777_vm0, %v3964_v49  ;;  %v5339_v58 = vpack.c.bf16 %v1230_v50, %v1230_v50  ;;  %v1233_v34 = vadd.f32 %v4070_v19, %v5242_v22  ;;  %2245 = vrot.lane.b32.xlu1 %v3964_v49, %s4480_s16  ;;  %v1224_v33 = vpop.f32.mrb[11].mxu0 }
 0x2bb   : > { %7113 = vst [vmem:[#allocation13_spill] sm:$0xff] %v5334_v47  ;;  %2075 = vst.msk [vmem:[%s5318_s28 + $0x24] sm:$0xf] %vm1777_vm0, %v5334_v47  ;;  %v5346_v51 = vpack.c.bf16 %v1222_v57, %v1222_v57  ;;  %v1225_v30 = vadd.f32 %v5242_v22, %v1224_v33  ;;  %v1524_v41 = vpop.f32.mrb[4].mxu1 }
 0x2bc   : > { %1788 = vst.msk [vmem:[%s5251_s9 + $0x28] sm:$0xf] %vm1777_vm0, %v5339_v58  ;;  %v5352_v56 = vpack.c.bf16 %v1233_v34, %v1233_v34  ;;  %v1525_v0 = vadd.f32 %v1524_v41, %v5282_v63  ;;  %2630 = vrot.lane.b32.xlu0 %v3963_v39, %s4481_s10  ;;  %v1526_v6 = vpop.f32.mrb[5].mxu1 }
 0x2bd   : > { %1786 = vst.msk [vmem:[%s5251_s9 + $0x20] sm:$0xf] %vm1777_vm0, %v5346_v51  ;;  %v5359_v8 = vpack.c.bf16 %v1225_v30, %v1225_v30  ;;  %v1527_v20 = vadd.f32 %v1526_v6, %v5285_v54  ;;  %v1528_v32 = vpop.f32.mrb[6].mxu1 }
 0x2be   : > { %1789 = vst.msk [vmem:[%s5251_s9 + $0x2c] sm:$0xf] %vm1777_vm0, %v5352_v56  ;;  %v5365_v21 = vpack.c.bf16 %v1525_v0, %v1525_v0  ;;  %v1529_v37 = vadd.f32 %v1528_v32, %v5282_v63  ;;  %2632 = vrot.lane.b32.xlu1 %v3964_v49, %s4481_s10  ;;  %v1530_v62 = vpop.f32.mrb[7].mxu1 }
 0x2bf   : > { %1787 = vst.msk [vmem:[%s5251_s9 + $0x24] sm:$0xf] %vm1777_vm0, %v5359_v8  ;;  %v5372_v27 = vpack.c.bf16 %v1527_v20, %v1527_v20  ;;  %v1531_v42 = vadd.f32 %v1530_v62, %v5285_v54  ;;  %v4073_v9 = vpop.f32.mrb[12].mxu0 }
 0x2c0   : > { %1932 = vst.msk [vmem:[%s5308_s26 + $0x28] sm:$0xf] %vm1777_vm0, %v5365_v21  ;;  %v5378_v35 = vpack.c.bf16 %v1529_v37, %v1529_v37  ;;  %v1246_v15 = vadd.f32 %v4073_v9, %v5242_v22  ;;  %3017 = vrot.lane.b32.xlu0 %v3963_v39, %s4482_s12  ;;  %v1237_v17 = vpop.f32.mrb[13].mxu0 }
 0x2c1   : > { %7114 = vst [vmem:[#allocation14_spill] sm:$0xff] %v5372_v27  ;;  %2076 = vst.msk [vmem:[%s5318_s28 + $0x28] sm:$0xf] %vm1777_vm0, %v5372_v27  ;;  %v5385_v1 = vpack.c.bf16 %v1531_v42, %v1531_v42  ;;  %v1238_v36 = vadd.f32 %v5242_v22, %v1237_v17  ;;  %v4074_v14 = vpop.f32.mrb[14].mxu0 }
 0x2c2   : > { %1933 = vst.msk [vmem:[%s5308_s26 + $0x2c] sm:$0xf] %vm1777_vm0, %v5378_v35  ;;  %v5391_v55 = vpack.c.bf16 %v1246_v15, %v1246_v15  ;;  %v1249_v28 = vadd.f32 %v4074_v14, %v5242_v22  ;;  %3019 = vrot.lane.b32.xlu1 %v3964_v49, %s4482_s12  ;;  %v1240_v3 = vpop.f32.mrb[15].mxu0 }
 0x2c3   : > { %7115 = vst [vmem:[#allocation15_spill] sm:$0xff] %v5385_v1  ;;  %2077 = vst.msk [vmem:[%s5318_s28 + $0x2c] sm:$0xf] %vm1777_vm0, %v5385_v1  ;;  %v5398_v31 = vpack.c.bf16 %v1238_v36, %v1238_v36  ;;  %v1241_v12 = vadd.f32 %v5242_v22, %v1240_v3  ;;  %v1534_v26 = vpop.f32.mrb[8].mxu1 }
 0x2c4   : > { %1792 = vst.msk [vmem:[%s5251_s9 + $0x38] sm:$0xf] %vm1777_vm0, %v5391_v55  ;;  %v5404_v44 = vpack.c.bf16 %v1249_v28, %v1249_v28  ;;  %v1535_v52 = vadd.f32 %v1534_v26, %v5282_v63  ;;  %2372 = vrot.lane.b32.xlu0 %v5324_v60, %s4480_s16  ;;  %v1536_v29 = vpop.f32.mrb[9].mxu1 }
 0x2c5   : > { %1790 = vst.msk [vmem:[%s5251_s9 + $0x30] sm:$0xf] %vm1777_vm0, %v5398_v31  ;;  %v5412_v7 = vpack.c.bf16 %v1241_v12, %v1241_v12  ;;  %v1537_v10 = vadd.f32 %v1536_v29, %v5285_v54  ;;  %v1538_v43 = vpop.f32.mrb[10].mxu1 }
 0x2c6   : > { %1793 = vst.msk [vmem:[%s5251_s9 + $0x3c] sm:$0xf] %vm1777_vm0, %v5404_v44  ;;  %v5418_v45 = vpack.c.bf16 %v1535_v52, %v1535_v52  ;;  %v1539_v24 = vadd.f32 %v1538_v43, %v5282_v63  ;;  %2104 = vrot.lane.b32.xlu1 %v5263_v38, %s4480_s16  ;;  %v1540_v13 = vpop.f32.mrb[11].mxu1 }
 0x2c7   : > { %1791 = vst.msk [vmem:[%s5251_s9 + $0x34] sm:$0xf] %vm1777_vm0, %v5412_v7  ;;  %v5426_v2 = vpack.c.bf16 %v1537_v10, %v1537_v10  ;;  %v1541_v23 = vadd.f32 %v1540_v13, %v5285_v54  ;;  %v4077_v39 = vpop.f32.mrb[16].mxu0 }
 0x2c8   : > { %1934 = vst.msk [vmem:[%s5308_s26 + $0x30] sm:$0xf] %vm1777_vm0, %v5418_v45  ;;  %v5432_v48 = vpack.c.bf16 %v1539_v24, %v1539_v24  ;;  %v1262_v5 = vadd.f32 %v4077_v39, %v5242_v22  ;;  %2489 = vrot.lane.b32.xlu0 %v5254_v16, %s4481_s10  ;;  %v1253_v18 = vpop.f32.mrb[17].mxu0 }
 0x2c9   : > { %2078 = vst.msk [vmem:[%s5318_s28 + $0x30] sm:$0xf] %vm1777_vm0, %v5426_v2  ;;  %v5440_v53 = vpack.c.bf16 %v1541_v23, %v1541_v23  ;;  %v1254_v49 = vadd.f32 %v5242_v22, %v1253_v18  ;;  %v4078_v50 = vpop.f32.mrb[18].mxu0 }
 0x2ca   : > { %1935 = vst.msk [vmem:[%s5308_s26 + $0x34] sm:$0xf] %vm1777_vm0, %v5432_v48  ;;  %v5446_v25 = vpack.c.bf16 %v1262_v5, %v1262_v5  ;;  %v1265_v57 = vadd.f32 %v4078_v50, %v5242_v22  ;;  %2374 = vrot.lane.b32.xlu1 %v5334_v47, %s4480_s16  ;;  %v1256_v19 = vpop.f32.mrb[19].mxu0 }
 0x2cb   : > { %2079 = vst.msk [vmem:[%s5318_s28 + $0x34] sm:$0xf] %vm1777_vm0, %v5440_v53  ;;  %v5454_v34 = vpack.c.bf16 %v1254_v49, %v1254_v49  ;;  %v1257_v33 = vadd.f32 %v5242_v22, %v1256_v19  ;;  %v1544_v30 = vpop.f32.mrb[12].mxu1 }
 0x2cc   : > { %1796 = vst.msk [vmem:[%s5251_s9 + $0x48] sm:$0xf] %vm1777_vm0, %v5446_v25  ;;  %v5460_v41 = vpack.c.bf16 %v1265_v57, %v1265_v57  ;;  %v1545_v0 = vadd.f32 %v1544_v30, %v5282_v63  ;;  %2759 = vrot.lane.b32.xlu0 %v5324_v60, %s4481_s10  ;;  %v1546_v6 = vpop.f32.mrb[13].mxu1 }
 0x2cd   : > { %1794 = vst.msk [vmem:[%s5251_s9 + $0x40] sm:$0xf] %vm1777_vm0, %v5454_v34  ;;  %v5468_v20 = vpack.c.bf16 %v1257_v33, %v1257_v33  ;;  %v1547_v32 = vadd.f32 %v1546_v6, %v5285_v54  ;;  %v1548_v37 = vpop.f32.mrb[14].mxu1 }
 0x2ce   : > { %1797 = vst.msk [vmem:[%s5251_s9 + $0x4c] sm:$0xf] %vm1777_vm0, %v5460_v41  ;;  %v5474_v62 = vpack.c.bf16 %v1545_v0, %v1545_v0  ;;  %v1549_v42 = vadd.f32 %v1548_v37, %v5282_v63  ;;  %2491 = vrot.lane.b32.xlu1 %v5263_v38, %s4481_s10  ;;  %v1550_v9 = vpop.f32.mrb[15].mxu1 }
 0x2cf   : > { %1795 = vst.msk [vmem:[%s5251_s9 + $0x44] sm:$0xf] %vm1777_vm0, %v5468_v20  ;;  %v5482_v15 = vpack.c.bf16 %v1547_v32, %v1547_v32  ;;  %v1551_v17 = vadd.f32 %v1550_v9, %v5285_v54  ;;  %v4081_v36 = vpop.f32.mrb[20].mxu0 }
 0x2d0   : > { %1936 = vst.msk [vmem:[%s5308_s26 + $0x38] sm:$0xf] %vm1777_vm0, %v5474_v62  ;;  %v5488_v14 = vpack.c.bf16 %v1549_v42, %v1549_v42  ;;  %v1278_v28 = vadd.f32 %v4081_v36, %v5242_v22  ;;  %2876 = vrot.lane.b32.xlu0 %v5254_v16, %s4482_s12  ;;  %v1269_v3 = vpop.f32.mrb[21].mxu0 }
 0x2d1   : > { %2080 = vst.msk [vmem:[%s5318_s28 + $0x38] sm:$0xf] %vm1777_vm0, %v5482_v15  ;;  %v5496_v12 = vpack.c.bf16 %v1551_v17, %v1551_v17  ;;  %v1270_v26 = vadd.f32 %v5242_v22, %v1269_v3  ;;  %v4082_v52 = vpop.f32.mrb[22].mxu0 }
 0x2d2   : > { %1937 = vst.msk [vmem:[%s5308_s26 + $0x3c] sm:$0xf] %vm1777_vm0, %v5488_v14  ;;  %v5502_v29 = vpack.c.bf16 %v1278_v28, %v1278_v28  ;;  %v1281_v10 = vadd.f32 %v4082_v52, %v5242_v22  ;;  %2761 = vrot.lane.b32.xlu1 %v5334_v47, %s4481_s10  ;;  %v1272_v16 = vpop.f32.mrb[23].mxu0 }
 0x2d3   : > { %2081 = vst.msk [vmem:[%s5318_s28 + $0x3c] sm:$0xf] %vm1777_vm0, %v5496_v12  ;;  %v5510_v43 = vpack.c.bf16 %v1270_v26, %v1270_v26  ;;  %v1273_v24 = vadd.f32 %v5242_v22, %v1272_v16  ;;  %v1554_v13 = vpop.f32.mrb[16].mxu1 }
 0x2d4   : > { %1800 = vst.msk [vmem:[%s5251_s9 + $0x58] sm:$0xf] %vm1777_vm0, %v5502_v29  ;;  %v5516_v23 = vpack.c.bf16 %v1281_v10, %v1281_v10  ;;  %v1555_v39 = vadd.f32 %v1554_v13, %v5282_v63  ;;  %2098 = vrot.lane.b32.xlu0 %v5257_v61, %s4480_s16  ;;  %v1556_v5 = vpop.f32.mrb[17].mxu1 }
 0x2d5   : > { %1798 = vst.msk [vmem:[%s5251_s9 + $0x50] sm:$0xf] %vm1777_vm0, %v5510_v43  ;;  %v5524_v18 = vpack.c.bf16 %v1273_v24, %v1273_v24  ;;  %v1557_v49 = vadd.f32 %v1556_v5, %v5285_v54  ;;  %v1558_v50 = vpop.f32.mrb[18].mxu1 }
 0x2d6   : > { %1801 = vst.msk [vmem:[%s5251_s9 + $0x5c] sm:$0xf] %vm1777_vm0, %v5516_v23  ;;  %v5530_v57 = vpack.c.bf16 %v1555_v39, %v1555_v39  ;;  %v1559_v19 = vadd.f32 %v1558_v50, %v5282_v63  ;;  %2878 = vrot.lane.b32.xlu1 %v5263_v38, %s4482_s12  ;;  %v1560_v33 = vpop.f32.mrb[19].mxu1 }
 0x2d7   : > { %1799 = vst.msk [vmem:[%s5251_s9 + $0x54] sm:$0xf] %vm1777_vm0, %v5524_v18  ;;  %v5538_v30 = vpack.c.bf16 %v1557_v49, %v1557_v49  ;;  %v1561_v0 = vadd.f32 %v1560_v33, %v5285_v54  ;;  %v4085_v6 = vpop.f32.mrb[24].mxu0 }
 0x2d8   : > { %1938 = vst.msk [vmem:[%s5308_s26 + $0x40] sm:$0xf] %vm1777_vm0, %v5530_v57  ;;  %v5544_v32 = vpack.c.bf16 %v1559_v19, %v1559_v19  ;;  %v1294_v37 = vadd.f32 %v4085_v6, %v5242_v22  ;;  %2485 = vrot.lane.b32.xlu0 %v5257_v61, %s4481_s10  ;;  %v1285_v38 = vpop.f32.mrb[25].mxu0 }
 0x2d9   : > { %2082 = vst.msk [vmem:[%s5318_s28 + $0x40] sm:$0xf] %vm1777_vm0, %v5538_v30  ;;  %v5552_v42 = vpack.c.bf16 %v1561_v0, %v1561_v0  ;;  %v1286_v9 = vadd.f32 %v5242_v22, %v1285_v38  ;;  %v4086_v17 = vpop.f32.mrb[26].mxu0 }
 0x2da   : > { %1939 = vst.msk [vmem:[%s5308_s26 + $0x44] sm:$0xf] %vm1777_vm0, %v5544_v32  ;;  %v5558_v36 = vpack.c.bf16 %v1294_v37, %v1294_v37  ;;  %v1297_v28 = vadd.f32 %v4086_v17, %v5242_v22  ;;  %2100 = vrot.lane.b32.xlu1 %v5270_v46, %s4480_s16  ;;  %v1288_v3 = vpop.f32.mrb[27].mxu0 }
 0x2db   : > { %2083 = vst.msk [vmem:[%s5318_s28 + $0x44] sm:$0xf] %vm1777_vm0, %v5552_v42  ;;  %v5566_v26 = vpack.c.bf16 %v1286_v9, %v1286_v9  ;;  %v1289_v52 = vadd.f32 %v5242_v22, %v1288_v3  ;;  %v1564_v10 = vpop.f32.mrb[20].mxu1 }
 0x2dc   : > { %1804 = vst.msk [vmem:[%s5251_s9 + $0x68] sm:$0xf] %vm1777_vm0, %v5558_v36  ;;  %v5572_v16 = vpack.c.bf16 %v1297_v28, %v1297_v28  ;;  %v1565_v24 = vadd.f32 %v1564_v10, %v5282_v63  ;;  %2872 = vrot.lane.b32.xlu0 %v5257_v61, %s4482_s12  ;;  %v1566_v13 = vpop.f32.mrb[21].mxu1 }
 0x2dd   : > { %1802 = vst.msk [vmem:[%s5251_s9 + $0x60] sm:$0xf] %vm1777_vm0, %v5566_v26  ;;  %v5580_v39 = vpack.c.bf16 %v1289_v52, %v1289_v52  ;;  %v1567_v5 = vadd.f32 %v1566_v13, %v5285_v54  ;;  %v1568_v49 = vpop.f32.mrb[22].mxu1 }
 0x2de   : > { %1805 = vst.msk [vmem:[%s5251_s9 + $0x6c] sm:$0xf] %vm1777_vm0, %v5572_v16  ;;  %v5586_v50 = vpack.c.bf16 %v1565_v24, %v1565_v24  ;;  %v1569_v19 = vadd.f32 %v1568_v49, %v5282_v63  ;;  %2487 = vrot.lane.b32.xlu1 %v5270_v46, %s4481_s10  ;;  %v1570_v61 = vpop.f32.mrb[23].mxu1 }
 0x2df   : > { %1803 = vst.msk [vmem:[%s5251_s9 + $0x64] sm:$0xf] %vm1777_vm0, %v5580_v39  ;;  %v5594_v33 = vpack.c.bf16 %v1567_v5, %v1567_v5  ;;  %v1571_v0 = vadd.f32 %v1570_v61, %v5285_v54  ;;  %v4089_v6 = vpop.f32.mrb[28].mxu0 }
 0x2e0   : > { %1940 = vst.msk [vmem:[%s5308_s26 + $0x48] sm:$0xf] %vm1777_vm0, %v5586_v50  ;;  %v5600_v37 = vpack.c.bf16 %v1569_v19, %v1569_v19  ;;  %v1310_v38 = vadd.f32 %v4089_v6, %v5242_v22  ;;  %2247 = vrot.lane.b32.xlu0 %v5365_v21, %s4480_s16  ;;  %v1301_v9 = vpop.f32.mrb[29].mxu0 }
 0x2e1   : > { %2084 = vst.msk [vmem:[%s5318_s28 + $0x48] sm:$0xf] %vm1777_vm0, %v5594_v33  ;;  %v5608_v17 = vpack.c.bf16 %v1571_v0, %v1571_v0  ;;  %v1302_v28 = vadd.f32 %v5242_v22, %v1301_v9  ;;  %v4090_v3 = vpop.f32.mrb[30].mxu0 }
 0x2e2   : > { %1941 = vst.msk [vmem:[%s5308_s26 + $0x4c] sm:$0xf] %vm1777_vm0, %v5600_v37  ;;  %v5614_v52 = vpack.c.bf16 %v1310_v38, %v1310_v38  ;;  %v1313_v10 = vadd.f32 %v4090_v3, %v5242_v22  ;;  %2874 = vrot.lane.b32.xlu1 %v5270_v46, %s4482_s12  ;;  %v1304_v24 = vpop.f32.mrb[31].mxu0 }
 0x2e3   : > { %2085 = vst.msk [vmem:[%s5318_s28 + $0x4c] sm:$0xf] %vm1777_vm0, %v5608_v17  ;;  %v5622_v13 = vpack.c.bf16 %v1302_v28, %v1302_v28  ;;  %v1305_v5 = vadd.f32 %v5242_v22, %v1304_v24  ;;  %v1574_v49 = vpop.f32.mrb[24].mxu1 }
 0x2e4   : > { %1808 = vst.msk [vmem:[%s5251_s9 + $0x78] sm:$0xf] %vm1777_vm0, %v5614_v52  ;;  %v5628_v19 = vpack.c.bf16 %v1313_v10, %v1313_v10  ;;  %v1575_v61 = vadd.f32 %v1574_v49, %v5282_v63  ;;  %2634 = vrot.lane.b32.xlu0 %v5365_v21, %s4481_s10  ;;  %v1576_v46 = vpop.f32.mrb[25].mxu1 }
 0x2e5   : > { %7116 = vst [vmem:[#allocation16_spill] sm:$0xff] %v5622_v13  ;;  %1806 = vst.msk [vmem:[%s5251_s9 + $0x70] sm:$0xf] %vm1777_vm0, %v5622_v13  ;;  %v5636_v0 = vpack.c.bf16 %v1305_v5, %v1305_v5  ;;  %v1577_v22 = vadd.f32 %v1576_v46, %v5285_v54  ;;  %v1578_v6 = vpop.f32.mrb[26].mxu1 }
 0x2e6   : > { %1809 = vst.msk [vmem:[%s5251_s9 + $0x7c] sm:$0xf] %vm1777_vm0, %v5628_v19  ;;  %v5642_v38 = vpack.c.bf16 %v1575_v61, %v1575_v61  ;;  %v1579_v9 = vadd.f32 %v1578_v6, %v5282_v63  ;;  %2249 = vrot.lane.b32.xlu1 %v5378_v35, %s4480_s16  ;;  %v1580_v28 = vpop.f32.mrb[27].mxu1 }
 0x2e7   : > { %7117 = vst [vmem:[#allocation17_spill] sm:$0xff] %v5636_v0  ;;  %1807 = vst.msk [vmem:[%s5251_s9 + $0x74] sm:$0xf] %vm1777_vm0, %v5636_v0  ;;  %v5650_v3 = vpack.c.bf16 %v1577_v22, %v1577_v22  ;;  %v1581_v10 = vadd.f32 %v1580_v28, %v5285_v54  ;;  %v1474_v24 = vpop.f32.mrb[32].mxu0 }
 0x2e8   : > { %1942 = vst.msk [vmem:[%s5308_s26 + $0x50] sm:$0xf] %vm1777_vm0, %v5642_v38  ;;  %v5656_v5 = vpack.c.bf16 %v1579_v9, %v1579_v9  ;;  %v1475_v49 = vadd.f32 %v1474_v24, %v5282_v63  ;;  %3021 = vrot.lane.b32.xlu0 %v5365_v21, %s4482_s12  ;;  %v1476_v61 = vpop.f32.mrb[33].mxu0 }
 0x2e9   : > { %2086 = vst.msk [vmem:[%s5318_s28 + $0x50] sm:$0xf] %vm1777_vm0, %v5650_v3  ;;  %v5664_v46 = vpack.c.bf16 %v1581_v10, %v1581_v10  ;;  %v1477_v22 = vadd.f32 %v1476_v61, %v5285_v54  ;;  %v1478_v6 = vpop.f32.mrb[34].mxu0 }
 0x2ea   : > { %1943 = vst.msk [vmem:[%s5308_s26 + $0x54] sm:$0xf] %vm1777_vm0, %v5656_v5  ;;  %v5670_v9 = vpack.c.bf16 %v1475_v49, %v1475_v49  ;;  %v1479_v28 = vadd.f32 %v1478_v6, %v5282_v63  ;;  %2636 = vrot.lane.b32.xlu1 %v5378_v35, %s4481_s10  ;;  %v1480_v21 = vpop.f32.mrb[35].mxu0 }
 0x2eb   : > { %2087 = vst.msk [vmem:[%s5318_s28 + $0x54] sm:$0xf] %vm1777_vm0, %v5664_v46  ;;  %v5678_v10 = vpack.c.bf16 %v1477_v22, %v1477_v22  ;;  %v1481_v24 = vadd.f32 %v1480_v21, %v5285_v54  ;;  %v1584_v61 = vpop.f32.mrb[28].mxu1 }
 0x2ec   : > { %7118 = vst [vmem:[#allocation18_spill] sm:$0xff] %v5670_v9  ;;  %1922 = vst.msk [vmem:[%s5308_s26] sm:$0xf] %vm1777_vm0, %v5670_v9  ;;  %v5684_v49 = vpack.c.bf16 %v1479_v28, %v1479_v28  ;;  %v1585_v6 = vadd.f32 %v1584_v61, %v5282_v63  ;;  %2110 = vrot.lane.b32.xlu0 %v5287_v59, %s4480_s16  ;;  %v1586_v47 = vpop.f32.mrb[29].mxu1 }
 0x2ed   : > { %7119 = vst [vmem:[#allocation19_spill] sm:$0xff] %v5678_v10  ;;  %2066 = vst.msk [vmem:[%s5318_s28] sm:$0xf] %vm1777_vm0, %v5678_v10  ;;  %v5692_v22 = vpack.c.bf16 %v1481_v24, %v1481_v24  ;;  %v1587_v21 = vadd.f32 %v1586_v47, %v5285_v54  ;;  %v1588_v60 = vpop.f32.mrb[30].mxu1 }
 0x2ee   : > { %7120 = vst [vmem:[#allocation20_spill] sm:$0xff] %v5684_v49  ;;  %1923 = vst.msk [vmem:[%s5308_s26 + $0x4] sm:$0xf] %vm1777_vm0, %v5684_v49  ;;  %v5698_v28 = vpack.c.bf16 %v1585_v6, %v1585_v6  ;;  %v1589_v61 = vadd.f32 %v1588_v60, %v5282_v63  ;;  %3023 = vrot.lane.b32.xlu1 %v5378_v35, %s4482_s12  ;;  %v1590_v9 = vpop.f32.mrb[31].mxu1 }
 0x2ef   : > { %7121 = vst [vmem:[#allocation21_spill] sm:$0xff] %v5692_v22  ;;  %2067 = vst.msk [vmem:[%s5318_s28 + $0x4] sm:$0xf] %vm1777_vm0, %v5692_v22  ;;  %v5706_v24 = vpack.c.bf16 %v1587_v21, %v1587_v21  ;;  %v1591_v47 = vadd.f32 %v1590_v9, %v5285_v54  ;;  %v1484_v10 = vpop.f32.mrb[36].mxu0 }
 0x2f0   : > { %1944 = vst.msk [vmem:[%s5308_s26 + $0x58] sm:$0xf] %vm1777_vm0, %v5698_v28  ;;  %v5712_v6 = vpack.c.bf16 %v1589_v61, %v1589_v61  ;;  %v1485_v60 = vadd.f32 %v1484_v10, %v5282_v63  ;;  %2376 = vrot.lane.b32.xlu0 %v5372_v27, %s4480_s16  ;;  %v1486_v35 = vpop.f32.mrb[37].mxu0 }
 0x2f1   : > { %2088 = vst.msk [vmem:[%s5318_s28 + $0x58] sm:$0xf] %vm1777_vm0, %v5706_v24  ;;  %v5720_v21 = vpack.c.bf16 %v1591_v47, %v1591_v47  ;;  %v1487_v9 = vadd.f32 %v1486_v35, %v5285_v54  ;;  %v1488_v22 = vpop.f32.mrb[38].mxu0 }
 0x2f2   : > { %1945 = vst.msk [vmem:[%s5308_s26 + $0x5c] sm:$0xf] %vm1777_vm0, %v5712_v6  ;;  %v5726_v61 = vpack.c.bf16 %v1485_v60, %v1485_v60  ;;  %v1489_v10 = vadd.f32 %v1488_v22, %v5282_v63  ;;  %2112 = vrot.lane.b32.xlu1 %v5296_v4, %s4480_s16  ;;  %v1490_v49 = vpop.f32.mrb[39].mxu0 }
 0x2f3   : > { %7122 = vst [vmem:[#allocation22_spill] sm:$0xff] %v5720_v21  ;;  %2089 = vst.msk [vmem:[%s5318_s28 + $0x5c] sm:$0xf] %vm1777_vm0, %v5720_v21  ;;  %v5734_v47 = vpack.c.bf16 %v1487_v9, %v1487_v9  ;;  %v1491_v35 = vadd.f32 %v1490_v49, %v5285_v54  ;;  %v1594_v0 = vpop.f32.mrb[32].mxu1 }
 0x2f4   : > { %7123 = vst [vmem:[#allocation23_spill] sm:$0xff] %v5726_v61  ;;  %1924 = vst.msk [vmem:[%s5308_s26 + $0x8] sm:$0xf] %vm1777_vm0, %v5726_v61  ;;  %v5740_v60 = vpack.c.bf16 %v1489_v10, %v1489_v10  ;;  %v1595_v22 = vadd.f32 %v1594_v0, %v5282_v63  ;;  %2497 = vrot.lane.b32.xlu0 %v5287_v59, %s4481_s10  ;;  %v1596_v13 = vpop.f32.mrb[33].mxu1 }
 0x2f5   : > { %7124 = vst [vmem:[#allocation24_spill] sm:$0xff] %v5734_v47  ;;  %2068 = vst.msk [vmem:[%s5318_s28 + $0x8] sm:$0xf] %vm1777_vm0, %v5734_v47  ;;  %v5748_v9 = vpack.c.bf16 %v1491_v35, %v1491_v35  ;;  %v1597_v49 = vadd.f32 %v1596_v13, %v5285_v54  ;;  %v1598_v21 = vpop.f32.mrb[34].mxu1 }
 0x2f6   : > { %7125 = vst [vmem:[#allocation25_spill] sm:$0xff] %v5740_v60  ;;  %1925 = vst.msk [vmem:[%s5308_s26 + $0xc] sm:$0xf] %vm1777_vm0, %v5740_v60  ;;  %v5754_v10 = vpack.c.bf16 %v1595_v22, %v1595_v22  ;;  %v1599_v0 = vadd.f32 %v1598_v21, %v5282_v63  ;;  %2378 = vrot.lane.b32.xlu1 %v5385_v1, %s4480_s16  ;;  %v1600_v61 = vpop.f32.mrb[35].mxu1 }
 0x2f7   : > { %7126 = vst [vmem:[#allocation26_spill] sm:$0xff] %v5748_v9  ;;  %2069 = vst.msk [vmem:[%s5318_s28 + $0xc] sm:$0xf] %vm1777_vm0, %v5748_v9  ;;  %v5762_v35 = vpack.c.bf16 %v1597_v49, %v1597_v49  ;;  %v1601_v13 = vadd.f32 %v1600_v61, %v5285_v54  ;;  %v1494_v47 = vpop.f32.mrb[40].mxu0 }
 0x2f8   : > { %1946 = vst.msk [vmem:[%s5308_s26 + $0x60] sm:$0xf] %vm1777_vm0, %v5754_v10  ;;  %v5768_v22 = vpack.c.bf16 %v1599_v0, %v1599_v0  ;;  %v1495_v21 = vadd.f32 %v1494_v47, %v5282_v63  ;;  %2763 = vrot.lane.b32.xlu0 %v5372_v27, %s4481_s10  ;;  %v1496_v60 = vpop.f32.mrb[41].mxu0 }
 0x2f9   : > { %7127 = vst [vmem:[#allocation27_spill] sm:$0xff] %v5762_v35  ;;  %2090 = vst.msk [vmem:[%s5318_s28 + $0x60] sm:$0xf] %vm1777_vm0, %v5762_v35  ;;  %v5776_v49 = vpack.c.bf16 %v1601_v13, %v1601_v13  ;;  %v1497_v61 = vadd.f32 %v1496_v60, %v5285_v54  ;;  %v1498_v9 = vpop.f32.mrb[42].mxu0 }
 0x2fa   : > { %7128 = vst [vmem:[#allocation28_spill] sm:$0xff] %v5768_v22  ;;  %1947 = vst.msk [vmem:[%s5308_s26 + $0x64] sm:$0xf] %vm1777_vm0, %v5768_v22  ;;  %v5782_v0 = vpack.c.bf16 %v1495_v21, %v1495_v21  ;;  %v1499_v47 = vadd.f32 %v1498_v9, %v5282_v63  ;;  %2499 = vrot.lane.b32.xlu1 %v5296_v4, %s4481_s10  ;;  %v1500_v27 = vpop.f32.mrb[43].mxu0 }
 0x2fb   : > { %7129 = vst [vmem:[#allocation29_spill] sm:$0xff] %v5776_v49  ;;  %2091 = vst.msk [vmem:[%s5318_s28 + $0x64] sm:$0xf] %vm1777_vm0, %v5776_v49  ;;  %v5790_v13 = vpack.c.bf16 %v1497_v61, %v1497_v61  ;;  %v1501_v60 = vadd.f32 %v1500_v27, %v5285_v54  ;;  %v1604_v35 = vpop.f32.mrb[36].mxu1 }
 0x2fc   : > { %7130 = vst [vmem:[#allocation30_spill] sm:$0xff] %v5782_v0  ;;  %1926 = vst.msk [vmem:[%s5308_s26 + $0x10] sm:$0xf] %vm1777_vm0, %v5782_v0  ;;  %v5796_v21 = vpack.c.bf16 %v1499_v47, %v1499_v47  ;;  %v1605_v9 = vadd.f32 %v1604_v35, %v5282_v63  ;;  %2884 = vrot.lane.b32.xlu0 %v5287_v59, %s4482_s12  ;;  %v1606_v22 = vpop.f32.mrb[37].mxu1 }
 0x2fd   : > { %7131 = vst [vmem:[#allocation31_spill] sm:$0xff] %v5790_v13  ;;  %2070 = vst.msk [vmem:[%s5318_s28 + $0x10] sm:$0xf] %vm1777_vm0, %v5790_v13  ;;  %v5804_v61 = vpack.c.bf16 %v1501_v60, %v1501_v60  ;;  %v1607_v27 = vadd.f32 %v1606_v22, %v5285_v54  ;;  %v1608_v49 = vpop.f32.mrb[38].mxu1 }
 0x2fe   : > { %7132 = vst [vmem:[#allocation32_spill] sm:$0xff] %v5796_v21  ;;  %1927 = vst.msk [vmem:[%s5308_s26 + $0x14] sm:$0xf] %vm1777_vm0, %v5796_v21  ;;  %v5810_v47 = vpack.c.bf16 %v1605_v9, %v1605_v9  ;;  %v1609_v35 = vadd.f32 %v1608_v49, %v5282_v63  ;;  %2765 = vrot.lane.b32.xlu1 %v5385_v1, %s4481_s10  ;;  %v1610_v59 = vpop.f32.mrb[39].mxu1 }
 0x2ff   : > { %7133 = vst [vmem:[#allocation33_spill] sm:$0xff] %v5804_v61  ;;  %2071 = vst.msk [vmem:[%s5318_s28 + $0x14] sm:$0xf] %vm1777_vm0, %v5804_v61  ;;  %v5818_v60 = vpack.c.bf16 %v1607_v27, %v1607_v27  ;;  %v1611_v22 = vadd.f32 %v1610_v59, %v5285_v54  ;;  %v1504_v13 = vpop.f32.mrb[44].mxu0 }
 0x300   : > { %1948 = vst.msk [vmem:[%s5308_s26 + $0x68] sm:$0xf] %vm1777_vm0, %v5810_v47  ;;  %v5824_v9 = vpack.c.bf16 %v1609_v35, %v1609_v35  ;;  %v1505_v49 = vadd.f32 %v1504_v13, %v5282_v63  ;;  %2106 = vrot.lane.b32.xlu0 %v5290_v11, %s4480_s16  ;;  %v1506_v1 = vpop.f32.mrb[45].mxu0 }
 0x301   : > { %2092 = vst.msk [vmem:[%s5318_s28 + $0x68] sm:$0xf] %vm1777_vm0, %v5818_v60  ;;  %v5832_v27 = vpack.c.bf16 %v1611_v22, %v1611_v22  ;;  %v1507_v59 = vadd.f32 %v1506_v1, %v5285_v54  ;;  %v1508_v61 = vpop.f32.mrb[46].mxu0 }
 0x302   : > { %1949 = vst.msk [vmem:[%s5308_s26 + $0x6c] sm:$0xf] %vm1777_vm0, %v5824_v9  ;;  %v5838_v35 = vpack.c.bf16 %v1505_v49, %v1505_v49  ;;  %v1509_v13 = vadd.f32 %v1508_v61, %v5282_v63  ;;  %2886 = vrot.lane.b32.xlu1 %v5296_v4, %s4482_s12  ;;  %v1510_v21 = vpop.f32.mrb[47].mxu0 }
 0x303   : > { %7134 = vst [vmem:[#allocation34_spill] sm:$0xff] %v5832_v27  ;;  %2093 = vst.msk [vmem:[%s5318_s28 + $0x6c] sm:$0xf] %vm1777_vm0, %v5832_v27  ;;  %v5846_v22 = vpack.c.bf16 %v1507_v59, %v1507_v59  ;;  %v1511_v1 = vadd.f32 %v1510_v21, %v5285_v54  ;;  %v1614_v0 = vpop.f32.mrb[40].mxu1 }
 0x304   : > { %7135 = vst [vmem:[#allocation35_spill] sm:$0xff] %v5838_v35  ;;  %1928 = vst.msk [vmem:[%s5308_s26 + $0x18] sm:$0xf] %vm1777_vm0, %v5838_v35  ;;  %v5852_v49 = vpack.c.bf16 %v1509_v13, %v1509_v13  ;;  %v1615_v61 = vadd.f32 %v1614_v0, %v5282_v63  ;;  %2493 = vrot.lane.b32.xlu0 %v5290_v11, %s4481_s10  ;;  %v1616_v4 = vpop.f32.mrb[41].mxu1 }
 0x305   : > { %7136 = vst [vmem:[#allocation36_spill] sm:$0xff] %v5846_v22  ;;  %2072 = vst.msk [vmem:[%s5318_s28 + $0x18] sm:$0xf] %vm1777_vm0, %v5846_v22  ;;  %v5860_v59 = vpack.c.bf16 %v1511_v1, %v1511_v1  ;;  %v1617_v21 = vadd.f32 %v1616_v4, %v5285_v54  ;;  %v1618_v27 = vpop.f32.mrb[42].mxu1 }
 0x306   : > { %7137 = vst [vmem:[#allocation37_spill] sm:$0xff] %v5852_v49  ;;  %1929 = vst.msk [vmem:[%s5308_s26 + $0x1c] sm:$0xf] %vm1777_vm0, %v5852_v49  ;;  %v5866_v13 = vpack.c.bf16 %v1615_v61, %v1615_v61  ;;  %v1619_v0 = vadd.f32 %v1618_v27, %v5282_v63  ;;  %2108 = vrot.lane.b32.xlu1 %v5302_v40, %s4480_s16  ;;  %v1620_v35 = vpop.f32.mrb[43].mxu1 }
 0x307   : > { %7138 = vst [vmem:[#allocation38_spill] sm:$0xff] %v5860_v59  ;;  %2073 = vst.msk [vmem:[%s5318_s28 + $0x1c] sm:$0xf] %vm1777_vm0, %v5860_v59  ;;  %v5874_v1 = vpack.c.bf16 %v1617_v21, %v1617_v21  ;;  %v1621_v4 = vadd.f32 %v1620_v35, %v5285_v54 }
 0x308   : > { %1950 = vst.msk [vmem:[%s5308_s26 + $0x70] sm:$0xf] %vm1777_vm0, %v5866_v13  ;;  %v5880_v22 = vpack.c.bf16 %v1619_v0, %v1619_v0  ;;  %2880 = vrot.lane.b32.xlu0 %v5290_v11, %s4482_s12 }
 0x309   : > { %7139 = vst [vmem:[#allocation39_spill] sm:$0xff] %v5874_v1  ;;  %2094 = vst.msk [vmem:[%s5318_s28 + $0x70] sm:$0xf] %vm1777_vm0, %v5874_v1  ;;  %v5887_v27 = vpack.c.bf16 %v1621_v4, %v1621_v4 }
 0x30a   : > { %1951 = vst.msk [vmem:[%s5308_s26 + $0x74] sm:$0xf] %vm1777_vm0, %v5880_v22  ;;  %2495 = vrot.lane.b32.xlu1 %v5302_v40, %s4481_s10 }
 0x30b   : > { %7140 = vst [vmem:[#allocation40_spill] sm:$0xff] %v5887_v27  ;;  %2095 = vst.msk [vmem:[%s5318_s28 + $0x74] sm:$0xf] %vm1777_vm0, %v5887_v27  ;;  %v1624_v35 = vpop.f32.mrb[44].mxu1 }
 0x30c   : > { %v1625_v61 = vadd.f32 %v1624_v35, %v5282_v63  ;;  %2251 = vrot.lane.b32.xlu0 %v5418_v45, %s4480_s16  ;;  %v1626_v11 = vpop.f32.mrb[45].mxu1 }
 0x30d   : > { %v1627_v21 = vadd.f32 %v1626_v11, %v5285_v54  ;;  %v1628_v0 = vpop.f32.mrb[46].mxu1 }
 0x30e   : > { %v5901_v4 = vpack.c.bf16 %v1625_v61, %v1625_v61  ;;  %v1629_v59 = vadd.f32 %v1628_v0, %v5282_v63  ;;  %2882 = vrot.lane.b32.xlu1 %v5302_v40, %s4482_s12  ;;  %v1630_v49 = vpop.f32.mrb[47].mxu1 }
 0x30f   : > { %v5906_v27 = vpack.c.bf16 %v1627_v21, %v1627_v21  ;;  %v1631_v35 = vadd.f32 %v1630_v49, %v5285_v54 }
 0x310   : > { %1952 = vst.msk [vmem:[%s5308_s26 + $0x78] sm:$0xf] %vm1777_vm0, %v5901_v4  ;;  %v5912_v1 = vpack.c.bf16 %v1629_v59, %v1629_v59  ;;  %2638 = vrot.lane.b32.xlu0 %v5418_v45, %s4481_s10 }
 0x311   : > { %2096 = vst.msk [vmem:[%s5318_s28 + $0x78] sm:$0xf] %vm1777_vm0, %v5906_v27  ;;  %v5919_v63 = vpack.c.bf16 %v1631_v35, %v1631_v35 }
 0x312   : > { %1953 = vst.msk [vmem:[%s5308_s26 + $0x7c] sm:$0xf] %vm1777_vm0, %v5912_v1  ;;  %2253 = vrot.lane.b32.xlu1 %v5432_v48, %s4480_s16 }
 0x313   : > { %2097 = vst.msk [vmem:[%s5318_s28 + $0x7c] sm:$0xf] %vm1777_vm0, %v5919_v63 }
 0x314   : > { %3025 = vrot.lane.b32.xlu0 %v5418_v45, %s4482_s12 }
 0x316   : > { %2640 = vrot.lane.b32.xlu1 %v5432_v48, %s4481_s10 }
 0x318   : > { %2118 = vrot.lane.b32.xlu0 %v5339_v58, %s4480_s16 }
 0x31a   : > { %3027 = vrot.lane.b32.xlu1 %v5432_v48, %s4482_s12 }
 0x31c   : > { %2380 = vrot.lane.b32.xlu0 %v5426_v2, %s4480_s16 }
 0x31e   : > { %v2103_v54 = vpop.permute.xlu1 %2102  ;;  %2120 = vrot.lane.b32.xlu1 %v5352_v56, %s4480_s16 }
 0x31f   : > { %3631 = vst.msk [vmem:[%s5251_s9 + $0x88] sm:$0xf] %vm1777_vm0, %v2103_v54 }
 0x320   : > { %2505 = vrot.lane.b32.xlu0 %v5339_v58, %s4481_s10 }
 0x322   : > { %2382 = vrot.lane.b32.xlu1 %v5440_v53, %s4480_s16 }
 0x324   : > { %2767 = vrot.lane.b32.xlu0 %v5426_v2, %s4481_s10 }
 0x326   : > { %2507 = vrot.lane.b32.xlu1 %v5352_v56, %s4481_s10 }
 0x328   : > { %2892 = vrot.lane.b32.xlu0 %v5339_v58, %s4482_s12 }
 0x32a   : > { %2769 = vrot.lane.b32.xlu1 %v5440_v53, %s4481_s10  ;;  %v2244_v40 = vpop.permute.xlu0 %2243 }
 0x32b   : > { %3669 = vst.msk [vmem:[%s5308_s26 + $0xa0] sm:$0xf] %vm1777_vm0, %v2244_v40 }
 0x32c   : > { %v2246_v45 = vpop.permute.xlu1 %2245  ;;  %2114 = vrot.lane.b32.xlu0 %v5346_v51, %s4480_s16 }
 0x32d   : > { %3670 = vst.msk [vmem:[%s5308_s26 + $0xa4] sm:$0xf] %vm1777_vm0, %v2246_v45 }
 0x32e   : > { %2894 = vrot.lane.b32.xlu1 %v5352_v56, %s4482_s12  ;;  %v2631_v48 = vpop.permute.xlu0 %2630 }
 0x32f   : > { %3765 = vst.msk [vmem:[%s5308_s26 + $0x120] sm:$0xf] %vm1777_vm0, %v2631_v48 }
 0x330   : > { %v2633_v58 = vpop.permute.xlu1 %2632  ;;  %2501 = vrot.lane.b32.xlu0 %v5346_v51, %s4481_s10 }
 0x331   : > { %3766 = vst.msk [vmem:[%s5308_s26 + $0x124] sm:$0xf] %vm1777_vm0, %v2633_v58 }
 0x332   : > { %2116 = vrot.lane.b32.xlu1 %v5359_v8, %s4480_s16  ;;  %v3018_v49 = vpop.permute.xlu0 %3017 }
 0x333   : > { %3861 = vst.msk [vmem:[%s5308_s26 + $0x1a0] sm:$0xf] %vm1777_vm0, %v3018_v49 }
 0x334   : > { %v3020_v59 = vpop.permute.xlu1 %3019  ;;  %2888 = vrot.lane.b32.xlu0 %v5346_v51, %s4482_s12 }
 0x335   : > { %3862 = vst.msk [vmem:[%s5308_s26 + $0x1a4] sm:$0xf] %vm1777_vm0, %v3020_v59 }
 0x336   : > { %2503 = vrot.lane.b32.xlu1 %v5359_v8, %s4481_s10  ;;  %v2373_v56 = vpop.permute.xlu0 %2372 }
 0x337   : > { %3701 = vst.msk [vmem:[%s5318_s28 + $0xa0] sm:$0xf] %vm1777_vm0, %v2373_v56 }
 0x338   : > { %v2105_v61 = vpop.permute.xlu1 %2104  ;;  %2255 = vrot.lane.b32.xlu0 %v5474_v62, %s4480_s16 }
 0x339   : > { %3632 = vst.msk [vmem:[%s5251_s9 + $0x8c] sm:$0xf] %vm1777_vm0, %v2105_v61 }
 0x33a   : > { %2890 = vrot.lane.b32.xlu1 %v5359_v8, %s4482_s12  ;;  %v2490_v51 = vpop.permute.xlu0 %2489 }
 0x33b   : > { %3727 = vst.msk [vmem:[%s5251_s9 + $0x108] sm:$0xf] %vm1777_vm0, %v2490_v51 }
 0x33c   : > { %v2375_v11 = vpop.permute.xlu1 %2374  ;;  %2642 = vrot.lane.b32.xlu0 %v5474_v62, %s4481_s10 }
 0x33d   : > { %3702 = vst.msk [vmem:[%s5318_s28 + $0xa4] sm:$0xf] %vm1777_vm0, %v2375_v11 }
 0x33e   : > { %2257 = vrot.lane.b32.xlu1 %v5488_v14, %s4480_s16  ;;  %v2760_v21 = vpop.permute.xlu0 %2759 }
 0x33f   : > { %3797 = vst.msk [vmem:[%s5318_s28 + $0x120] sm:$0xf] %vm1777_vm0, %v2760_v21 }
 0x340   : > { %v2492_v0 = vpop.permute.xlu1 %2491  ;;  %3029 = vrot.lane.b32.xlu0 %v5474_v62, %s4482_s12 }
 0x341   : > { %3728 = vst.msk [vmem:[%s5251_s9 + $0x10c] sm:$0xf] %vm1777_vm0, %v2492_v0 }
 0x342   : > { %2644 = vrot.lane.b32.xlu1 %v5488_v14, %s4481_s10  ;;  %v2877_v8 = vpop.permute.xlu0 %2876 }
 0x343   : > { %3823 = vst.msk [vmem:[%s5251_s9 + $0x188] sm:$0xf] %vm1777_vm0, %v2877_v8 }
 0x344   : > { %v2762_v35 = vpop.permute.xlu1 %2761  ;;  %2126 = vrot.lane.b32.xlu0 %v5391_v55, %s4480_s16 }
 0x345   : > { %3798 = vst.msk [vmem:[%s5318_s28 + $0x124] sm:$0xf] %vm1777_vm0, %v2762_v35 }
 0x346   : > { %3031 = vrot.lane.b32.xlu1 %v5488_v14, %s4482_s12  ;;  %v2099_v62 = vpop.permute.xlu0 %2098 }
 0x347   : > { %3629 = vst.msk [vmem:[%s5251_s9 + $0x80] sm:$0xf] %vm1777_vm0, %v2099_v62 }
 0x348   : > { %v2879_v54 = vpop.permute.xlu1 %2878  ;;  %2384 = vrot.lane.b32.xlu0 %v5482_v15, %s4480_s16 }
 0x349   : > { %3824 = vst.msk [vmem:[%s5251_s9 + $0x18c] sm:$0xf] %vm1777_vm0, %v2879_v54 }
 0x34a   : > { %2128 = vrot.lane.b32.xlu1 %v5404_v44, %s4480_s16  ;;  %v2486_v40 = vpop.permute.xlu0 %2485 }
 0x34b   : > { %3725 = vst.msk [vmem:[%s5251_s9 + $0x100] sm:$0xf] %vm1777_vm0, %v2486_v40 }
 0x34c   : > { %v2101_v45 = vpop.permute.xlu1 %2100  ;;  %2513 = vrot.lane.b32.xlu0 %v5391_v55, %s4481_s10 }
 0x34d   : > { %3630 = vst.msk [vmem:[%s5251_s9 + $0x84] sm:$0xf] %vm1777_vm0, %v2101_v45 }
 0x34e   : > { %2386 = vrot.lane.b32.xlu1 %v5496_v12, %s4480_s16  ;;  %v2873_v14 = vpop.permute.xlu0 %2872 }
 0x34f   : > { %3821 = vst.msk [vmem:[%s5251_s9 + $0x180] sm:$0xf] %vm1777_vm0, %v2873_v14 }
 0x350   : > { %v2488_v48 = vpop.permute.xlu1 %2487  ;;  %2771 = vrot.lane.b32.xlu0 %v5482_v15, %s4481_s10 }
 0x351   : > { %3726 = vst.msk [vmem:[%s5251_s9 + $0x104] sm:$0xf] %vm1777_vm0, %v2488_v48 }
 0x352   : > { %2515 = vrot.lane.b32.xlu1 %v5404_v44, %s4481_s10  ;;  %v2248_v58 = vpop.permute.xlu0 %2247 }
 0x353   : > { %3671 = vst.msk [vmem:[%s5308_s26 + $0xa8] sm:$0xf] %vm1777_vm0, %v2248_v58 }
 0x354   : > { %v2875_v49 = vpop.permute.xlu1 %2874  ;;  %2900 = vrot.lane.b32.xlu0 %v5391_v55, %s4482_s12 }
 0x355   : > { %3822 = vst.msk [vmem:[%s5251_s9 + $0x184] sm:$0xf] %vm1777_vm0, %v2875_v49 }
 0x356   : > { %2773 = vrot.lane.b32.xlu1 %v5496_v12, %s4481_s10  ;;  %v2635_v59 = vpop.permute.xlu0 %2634 }
 0x357   : > { %3767 = vst.msk [vmem:[%s5308_s26 + $0x128] sm:$0xf] %vm1777_vm0, %v2635_v59 }
 0x358   : > { %v2250_v56 = vpop.permute.xlu1 %2249  ;;  %2122 = vrot.lane.b32.xlu0 %v5398_v31, %s4480_s16 }
 0x359   : > { %3672 = vst.msk [vmem:[%s5308_s26 + $0xac] sm:$0xf] %vm1777_vm0, %v2250_v56 }
 0x35a   : > { %2902 = vrot.lane.b32.xlu1 %v5404_v44, %s4482_s12  ;;  %v3022_v55 = vpop.permute.xlu0 %3021 }
 0x35b   : > { %3863 = vst.msk [vmem:[%s5308_s26 + $0x1a8] sm:$0xf] %vm1777_vm0, %v3022_v55 }
 0x35c   : > { %v2637_v61 = vpop.permute.xlu1 %2636  ;;  %2509 = vrot.lane.b32.xlu0 %v5398_v31, %s4481_s10 }
 0x35d   : > { %3768 = vst.msk [vmem:[%s5308_s26 + $0x12c] sm:$0xf] %vm1777_vm0, %v2637_v61 }
 0x35e   : > { %2124 = vrot.lane.b32.xlu1 %v5412_v7, %s4480_s16  ;;  %v2111_v51 = vpop.permute.xlu0 %2110 }
 0x35f   : > { %3635 = vst.msk [vmem:[%s5251_s9 + $0x98] sm:$0xf] %vm1777_vm0, %v2111_v51 }
 0x360   : > { %v3024_v11 = vpop.permute.xlu1 %3023  ;;  %2896 = vrot.lane.b32.xlu0 %v5398_v31, %s4482_s12 }
 0x361   : > { %3864 = vst.msk [vmem:[%s5308_s26 + $0x1ac] sm:$0xf] %vm1777_vm0, %v3024_v11 }
 0x362   : > { %2511 = vrot.lane.b32.xlu1 %v5412_v7, %s4481_s10  ;;  %v2377_v44 = vpop.permute.xlu0 %2376 }
 0x363   : > { %3703 = vst.msk [vmem:[%s5318_s28 + $0xa8] sm:$0xf] %vm1777_vm0, %v2377_v44 }
 0x364   : > { %v2113_v21 = vpop.permute.xlu1 %2112  ;;  %2259 = vrot.lane.b32.xlu0 %v5530_v57, %s4480_s16 }
 0x365   : > { %3636 = vst.msk [vmem:[%s5251_s9 + $0x9c] sm:$0xf] %vm1777_vm0, %v2113_v21 }
 0x366   : > { %2898 = vrot.lane.b32.xlu1 %v5412_v7, %s4482_s12  ;;  %v2498_v31 = vpop.permute.xlu0 %2497 }
 0x367   : > { %3731 = vst.msk [vmem:[%s5251_s9 + $0x118] sm:$0xf] %vm1777_vm0, %v2498_v31 }
 0x368   : > { %v2379_v0 = vpop.permute.xlu1 %2378  ;;  %2646 = vrot.lane.b32.xlu0 %v5530_v57, %s4481_s10 }
 0x369   : > { %3704 = vst.msk [vmem:[%s5318_s28 + $0xac] sm:$0xf] %vm1777_vm0, %v2379_v0 }
 0x36a   : > { %2261 = vrot.lane.b32.xlu1 %v5544_v32, %s4480_s16  ;;  %v2764_v8 = vpop.permute.xlu0 %2763 }
 0x36b   : > { %3799 = vst.msk [vmem:[%s5318_s28 + $0x128] sm:$0xf] %vm1777_vm0, %v2764_v8 }
 0x36c   : > { %v2500_v35 = vpop.permute.xlu1 %2499  ;;  %3033 = vrot.lane.b32.xlu0 %v5530_v57, %s4482_s12 }
 0x36d   : > { %3732 = vst.msk [vmem:[%s5251_s9 + $0x11c] sm:$0xf] %vm1777_vm0, %v2500_v35 }
 0x36e   : > { %2648 = vrot.lane.b32.xlu1 %v5544_v32, %s4481_s10  ;;  %v2885_v7 = vpop.permute.xlu0 %2884 }
 0x36f   : > { %3827 = vst.msk [vmem:[%s5251_s9 + $0x198] sm:$0xf] %vm1777_vm0, %v2885_v7 }
 0x370   : > { %v2766_v62 = vpop.permute.xlu1 %2765  ;;  %2134 = vrot.lane.b32.xlu0 %v5446_v25, %s4480_s16 }
 0x371   : > { %3800 = vst.msk [vmem:[%s5318_s28 + $0x12c] sm:$0xf] %vm1777_vm0, %v2766_v62 }
 0x372   : > { %3035 = vrot.lane.b32.xlu1 %v5544_v32, %s4482_s12  ;;  %v2107_v57 = vpop.permute.xlu0 %2106 }
 0x373   : > { %3633 = vst.msk [vmem:[%s5251_s9 + $0x90] sm:$0xf] %vm1777_vm0, %v2107_v57 }
 0x374   : > { %v2887_v54 = vpop.permute.xlu1 %2886  ;;  %2388 = vrot.lane.b32.xlu0 %v5538_v30, %s4480_s16 }
 0x375   : > { %3828 = vst.msk [vmem:[%s5251_s9 + $0x19c] sm:$0xf] %vm1777_vm0, %v2887_v54 }
 0x376   : > { %2136 = vrot.lane.b32.xlu1 %v5460_v41, %s4480_s16  ;;  %v2494_v40 = vpop.permute.xlu0 %2493 }
 0x377   : > { %3729 = vst.msk [vmem:[%s5251_s9 + $0x110] sm:$0xf] %vm1777_vm0, %v2494_v40 }
 0x378   : > { %v2109_v45 = vpop.permute.xlu1 %2108  ;;  %2521 = vrot.lane.b32.xlu0 %v5446_v25, %s4481_s10 }
 0x379   : > { %3634 = vst.msk [vmem:[%s5251_s9 + $0x94] sm:$0xf] %vm1777_vm0, %v2109_v45 }
 0x37a   : > { %2390 = vrot.lane.b32.xlu1 %v5552_v42, %s4480_s16  ;;  %v2881_v32 = vpop.permute.xlu0 %2880 }
 0x37b   : > { %3825 = vst.msk [vmem:[%s5251_s9 + $0x190] sm:$0xf] %vm1777_vm0, %v2881_v32 }
 0x37c   : > { %v2496_v14 = vpop.permute.xlu1 %2495  ;;  %2775 = vrot.lane.b32.xlu0 %v5538_v30, %s4481_s10 }
 0x37d   : > { %3730 = vst.msk [vmem:[%s5251_s9 + $0x114] sm:$0xf] %vm1777_vm0, %v2496_v14 }
 0x37e   : > { %2523 = vrot.lane.b32.xlu1 %v5460_v41, %s4481_s10  ;;  %v2252_v48 = vpop.permute.xlu0 %2251 }
 0x37f   : > { %3673 = vst.msk [vmem:[%s5308_s26 + $0xb0] sm:$0xf] %vm1777_vm0, %v2252_v48 }
 0x380   : > { %v2883_v58 = vpop.permute.xlu1 %2882  ;;  %2908 = vrot.lane.b32.xlu0 %v5446_v25, %s4482_s12 }
 0x381   : > { %3826 = vst.msk [vmem:[%s5251_s9 + $0x194] sm:$0xf] %vm1777_vm0, %v2883_v58 }
 0x382   : > { %2777 = vrot.lane.b32.xlu1 %v5552_v42, %s4481_s10  ;;  %v2639_v49 = vpop.permute.xlu0 %2638 }
 0x383   : > { %3769 = vst.msk [vmem:[%s5308_s26 + $0x130] sm:$0xf] %vm1777_vm0, %v2639_v49 }
 0x384   : > { %v2254_v59 = vpop.permute.xlu1 %2253  ;;  %2130 = vrot.lane.b32.xlu0 %v5454_v34, %s4480_s16 }
 0x385   : > { %3674 = vst.msk [vmem:[%s5308_s26 + $0xb4] sm:$0xf] %vm1777_vm0, %v2254_v59 }
 0x386   : > { %2910 = vrot.lane.b32.xlu1 %v5460_v41, %s4482_s12  ;;  %v3026_v25 = vpop.permute.xlu0 %3025 }
 0x387   : > { %3865 = vst.msk [vmem:[%s5308_s26 + $0x1b0] sm:$0xf] %vm1777_vm0, %v3026_v25 }
 0x388   : > { %v2641_v56 = vpop.permute.xlu1 %2640  ;;  %2517 = vrot.lane.b32.xlu0 %v5454_v34, %s4481_s10 }
 0x389   : > { %3770 = vst.msk [vmem:[%s5308_s26 + $0x134] sm:$0xf] %vm1777_vm0, %v2641_v56 }
 0x38a   : > { %2132 = vrot.lane.b32.xlu1 %v5468_v20, %s4480_s16  ;;  %v2119_v55 = vpop.permute.xlu0 %2118 }
 0x38b   : > { %3639 = vst.msk [vmem:[%s5251_s9 + $0xa8] sm:$0xf] %vm1777_vm0, %v2119_v55 }
 0x38c   : > { %v3028_v61 = vpop.permute.xlu1 %3027  ;;  %2904 = vrot.lane.b32.xlu0 %v5454_v34, %s4482_s12 }
 0x38d   : > { %3866 = vst.msk [vmem:[%s5308_s26 + $0x1b4] sm:$0xf] %vm1777_vm0, %v3028_v61 }
 0x38e   : > { %2519 = vrot.lane.b32.xlu1 %v5468_v20, %s4481_s10  ;;  %v2381_v41 = vpop.permute.xlu0 %2380 }
 0x38f   : > { %3705 = vst.msk [vmem:[%s5318_s28 + $0xb0] sm:$0xf] %vm1777_vm0, %v2381_v41 }
 0x390   : > { %v2121_v51 = vpop.permute.xlu1 %2120  ;;  %2263 = vrot.lane.b32.xlu0 %v5586_v50, %s4480_s16 }
 0x391   : > { %3640 = vst.msk [vmem:[%s5251_s9 + $0xac] sm:$0xf] %vm1777_vm0, %v2121_v51 }
 0x392   : > { %2906 = vrot.lane.b32.xlu1 %v5468_v20, %s4482_s12  ;;  %v2506_v34 = vpop.permute.xlu0 %2505 }
 0x393   : > { %3735 = vst.msk [vmem:[%s5251_s9 + $0x128] sm:$0xf] %vm1777_vm0, %v2506_v34 }
 0x394   : > { %v2383_v11 = vpop.permute.xlu1 %2382  ;;  %2650 = vrot.lane.b32.xlu0 %v5586_v50, %s4481_s10 }
 0x395   : > { %3706 = vst.msk [vmem:[%s5318_s28 + $0xb4] sm:$0xf] %vm1777_vm0, %v2383_v11 }
 0x396   : > { %2265 = vrot.lane.b32.xlu1 %v5600_v37, %s4480_s16  ;;  %v2768_v44 = vpop.permute.xlu0 %2767 }
 0x397   : > { %3801 = vst.msk [vmem:[%s5318_s28 + $0x130] sm:$0xf] %vm1777_vm0, %v2768_v44 }
 0x398   : > { %v2508_v21 = vpop.permute.xlu1 %2507  ;;  %3037 = vrot.lane.b32.xlu0 %v5586_v50, %s4482_s12 }
 0x399   : > { %3736 = vst.msk [vmem:[%s5251_s9 + $0x12c] sm:$0xf] %vm1777_vm0, %v2508_v21 }
 0x39a   : > { %2652 = vrot.lane.b32.xlu1 %v5600_v37, %s4481_s10  ;;  %v2893_v20 = vpop.permute.xlu0 %2892 }
 0x39b   : > { %3831 = vst.msk [vmem:[%s5251_s9 + $0x1a8] sm:$0xf] %vm1777_vm0, %v2893_v20 }
 0x39c   : > { %v2770_v31 = vpop.permute.xlu1 %2769  ;;  %2142 = vrot.lane.b32.xlu0 %v5502_v29, %s4480_s16 }
 0x39d   : > { %3802 = vst.msk [vmem:[%s5318_s28 + $0x134] sm:$0xf] %vm1777_vm0, %v2770_v31 }
 0x39e   : > { %3039 = vrot.lane.b32.xlu1 %v5600_v37, %s4482_s12  ;;  %v2115_v50 = vpop.permute.xlu0 %2114 }
 0x39f   : > { %3637 = vst.msk [vmem:[%s5251_s9 + $0xa0] sm:$0xf] %vm1777_vm0, %v2115_v50 }
 0x3a0   : > { %v2895_v0 = vpop.permute.xlu1 %2894  ;;  %2392 = vrot.lane.b32.xlu0 %v5594_v33, %s4480_s16 }
 0x3a1   : > { %3832 = vst.msk [vmem:[%s5251_s9 + $0x1ac] sm:$0xf] %vm1777_vm0, %v2895_v0 }
 0x3a2   : > { %2144 = vrot.lane.b32.xlu1 %v5516_v23, %s4480_s16  ;;  %v2502_v8 = vpop.permute.xlu0 %2501 }
 0x3a3   : > { %3733 = vst.msk [vmem:[%s5251_s9 + $0x120] sm:$0xf] %vm1777_vm0, %v2502_v8 }
 0x3a4   : > { %v2117_v35 = vpop.permute.xlu1 %2116  ;;  %2529 = vrot.lane.b32.xlu0 %v5502_v29, %s4481_s10 }
 0x3a5   : > { %3638 = vst.msk [vmem:[%s5251_s9 + $0xa4] sm:$0xf] %vm1777_vm0, %v2117_v35 }
 0x3a6   : > { %2394 = vrot.lane.b32.xlu1 %v5608_v17, %s4480_s16  ;;  %v2889_v37 = vpop.permute.xlu0 %2888 }
 0x3a7   : > { %3829 = vst.msk [vmem:[%s5251_s9 + $0x1a0] sm:$0xf] %vm1777_vm0, %v2889_v37 }
 0x3a8   : > { %v2504_v7 = vpop.permute.xlu1 %2503  ;;  %2779 = vrot.lane.b32.xlu0 %v5594_v33, %s4481_s10 }
 0x3a9   : > { %3734 = vst.msk [vmem:[%s5251_s9 + $0x124] sm:$0xf] %vm1777_vm0, %v2504_v7 }
 0x3aa   : > { %2531 = vrot.lane.b32.xlu1 %v5516_v23, %s4481_s10  ;;  %v2256_v62 = vpop.permute.xlu0 %2255 }
 0x3ab   : > { %3675 = vst.msk [vmem:[%s5308_s26 + $0xb8] sm:$0xf] %vm1777_vm0, %v2256_v62 }
 0x3ac   : > { %v2891_v57 = vpop.permute.xlu1 %2890  ;;  %2916 = vrot.lane.b32.xlu0 %v5502_v29, %s4482_s12 }
 0x3ad   : > { %3830 = vst.msk [vmem:[%s5251_s9 + $0x1a4] sm:$0xf] %vm1777_vm0, %v2891_v57  ;;  %v7141_v57 = vld [vmem:[#allocation22_spill] sm:$0xff] }
 0x3ae   : > { %2781 = vrot.lane.b32.xlu1 %v5608_v17, %s4481_s10  ;;  %v2643_v54 = vpop.permute.xlu0 %2642 }
 0x3af   : > { %3771 = vst.msk [vmem:[%s5308_s26 + $0x138] sm:$0xf] %vm1777_vm0, %v2643_v54 }
 0x3b0   : > { %v2258_v40 = vpop.permute.xlu1 %2257  ;;  %2138 = vrot.lane.b32.xlu0 %v5510_v43, %s4480_s16 }
 0x3b1   : > { %3676 = vst.msk [vmem:[%s5308_s26 + $0xbc] sm:$0xf] %vm1777_vm0, %v2258_v40 }
 0x3b2   : > { %2918 = vrot.lane.b32.xlu1 %v5516_v23, %s4482_s12  ;;  %v3030_v29 = vpop.permute.xlu0 %3029 }
 0x3b3   : > { %3867 = vst.msk [vmem:[%s5308_s26 + $0x1b8] sm:$0xf] %vm1777_vm0, %v3030_v29 }
 0x3b4   : > { %v2645_v45 = vpop.permute.xlu1 %2644  ;;  %2525 = vrot.lane.b32.xlu0 %v5510_v43, %s4481_s10 }
 0x3b5   : > { %3772 = vst.msk [vmem:[%s5308_s26 + $0x13c] sm:$0xf] %vm1777_vm0, %v2645_v45 }
 0x3b6   : > { %2140 = vrot.lane.b32.xlu1 %v5524_v18, %s4480_s16  ;;  %v2127_v32 = vpop.permute.xlu0 %2126 }
 0x3b7   : > { %3643 = vst.msk [vmem:[%s5251_s9 + $0xb8] sm:$0xf] %vm1777_vm0, %v2127_v32 }
 0x3b8   : > { %v3032_v14 = vpop.permute.xlu1 %3031  ;;  %2912 = vrot.lane.b32.xlu0 %v5510_v43, %s4482_s12 }
 0x3b9   : > { %3868 = vst.msk [vmem:[%s5308_s26 + $0x1bc] sm:$0xf] %vm1777_vm0, %v3032_v14 }
 0x3ba   : > { %2527 = vrot.lane.b32.xlu1 %v5524_v18, %s4481_s10  ;;  %v2385_v23 = vpop.permute.xlu0 %2384 }
 0x3bb   : > { %3707 = vst.msk [vmem:[%s5318_s28 + $0xb8] sm:$0xf] %vm1777_vm0, %v2385_v23  ;;  %v7142_v23 = vld [vmem:[#allocation16_spill] sm:$0xff] }
 0x3bc   : > { %v2129_v48 = vpop.permute.xlu1 %2128  ;;  %2267 = vrot.lane.b32.xlu0 %v5642_v38, %s4480_s16 }
 0x3bd   : > { %3644 = vst.msk [vmem:[%s5251_s9 + $0xbc] sm:$0xf] %vm1777_vm0, %v2129_v48 }
 0x3be   : > { %2914 = vrot.lane.b32.xlu1 %v5524_v18, %s4482_s12  ;;  %v2514_v43 = vpop.permute.xlu0 %2513 }
 0x3bf   : > { %3739 = vst.msk [vmem:[%s5251_s9 + $0x138] sm:$0xf] %vm1777_vm0, %v2514_v43  ;;  %v7143_v43 = vld [vmem:[#allocation17_spill] sm:$0xff] }
 0x3c0   : > { %v2387_v58 = vpop.permute.xlu1 %2386  ;;  %2654 = vrot.lane.b32.xlu0 %v5642_v38, %s4481_s10 }
 0x3c1   : > { %3708 = vst.msk [vmem:[%s5318_s28 + $0xbc] sm:$0xf] %vm1777_vm0, %v2387_v58 }
 0x3c2   : > { %2269 = vrot.lane.b32.xlu1 %v5656_v5, %s4480_s16  ;;  %v2772_v49 = vpop.permute.xlu0 %2771 }
 0x3c3   : > { %3803 = vst.msk [vmem:[%s5318_s28 + $0x138] sm:$0xf] %vm1777_vm0, %v2772_v49 }
 0x3c4   : > { %v2516_v59 = vpop.permute.xlu1 %2515  ;;  %3041 = vrot.lane.b32.xlu0 %v5642_v38, %s4482_s12 }
 0x3c5   : > { %3740 = vst.msk [vmem:[%s5251_s9 + $0x13c] sm:$0xf] %vm1777_vm0, %v2516_v59 }
 0x3c6   : > { %2656 = vrot.lane.b32.xlu1 %v5656_v5, %s4481_s10  ;;  %v2901_v18 = vpop.permute.xlu0 %2900 }
 0x3c7   : > { %3835 = vst.msk [vmem:[%s5251_s9 + $0x1b8] sm:$0xf] %vm1777_vm0, %v2901_v18 }
 0x3c8   : > { %v2774_v25 = vpop.permute.xlu1 %2773  ;;  %2150 = vrot.lane.b32.xlu0 %v5558_v36, %s4480_s16 }
 0x3c9   : > { %3804 = vst.msk [vmem:[%s5318_s28 + $0x13c] sm:$0xf] %vm1777_vm0, %v2774_v25 }
 0x3ca   : > { %3043 = vrot.lane.b32.xlu1 %v5656_v5, %s4482_s12  ;;  %v2123_v38 = vpop.permute.xlu0 %2122 }
 0x3cb   : > { %3641 = vst.msk [vmem:[%s5251_s9 + $0xb0] sm:$0xf] %vm1777_vm0, %v2123_v38  ;;  %v7144_v38 = vld [vmem:[#allocation28_spill] sm:$0xff] }
 0x3cc   : > { %v2903_v56 = vpop.permute.xlu1 %2902  ;;  %2396 = vrot.lane.b32.xlu0 %v5650_v3, %s4480_s16 }
 0x3cd   : > { %3836 = vst.msk [vmem:[%s5251_s9 + $0x1bc] sm:$0xf] %vm1777_vm0, %v2903_v56 }
 0x3ce   : > { %2152 = vrot.lane.b32.xlu1 %v5572_v16, %s4480_s16  ;;  %v2510_v55 = vpop.permute.xlu0 %2509 }
 0x3cf   : > { %3737 = vst.msk [vmem:[%s5251_s9 + $0x130] sm:$0xf] %vm1777_vm0, %v2510_v55 }
 0x3d0   : > { %v2125_v61 = vpop.permute.xlu1 %2124  ;;  %2537 = vrot.lane.b32.xlu0 %v5558_v36, %s4481_s10 }
 0x3d1   : > { %3642 = vst.msk [vmem:[%s5251_s9 + $0xb4] sm:$0xf] %vm1777_vm0, %v2125_v61  ;;  %v7145_v61 = vld [vmem:[#allocation18_spill] sm:$0xff] }
 0x3d2   : > { %2398 = vrot.lane.b32.xlu1 %v5664_v46, %s4480_s16  ;;  %v2897_v5 = vpop.permute.xlu0 %2896 }
 0x3d3   : > { %3833 = vst.msk [vmem:[%s5251_s9 + $0x1b0] sm:$0xf] %vm1777_vm0, %v2897_v5 }
 0x3d4   : > { %v2512_v41 = vpop.permute.xlu1 %2511  ;;  %2783 = vrot.lane.b32.xlu0 %v5650_v3, %s4481_s10 }
 0x3d5   : > { %3738 = vst.msk [vmem:[%s5251_s9 + $0x134] sm:$0xf] %vm1777_vm0, %v2512_v41 }
 0x3d6   : > { %2539 = vrot.lane.b32.xlu1 %v5572_v16, %s4481_s10  ;;  %v2260_v51 = vpop.permute.xlu0 %2259 }
 0x3d7   : > { %3677 = vst.msk [vmem:[%s5308_s26 + $0xc0] sm:$0xf] %vm1777_vm0, %v2260_v51  ;;  %v7146_v51 = vld [vmem:[#allocation27_spill] sm:$0xff] }
 0x3d8   : > { %v2899_v34 = vpop.permute.xlu1 %2898  ;;  %2924 = vrot.lane.b32.xlu0 %v5558_v36, %s4482_s12 }
 0x3d9   : > { %3834 = vst.msk [vmem:[%s5251_s9 + $0x1b4] sm:$0xf] %vm1777_vm0, %v2899_v34  ;;  %v7147_v34 = vld [vmem:[#allocation20_spill] sm:$0xff] }
 0x3da   : > { %2785 = vrot.lane.b32.xlu1 %v5664_v46, %s4481_s10  ;;  %v2647_v11 = vpop.permute.xlu0 %2646 }
 0x3db   : > { %3773 = vst.msk [vmem:[%s5308_s26 + $0x140] sm:$0xf] %vm1777_vm0, %v2647_v11 }
 0x3dc   : > { %v2262_v44 = vpop.permute.xlu1 %2261  ;;  %2146 = vrot.lane.b32.xlu0 %v5566_v26, %s4480_s16 }
 0x3dd   : > { %3678 = vst.msk [vmem:[%s5308_s26 + $0xc4] sm:$0xf] %vm1777_vm0, %v2262_v44 }
 0x3de   : > { %2926 = vrot.lane.b32.xlu1 %v5572_v16, %s4482_s12  ;;  %v3034_v36 = vpop.permute.xlu0 %3033 }
 0x3df   : > { %3869 = vst.msk [vmem:[%s5308_s26 + $0x1c0] sm:$0xf] %vm1777_vm0, %v3034_v36  ;;  %v7148_v36 = vld [vmem:[#allocation29_spill] sm:$0xff] }
 0x3e0   : > { %v2649_v21 = vpop.permute.xlu1 %2648  ;;  %2533 = vrot.lane.b32.xlu0 %v5566_v26, %s4481_s10 }
 0x3e1   : > { %3774 = vst.msk [vmem:[%s5308_s26 + $0x144] sm:$0xf] %vm1777_vm0, %v2649_v21 }
 0x3e2   : > { %2148 = vrot.lane.b32.xlu1 %v5580_v39, %s4480_s16  ;;  %v2135_v20 = vpop.permute.xlu0 %2134 }
 0x3e3   : > { %3647 = vst.msk [vmem:[%s5251_s9 + $0xc8] sm:$0xf] %vm1777_vm0, %v2135_v20 }
 0x3e4   : > { %v3036_v31 = vpop.permute.xlu1 %3035  ;;  %2920 = vrot.lane.b32.xlu0 %v5566_v26, %s4482_s12 }
 0x3e5   : > { %3870 = vst.msk [vmem:[%s5308_s26 + $0x1c4] sm:$0xf] %vm1777_vm0, %v3036_v31 }
 0x3e6   : > { %2535 = vrot.lane.b32.xlu1 %v5580_v39, %s4481_s10  ;;  %v2389_v16 = vpop.permute.xlu0 %2388 }
 0x3e7   : > { %3709 = vst.msk [vmem:[%s5318_s28 + $0xc0] sm:$0xf] %vm1777_vm0, %v2389_v16 }
 0x3e8   : > { %v2137_v50 = vpop.permute.xlu1 %2136  ;;  %2271 = vrot.lane.b32.xlu0 %v5698_v28, %s4480_s16 }
 0x3e9   : > { %3648 = vst.msk [vmem:[%s5251_s9 + $0xcc] sm:$0xf] %vm1777_vm0, %v2137_v50 }
 0x3ea   : > { %2922 = vrot.lane.b32.xlu1 %v5580_v39, %s4482_s12  ;;  %v2522_v26 = vpop.permute.xlu0 %2521 }
 0x3eb   : > { %3743 = vst.msk [vmem:[%s5251_s9 + $0x148] sm:$0xf] %vm1777_vm0, %v2522_v26 }
 0x3ec   : > { %v2391_v0 = vpop.permute.xlu1 %2390  ;;  %2658 = vrot.lane.b32.xlu0 %v5698_v28, %s4481_s10 }
 0x3ed   : > { %3710 = vst.msk [vmem:[%s5318_s28 + $0xc4] sm:$0xf] %vm1777_vm0, %v2391_v0  ;;  %v7149_v0 = vld [vmem:[#allocation19_spill] sm:$0xff] }
 0x3ee   : > { %2273 = vrot.lane.b32.xlu1 %v5712_v6, %s4480_s16  ;;  %v2776_v8 = vpop.permute.xlu0 %2775 }
 0x3ef   : > { %3805 = vst.msk [vmem:[%s5318_s28 + $0x140] sm:$0xf] %vm1777_vm0, %v2776_v8 }
 0x3f0   : > { %v2524_v35 = vpop.permute.xlu1 %2523  ;;  %2158 = vrot.lane.b32.xlu0 %v5614_v52, %s4480_s16 }
 0x3f1   : > { %3744 = vst.msk [vmem:[%s5251_s9 + $0x14c] sm:$0xf] %vm1777_vm0, %v2524_v35 }
 0x3f2   : > { %2660 = vrot.lane.b32.xlu1 %v5712_v6, %s4481_s10  ;;  %v2909_v39 = vpop.permute.xlu0 %2908 }
 0x3f3   : > { %3839 = vst.msk [vmem:[%s5251_s9 + $0x1c8] sm:$0xf] %vm1777_vm0, %v2909_v39  ;;  %v7150_v39 = vld [vmem:[#allocation21_spill] sm:$0xff] }
 0x3f4   : > { %v2778_v37 = vpop.permute.xlu1 %2777  ;;  %2400 = vrot.lane.b32.xlu0 %v5706_v24, %s4480_s16 }
 0x3f5   : > { %3806 = vst.msk [vmem:[%s5318_s28 + $0x144] sm:$0xf] %vm1777_vm0, %v2778_v37 }
 0x3f6   : > { %2160 = vrot.lane.b32.xlu1 %v5628_v19, %s4480_s16  ;;  %v2131_v7 = vpop.permute.xlu0 %2130 }
 0x3f7   : > { %3645 = vst.msk [vmem:[%s5251_s9 + $0xc0] sm:$0xf] %vm1777_vm0, %v2131_v7 }
 0x3f8   : > { %v2911_v62 = vpop.permute.xlu1 %2910  ;;  %2545 = vrot.lane.b32.xlu0 %v5614_v52, %s4481_s10 }
 0x3f9   : > { %3840 = vst.msk [vmem:[%s5251_s9 + $0x1cc] sm:$0xf] %vm1777_vm0, %v2911_v62 }
 0x3fa   : > { %2402 = vrot.lane.b32.xlu1 %v7141_v57, %s4480_s16  ;;  %v2518_v54 = vpop.permute.xlu0 %2517 }
 0x3fb   : > { %3741 = vst.msk [vmem:[%s5251_s9 + $0x140] sm:$0xf] %vm1777_vm0, %v2518_v54 }
 0x3fc   : > { %v2133_v40 = vpop.permute.xlu1 %2132  ;;  %2787 = vrot.lane.b32.xlu0 %v5706_v24, %s4481_s10 }
 0x3fd   : > { %3646 = vst.msk [vmem:[%s5251_s9 + $0xc4] sm:$0xf] %vm1777_vm0, %v2133_v40 }
 0x3fe   : > { %2547 = vrot.lane.b32.xlu1 %v5628_v19, %s4481_s10  ;;  %v2905_v29 = vpop.permute.xlu0 %2904 }
 0x3ff   : > { %3837 = vst.msk [vmem:[%s5251_s9 + $0x1c0] sm:$0xf] %vm1777_vm0, %v2905_v29 }
 0x400   : > { %v2520_v45 = vpop.permute.xlu1 %2519  ;;  %2932 = vrot.lane.b32.xlu0 %v5614_v52, %s4482_s12 }
 0x401   : > { %3742 = vst.msk [vmem:[%s5251_s9 + $0x144] sm:$0xf] %vm1777_vm0, %v2520_v45  ;;  %v7151_v45 = vld [vmem:[#allocation23_spill] sm:$0xff] }
 0x402   : > { %2789 = vrot.lane.b32.xlu1 %v7141_v57, %s4481_s10  ;;  %v2264_v32 = vpop.permute.xlu0 %2263 }
 0x403   : > { %3679 = vst.msk [vmem:[%s5308_s26 + $0xc8] sm:$0xf] %vm1777_vm0, %v2264_v32 }
 0x404   : > { %v2907_v14 = vpop.permute.xlu1 %2906  ;;  %2154 = vrot.lane.b32.xlu0 %v7142_v23, %s4480_s16 }
 0x405   : > { %3838 = vst.msk [vmem:[%s5251_s9 + $0x1c4] sm:$0xf] %vm1777_vm0, %v2907_v14 }
 0x406   : > { %2934 = vrot.lane.b32.xlu1 %v5628_v19, %s4482_s12  ;;  %v2651_v52 = vpop.permute.xlu0 %2650 }
 0x407   : > { %3775 = vst.msk [vmem:[%s5308_s26 + $0x148] sm:$0xf] %vm1777_vm0, %v2651_v52 }
 0x408   : > { %v2266_v48 = vpop.permute.xlu1 %2265  ;;  %2541 = vrot.lane.b32.xlu0 %v7142_v23, %s4481_s10 }
 0x409   : > { %3680 = vst.msk [vmem:[%s5308_s26 + $0xcc] sm:$0xf] %vm1777_vm0, %v2266_v48 }
 0x40a   : > { %2156 = vrot.lane.b32.xlu1 %v7143_v43, %s4480_s16  ;;  %v3038_v58 = vpop.permute.xlu0 %3037 }
 0x40b   : > { %3871 = vst.msk [vmem:[%s5308_s26 + $0x1c8] sm:$0xf] %vm1777_vm0, %v3038_v58 }
 0x40c   : > { %v2653_v49 = vpop.permute.xlu1 %2652  ;;  %2928 = vrot.lane.b32.xlu0 %v7142_v23, %s4482_s12  ;;  %v7152_v23 = vld [vmem:[#allocation25_spill] sm:$0xff] }
 0x40d   : > { %3776 = vst.msk [vmem:[%s5308_s26 + $0x14c] sm:$0xf] %vm1777_vm0, %v2653_v49 }
 0x40e   : > { %2543 = vrot.lane.b32.xlu1 %v7143_v43, %s4481_s10  ;;  %v2143_v19 = vpop.permute.xlu0 %2142 }
 0x40f   : > { %3651 = vst.msk [vmem:[%s5251_s9 + $0xd8] sm:$0xf] %vm1777_vm0, %v2143_v19 }
 0x410   : > { %v3040_v59 = vpop.permute.xlu1 %3039  ;;  %2275 = vrot.lane.b32.xlu0 %v5754_v10, %s4480_s16 }
 0x411   : > { %3872 = vst.msk [vmem:[%s5308_s26 + $0x1cc] sm:$0xf] %vm1777_vm0, %v3040_v59 }
 0x412   : > { %2930 = vrot.lane.b32.xlu1 %v7143_v43, %s4482_s12  ;;  %v2393_v18 = vpop.permute.xlu0 %2392  ;;  %v7153_v43 = vld [vmem:[#allocation34_spill] sm:$0xff] }
 0x413   : > { %3711 = vst.msk [vmem:[%s5318_s28 + $0xc8] sm:$0xf] %vm1777_vm0, %v2393_v18 }
 0x414   : > { %v2145_v25 = vpop.permute.xlu1 %2144  ;;  %2662 = vrot.lane.b32.xlu0 %v5754_v10, %s4481_s10 }
 0x415   : > { %3652 = vst.msk [vmem:[%s5251_s9 + $0xdc] sm:$0xf] %vm1777_vm0, %v2145_v25 }
 0x416   : > { %2277 = vrot.lane.b32.xlu1 %v7144_v38, %s4480_s16  ;;  %v2530_v56 = vpop.permute.xlu0 %2529 }
 0x417   : > { %3747 = vst.msk [vmem:[%s5251_s9 + $0x158] sm:$0xf] %vm1777_vm0, %v2530_v56  ;;  %v7154_v56 = vld [vmem:[#allocation24_spill] sm:$0xff] }
 0x418   : > { %v2395_v55 = vpop.permute.xlu1 %2394  ;;  %2227 = vrot.lane.b32.xlu0 %v7145_v61, %s4480_s16 }
 0x419   : > { %3712 = vst.msk [vmem:[%s5318_s28 + $0xcc] sm:$0xf] %vm1777_vm0, %v2395_v55 }
 0x41a   : > { %2664 = vrot.lane.b32.xlu1 %v7144_v38, %s4481_s10  ;;  %v2780_v5 = vpop.permute.xlu0 %2779 }
 0x41b   : > { %3807 = vst.msk [vmem:[%s5318_s28 + $0x148] sm:$0xf] %vm1777_vm0, %v2780_v5  ;;  %v7155_v5 = vld [vmem:[#allocation26_spill] sm:$0xff] }
 0x41c   : > { %v2532_v41 = vpop.permute.xlu1 %2531  ;;  %2404 = vrot.lane.b32.xlu0 %v7146_v51, %s4480_s16 }
 0x41d   : > { %3748 = vst.msk [vmem:[%s5251_s9 + $0x15c] sm:$0xf] %vm1777_vm0, %v2532_v41 }
 0x41e   : > { %2229 = vrot.lane.b32.xlu1 %v7147_v34, %s4480_s16  ;;  %v2917_v11 = vpop.permute.xlu0 %2916 }
 0x41f   : > { %3843 = vst.msk [vmem:[%s5251_s9 + $0x1d8] sm:$0xf] %vm1777_vm0, %v2917_v11 }
 0x420   : > { %v2782_v44 = vpop.permute.xlu1 %2781  ;;  %2614 = vrot.lane.b32.xlu0 %v7145_v61, %s4481_s10 }
 0x421   : > { %3808 = vst.msk [vmem:[%s5318_s28 + $0x14c] sm:$0xf] %vm1777_vm0, %v2782_v44 }
 0x422   : > { %2406 = vrot.lane.b32.xlu1 %v7148_v36, %s4480_s16  ;;  %v2139_v21 = vpop.permute.xlu0 %2138 }
 0x423   : > { %3649 = vst.msk [vmem:[%s5251_s9 + $0xd0] sm:$0xf] %vm1777_vm0, %v2139_v21 }
 0x424   : > { %v2919_v20 = vpop.permute.xlu1 %2918  ;;  %2791 = vrot.lane.b32.xlu0 %v7146_v51, %s4481_s10 }
 0x425   : > { %3844 = vst.msk [vmem:[%s5251_s9 + $0x1dc] sm:$0xf] %vm1777_vm0, %v2919_v20 }
 0x426   : > { %2616 = vrot.lane.b32.xlu1 %v7147_v34, %s4481_s10  ;;  %v2526_v31 = vpop.permute.xlu0 %2525 }
 0x427   : > { %3745 = vst.msk [vmem:[%s5251_s9 + $0x150] sm:$0xf] %vm1777_vm0, %v2526_v31  ;;  %v7156_v31 = vld [vmem:[#allocation30_spill] sm:$0xff] }
 0x428   : > { %v2141_v16 = vpop.permute.xlu1 %2140  ;;  %3001 = vrot.lane.b32.xlu0 %v7145_v61, %s4482_s12 }
 0x429   : > { %3650 = vst.msk [vmem:[%s5251_s9 + $0xd4] sm:$0xf] %vm1777_vm0, %v2141_v16 }
 0x42a   : > { %2793 = vrot.lane.b32.xlu1 %v7148_v36, %s4481_s10  ;;  %v2913_v50 = vpop.permute.xlu0 %2912 }
 0x42b   : > { %3841 = vst.msk [vmem:[%s5251_s9 + $0x1d0] sm:$0xf] %vm1777_vm0, %v2913_v50 }
 0x42c   : > { %v2528_v26 = vpop.permute.xlu1 %2527  ;;  %2356 = vrot.lane.b32.xlu0 %v7149_v0, %s4480_s16 }
 0x42d   : > { %3746 = vst.msk [vmem:[%s5251_s9 + $0x154] sm:$0xf] %vm1777_vm0, %v2528_v26  ;;  %v7157_v26 = vld [vmem:[#allocation39_spill] sm:$0xff] }
 0x42e   : > { %3003 = vrot.lane.b32.xlu1 %v7147_v34, %s4482_s12  ;;  %v2268_v8 = vpop.permute.xlu0 %2267 }
 0x42f   : > { %3681 = vst.msk [vmem:[%s5308_s26 + $0xd0] sm:$0xf] %vm1777_vm0, %v2268_v8  ;;  %v7158_v8 = vld [vmem:[#allocation32_spill] sm:$0xff] }
 0x430   : > { %v2915_v35 = vpop.permute.xlu1 %2914  ;;  %2743 = vrot.lane.b32.xlu0 %v7149_v0, %s4481_s10 }
 0x431   : > { %3842 = vst.msk [vmem:[%s5251_s9 + $0x1d4] sm:$0xf] %vm1777_vm0, %v2915_v35 }
 0x432   : > { %2358 = vrot.lane.b32.xlu1 %v7150_v39, %s4480_s16  ;;  %v2655_v37 = vpop.permute.xlu0 %2654 }
 0x433   : > { %3777 = vst.msk [vmem:[%s5308_s26 + $0x150] sm:$0xf] %vm1777_vm0, %v2655_v37 }
 0x434   : > { %v2270_v7 = vpop.permute.xlu1 %2269  ;;  %2279 = vrot.lane.b32.xlu0 %v5810_v47, %s4480_s16 }
 0x435   : > { %3682 = vst.msk [vmem:[%s5308_s26 + $0xd4] sm:$0xf] %vm1777_vm0, %v2270_v7  ;;  %v7159_v7 = vld [vmem:[#allocation40_spill] sm:$0xff] }
 0x436   : > { %2745 = vrot.lane.b32.xlu1 %v7150_v39, %s4481_s10  ;;  %v3042_v62 = vpop.permute.xlu0 %3041 }
 0x437   : > { %3873 = vst.msk [vmem:[%s5308_s26 + $0x1d0] sm:$0xf] %vm1777_vm0, %v3042_v62 }
 0x438   : > { %v2657_v54 = vpop.permute.xlu1 %2656  ;;  %2666 = vrot.lane.b32.xlu0 %v5810_v47, %s4481_s10 }
 0x439   : > { %3778 = vst.msk [vmem:[%s5308_s26 + $0x154] sm:$0xf] %vm1777_vm0, %v2657_v54 }
 0x43a   : > { %2281 = vrot.lane.b32.xlu1 %v5824_v9, %s4480_s16  ;;  %v2151_v40 = vpop.permute.xlu0 %2150 }
 0x43b   : > { %3655 = vst.msk [vmem:[%s5251_s9 + $0xe8] sm:$0xf] %vm1777_vm0, %v2151_v40 }
 0x43c   : > { %v3044_v29 = vpop.permute.xlu1 %3043  ;;  %2231 = vrot.lane.b32.xlu0 %v7151_v45, %s4480_s16 }
 0x43d   : > { %3874 = vst.msk [vmem:[%s5308_s26 + $0x1d4] sm:$0xf] %vm1777_vm0, %v3044_v29 }
 0x43e   : > { %2668 = vrot.lane.b32.xlu1 %v5824_v9, %s4481_s10  ;;  %v2397_v32 = vpop.permute.xlu0 %2396 }
 0x43f   : > { %3713 = vst.msk [vmem:[%s5318_s28 + $0xd0] sm:$0xf] %vm1777_vm0, %v2397_v32 }
 0x440   : > { %v2153_v14 = vpop.permute.xlu1 %2152  ;;  %2408 = vrot.lane.b32.xlu0 %v5818_v60, %s4480_s16 }
 0x441   : > { %3656 = vst.msk [vmem:[%s5251_s9 + $0xec] sm:$0xf] %vm1777_vm0, %v2153_v14  ;;  %v7160_v14 = vld [vmem:[#allocation31_spill] sm:$0xff] }
 0x442   : > { %2233 = vrot.lane.b32.xlu1 %v7152_v23, %s4480_s16  ;;  %v2538_v52 = vpop.permute.xlu0 %2537 }
 0x443   : > { %3751 = vst.msk [vmem:[%s5251_s9 + $0x168] sm:$0xf] %vm1777_vm0, %v2538_v52 }
 0x444   : > { %v2399_v48 = vpop.permute.xlu1 %2398  ;;  %2618 = vrot.lane.b32.xlu0 %v7151_v45, %s4481_s10 }
 0x445   : > { %3714 = vst.msk [vmem:[%s5318_s28 + $0xd4] sm:$0xf] %vm1777_vm0, %v2399_v48  ;;  %v7161_v48 = vld [vmem:[#allocation33_spill] sm:$0xff] }
 0x446   : > { %2410 = vrot.lane.b32.xlu1 %v7153_v43, %s4480_s16  ;;  %v2784_v58 = vpop.permute.xlu0 %2783 }
 0x447   : > { %3809 = vst.msk [vmem:[%s5318_s28 + $0x150] sm:$0xf] %vm1777_vm0, %v2784_v58 }
 0x448   : > { %v2540_v49 = vpop.permute.xlu1 %2539  ;;  %2795 = vrot.lane.b32.xlu0 %v5818_v60, %s4481_s10 }
 0x449   : > { %3752 = vst.msk [vmem:[%s5251_s9 + $0x16c] sm:$0xf] %vm1777_vm0, %v2540_v49 }
 0x44a   : > { %2620 = vrot.lane.b32.xlu1 %v7152_v23, %s4481_s10  ;;  %v2925_v19 = vpop.permute.xlu0 %2924 }
 0x44b   : > { %3847 = vst.msk [vmem:[%s5251_s9 + $0x1e8] sm:$0xf] %vm1777_vm0, %v2925_v19 }
 0x44c   : > { %v2786_v59 = vpop.permute.xlu1 %2785  ;;  %3005 = vrot.lane.b32.xlu0 %v7151_v45, %s4482_s12 }
 0x44d   : > { %3810 = vst.msk [vmem:[%s5318_s28 + $0x154] sm:$0xf] %vm1777_vm0, %v2786_v59 }
 0x44e   : > { %2797 = vrot.lane.b32.xlu1 %v7153_v43, %s4481_s10  ;;  %v2147_v18 = vpop.permute.xlu0 %2146 }
 0x44f   : > { %3653 = vst.msk [vmem:[%s5251_s9 + $0xe0] sm:$0xf] %vm1777_vm0, %v2147_v18 }
 0x450   : > { %v2927_v25 = vpop.permute.xlu1 %2926  ;;  %2360 = vrot.lane.b32.xlu0 %v7154_v56, %s4480_s16 }
 0x451   : > { %3848 = vst.msk [vmem:[%s5251_s9 + $0x1ec] sm:$0xf] %vm1777_vm0, %v2927_v25 }
 0x452   : > { %3007 = vrot.lane.b32.xlu1 %v7152_v23, %s4482_s12  ;;  %v2534_v55 = vpop.permute.xlu0 %2533 }
 0x453   : > { %3749 = vst.msk [vmem:[%s5251_s9 + $0x160] sm:$0xf] %vm1777_vm0, %v2534_v55  ;;  %v7162_v55 = vld [vmem:[#allocation35_spill] sm:$0xff] }
 0x454   : > { %v2149_v61 = vpop.permute.xlu1 %2148  ;;  %2747 = vrot.lane.b32.xlu0 %v7154_v56, %s4481_s10 }
 0x455   : > { %3654 = vst.msk [vmem:[%s5251_s9 + $0xe4] sm:$0xf] %vm1777_vm0, %v2149_v61 }
 0x456   : > { %2362 = vrot.lane.b32.xlu1 %v7155_v5, %s4480_s16  ;;  %v2921_v41 = vpop.permute.xlu0 %2920 }
 0x457   : > { %3845 = vst.msk [vmem:[%s5251_s9 + $0x1e0] sm:$0xf] %vm1777_vm0, %v2921_v41 }
 0x458   : > { %v2536_v34 = vpop.permute.xlu1 %2535  ;;  %2283 = vrot.lane.b32.xlu0 %v5866_v13, %s4480_s16 }
 0x459   : > { %3750 = vst.msk [vmem:[%s5251_s9 + $0x164] sm:$0xf] %vm1777_vm0, %v2536_v34  ;;  %v7163_v34 = vld [vmem:[#allocation37_spill] sm:$0xff] }
 0x45a   : > { %2749 = vrot.lane.b32.xlu1 %v7155_v5, %s4481_s10  ;;  %v2272_v11 = vpop.permute.xlu0 %2271 }
 0x45b   : > { %3683 = vst.msk [vmem:[%s5308_s26 + $0xd8] sm:$0xf] %vm1777_vm0, %v2272_v11 }
 0x45c   : > { %v2923_v44 = vpop.permute.xlu1 %2922  ;;  %2670 = vrot.lane.b32.xlu0 %v5866_v13, %s4481_s10 }
 0x45d   : > { %3846 = vst.msk [vmem:[%s5251_s9 + $0x1e4] sm:$0xf] %vm1777_vm0, %v2923_v44 }
 0x45e   : > { %2285 = vrot.lane.b32.xlu1 %v5880_v22, %s4480_s16  ;;  %v2659_v21 = vpop.permute.xlu0 %2658 }
 0x45f   : > { %3779 = vst.msk [vmem:[%s5308_s26 + $0x158] sm:$0xf] %vm1777_vm0, %v2659_v21 }
 0x460   : > { %v2274_v20 = vpop.permute.xlu1 %2273  ;;  %2235 = vrot.lane.b32.xlu0 %v7156_v31, %s4480_s16 }
 0x461   : > { %3684 = vst.msk [vmem:[%s5308_s26 + $0xdc] sm:$0xf] %vm1777_vm0, %v2274_v20 }
 0x462   : > { %2672 = vrot.lane.b32.xlu1 %v5880_v22, %s4481_s10  ;;  %v2159_v16 = vpop.permute.xlu0 %2158 }
 0x463   : > { %3659 = vst.msk [vmem:[%s5251_s9 + $0xf8] sm:$0xf] %vm1777_vm0, %v2159_v16 }
 0x464   : > { %v2661_v50 = vpop.permute.xlu1 %2660  ;;  %2412 = vrot.lane.b32.xlu0 %v7157_v26, %s4480_s16 }
 0x465   : > { %3780 = vst.msk [vmem:[%s5308_s26 + $0x15c] sm:$0xf] %vm1777_vm0, %v2661_v50 }
 0x466   : > { %2237 = vrot.lane.b32.xlu1 %v7158_v8, %s4480_s16  ;;  %v2401_v35 = vpop.permute.xlu0 %2400 }
 0x467   : > { %3715 = vst.msk [vmem:[%s5318_s28 + $0xd8] sm:$0xf] %vm1777_vm0, %v2401_v35  ;;  %v7164_v35 = vld [vmem:[#allocation36_spill] sm:$0xff] }
 0x468   : > { %v2161_v37 = vpop.permute.xlu1 %2160  ;;  %2622 = vrot.lane.b32.xlu0 %v7156_v31, %s4481_s10 }
 0x469   : > { %3660 = vst.msk [vmem:[%s5251_s9 + $0xfc] sm:$0xf] %vm1777_vm0, %v2161_v37 }
 0x46a   : > { %2414 = vrot.lane.b32.xlu1 %v7159_v7, %s4480_s16  ;;  %v2546_v62 = vpop.permute.xlu0 %2545 }
 0x46b   : > { %3755 = vst.msk [vmem:[%s5251_s9 + $0x178] sm:$0xf] %vm1777_vm0, %v2546_v62 }
 0x46c   : > { %v2403_v54 = vpop.permute.xlu1 %2402  ;;  %2799 = vrot.lane.b32.xlu0 %v7157_v26, %s4481_s10 }
 0x46d   : > { %3716 = vst.msk [vmem:[%s5318_s28 + $0xdc] sm:$0xf] %vm1777_vm0, %v2403_v54  ;;  %v7165_v54 = vld [vmem:[#allocation38_spill] sm:$0xff] }
 0x46e   : > { %2624 = vrot.lane.b32.xlu1 %v7158_v8, %s4481_s10  ;;  %v2788_v40 = vpop.permute.xlu0 %2787 }
 0x46f   : > { %3811 = vst.msk [vmem:[%s5318_s28 + $0x158] sm:$0xf] %vm1777_vm0, %v2788_v40 }
 0x470   : > { %v2548_v29 = vpop.permute.xlu1 %2547  ;;  %3009 = vrot.lane.b32.xlu0 %v7156_v31, %s4482_s12 }
 0x471   : > { %3756 = vst.msk [vmem:[%s5251_s9 + $0x17c] sm:$0xf] %vm1777_vm0, %v2548_v29 }
 0x472   : > { %2801 = vrot.lane.b32.xlu1 %v7159_v7, %s4481_s10  ;;  %v2933_v45 = vpop.permute.xlu0 %2932 }
 0x473   : > { %3851 = vst.msk [vmem:[%s5251_s9 + $0x1f8] sm:$0xf] %vm1777_vm0, %v2933_v45 }
 0x474   : > { %v2790_v32 = vpop.permute.xlu1 %2789  ;;  %2364 = vrot.lane.b32.xlu0 %v7160_v14, %s4480_s16 }
 0x475   : > { %3812 = vst.msk [vmem:[%s5318_s28 + $0x15c] sm:$0xf] %vm1777_vm0, %v2790_v32 }
 0x476   : > { %3011 = vrot.lane.b32.xlu1 %v7158_v8, %s4482_s12  ;;  %v2155_v23 = vpop.permute.xlu0 %2154 }
 0x477   : > { %3657 = vst.msk [vmem:[%s5251_s9 + $0xf0] sm:$0xf] %vm1777_vm0, %v2155_v23 }
 0x478   : > { %v2935_v52 = vpop.permute.xlu1 %2934  ;;  %2751 = vrot.lane.b32.xlu0 %v7160_v14, %s4481_s10 }
 0x479   : > { %3852 = vst.msk [vmem:[%s5251_s9 + $0x1fc] sm:$0xf] %vm1777_vm0, %v2935_v52 }
 0x47a   : > { %2366 = vrot.lane.b32.xlu1 %v7161_v48, %s4480_s16  ;;  %v2542_v58 = vpop.permute.xlu0 %2541 }
 0x47b   : > { %3753 = vst.msk [vmem:[%s5251_s9 + $0x170] sm:$0xf] %vm1777_vm0, %v2542_v58 }
 0x47c   : > { %v2157_v49 = vpop.permute.xlu1 %2156  ;;  %2287 = vrot.lane.b32.xlu0 %v5901_v4, %s4480_s16 }
 0x47d   : > { %3658 = vst.msk [vmem:[%s5251_s9 + $0xf4] sm:$0xf] %vm1777_vm0, %v2157_v49 }
 0x47e   : > { %2753 = vrot.lane.b32.xlu1 %v7161_v48, %s4481_s10  ;;  %v2929_v19 = vpop.permute.xlu0 %2928 }
 0x47f   : > { %3849 = vst.msk [vmem:[%s5251_s9 + $0x1f0] sm:$0xf] %vm1777_vm0, %v2929_v19  ;;  %v7168_v19 = vld [vmem:[#allocation13_spill] sm:$0xff] }
 0x480   : > { %v2544_v59 = vpop.permute.xlu1 %2543  ;;  %2674 = vrot.lane.b32.xlu0 %v5901_v4, %s4481_s10 }
 0x481   : > { %3754 = vst.msk [vmem:[%s5251_s9 + $0x174] sm:$0xf] %vm1777_vm0, %v2544_v59 }
 0x482   : > { %2289 = vrot.lane.b32.xlu1 %v5912_v1, %s4480_s16  ;;  %v2276_v18 = vpop.permute.xlu0 %2275 }
 0x483   : > { %3685 = vst.msk [vmem:[%s5308_s26 + $0xe0] sm:$0xf] %vm1777_vm0, %v2276_v18 }
 0x484   : > { %v2931_v25 = vpop.permute.xlu1 %2930  ;;  %2239 = vrot.lane.b32.xlu0 %v7162_v55, %s4480_s16 }
 0x485   : > { %3850 = vst.msk [vmem:[%s5251_s9 + $0x1f4] sm:$0xf] %vm1777_vm0, %v2931_v25  ;;  %v7169_v25 = vld [vmem:[#allocation15_spill] sm:$0xff] }
 0x486   : > { %2676 = vrot.lane.b32.xlu1 %v5912_v1, %s4481_s10  ;;  %v2663_v61 = vpop.permute.xlu0 %2662 }
 0x487   : > { %3781 = vst.msk [vmem:[%s5308_s26 + $0x160] sm:$0xf] %vm1777_vm0, %v2663_v61 }
 0x488   : > { %v2278_v41 = vpop.permute.xlu1 %2277  ;;  %2416 = vrot.lane.b32.xlu0 %v5906_v27, %s4480_s16 }
 0x489   : > { %3686 = vst.msk [vmem:[%s5308_s26 + $0xe4] sm:$0xf] %vm1777_vm0, %v2278_v41 }
 0x48a   : > { %2241 = vrot.lane.b32.xlu1 %v7163_v34, %s4480_s16  ;;  %v2228_v11 = vpop.permute.xlu0 %2227 }
 0x48b   : > { %3661 = vst.msk [vmem:[%s5308_s26 + $0x80] sm:$0xf] %vm1777_vm0, %v2228_v11 }
 0x48c   : > { %v2665_v44 = vpop.permute.xlu1 %2664  ;;  %2626 = vrot.lane.b32.xlu0 %v7162_v55, %s4481_s10 }
 0x48d   : > { %3782 = vst.msk [vmem:[%s5308_s26 + $0x164] sm:$0xf] %vm1777_vm0, %v2665_v44 }
 0x48e   : > { %2418 = vrot.lane.b32.xlu1 %v5919_v63, %s4480_s16  ;;  %v2405_v21 = vpop.permute.xlu0 %2404 }
 0x48f   : > { %3717 = vst.msk [vmem:[%s5318_s28 + $0xe0] sm:$0xf] %vm1777_vm0, %v2405_v21 }
 0x490   : > { %v2230_v20 = vpop.permute.xlu1 %2229  ;;  %2803 = vrot.lane.b32.xlu0 %v5906_v27, %s4481_s10 }
 0x491   : > { %3662 = vst.msk [vmem:[%s5308_s26 + $0x84] sm:$0xf] %vm1777_vm0, %v2230_v20 }
 0x492   : > { %2628 = vrot.lane.b32.xlu1 %v7163_v34, %s4481_s10  ;;  %v2615_v31 = vpop.permute.xlu0 %2614 }
 0x493   : > { %3757 = vst.msk [vmem:[%s5308_s26 + $0x100] sm:$0xf] %vm1777_vm0, %v2615_v31 }
 0x494   : > { %v2407_v16 = vpop.permute.xlu1 %2406  ;;  %3013 = vrot.lane.b32.xlu0 %v7162_v55, %s4482_s12 }
 0x495   : > { %3718 = vst.msk [vmem:[%s5318_s28 + $0xe4] sm:$0xf] %vm1777_vm0, %v2407_v16 }
 0x496   : > { %2805 = vrot.lane.b32.xlu1 %v5919_v63, %s4481_s10  ;;  %v2792_v50 = vpop.permute.xlu0 %2791 }
 0x497   : > { %3813 = vst.msk [vmem:[%s5318_s28 + $0x160] sm:$0xf] %vm1777_vm0, %v2792_v50 }
 0x498   : > { %v2617_v8 = vpop.permute.xlu1 %2616  ;;  %2368 = vrot.lane.b32.xlu0 %v7164_v35, %s4480_s16 }
 0x499   : > { %3758 = vst.msk [vmem:[%s5308_s26 + $0x104] sm:$0xf] %vm1777_vm0, %v2617_v8 }
 0x49a   : > { %3015 = vrot.lane.b32.xlu1 %v7163_v34, %s4482_s12  ;;  %v3002_v37 = vpop.permute.xlu0 %3001 }
 0x49b   : > { %3853 = vst.msk [vmem:[%s5308_s26 + $0x180] sm:$0xf] %vm1777_vm0, %v3002_v37 }
 0x49c   : > { %v2794_v62 = vpop.permute.xlu1 %2793  ;;  %2755 = vrot.lane.b32.xlu0 %v7164_v35, %s4481_s10 }
 0x49d   : > { %3814 = vst.msk [vmem:[%s5318_s28 + $0x164] sm:$0xf] %vm1777_vm0, %v2794_v62 }
 0x49e   : > { %2370 = vrot.lane.b32.xlu1 %v7165_v54, %s4480_s16  ;;  %v2357_v40 = vpop.permute.xlu0 %2356 }
 0x49f   : > { %3693 = vst.msk [vmem:[%s5318_s28 + $0x80] sm:$0xf] %vm1777_vm0, %v2357_v40 }
 0x4a0   : > { %v3004_v29 = vpop.permute.xlu1 %3003  ;;  %3045 = vrot.lane.b32.xlu0 %v5698_v28, %s4482_s12 }
 0x4a1   : > { %3854 = vst.msk [vmem:[%s5308_s26 + $0x184] sm:$0xf] %vm1777_vm0, %v3004_v29 }
 0x4a2   : > { %2757 = vrot.lane.b32.xlu1 %v7165_v54, %s4481_s10  ;;  %v2744_v45 = vpop.permute.xlu0 %2743 }
 0x4a3   : > { %3789 = vst.msk [vmem:[%s5318_s28 + $0x100] sm:$0xf] %vm1777_vm0, %v2744_v45 }
 0x4a4   : > { %v2359_v32 = vpop.permute.xlu1 %2358  ;;  %3049 = vrot.lane.b32.xlu0 %v5754_v10, %s4482_s12 }
 0x4a5   : > { %3694 = vst.msk [vmem:[%s5318_s28 + $0x84] sm:$0xf] %vm1777_vm0, %v2359_v32 }
 0x4a6   : > { %3047 = vrot.lane.b32.xlu1 %v5712_v6, %s4482_s12  ;;  %v2280_v28 = vpop.permute.xlu0 %2279 }
 0x4a7   : > { %3687 = vst.msk [vmem:[%s5308_s26 + $0xe8] sm:$0xf] %vm1777_vm0, %v2280_v28 }
 0x4a8   : > { %v2746_v23 = vpop.permute.xlu1 %2745  ;;  %3053 = vrot.lane.b32.xlu0 %v5810_v47, %s4482_s12 }
 0x4a9   : > { %3790 = vst.msk [vmem:[%s5318_s28 + $0x104] sm:$0xf] %vm1777_vm0, %v2746_v23 }
 0x4aa   : > { %3051 = vrot.lane.b32.xlu1 %v7144_v38, %s4482_s12  ;;  %v2667_v10 = vpop.permute.xlu0 %2666 }
 0x4ab   : > { %3783 = vst.msk [vmem:[%s5308_s26 + $0x168] sm:$0xf] %vm1777_vm0, %v2667_v10 }
 0x4ac   : > { %v2282_v52 = vpop.permute.xlu1 %2281  ;;  %3057 = vrot.lane.b32.xlu0 %v5866_v13, %s4482_s12 }
 0x4ad   : > { %3688 = vst.msk [vmem:[%s5308_s26 + $0xec] sm:$0xf] %vm1777_vm0, %v2282_v52 }
 0x4ae   : > { %3055 = vrot.lane.b32.xlu1 %v5824_v9, %s4482_s12  ;;  %v2232_v6 = vpop.permute.xlu0 %2231 }
 0x4af   : > { %3663 = vst.msk [vmem:[%s5308_s26 + $0x88] sm:$0xf] %vm1777_vm0, %v2232_v6 }
 0x4b0   : > { %v2669_v47 = vpop.permute.xlu1 %2668  ;;  %3061 = vrot.lane.b32.xlu0 %v5901_v4, %s4482_s12 }
 0x4b1   : > { %3784 = vst.msk [vmem:[%s5308_s26 + $0x16c] sm:$0xf] %vm1777_vm0, %v2669_v47 }
 0x4b2   : > { %3059 = vrot.lane.b32.xlu1 %v5880_v22, %s4482_s12  ;;  %v2409_v13 = vpop.permute.xlu0 %2408 }
 0x4b3   : > { %3719 = vst.msk [vmem:[%s5318_s28 + $0xe8] sm:$0xf] %vm1777_vm0, %v2409_v13 }
 0x4b4   : > { %v2234_v38 = vpop.permute.xlu1 %2233  ;;  %3130 = vrot.lane.b32.xlu0 %v7149_v0, %s4482_s12 }
 0x4b5   : > { %3664 = vst.msk [vmem:[%s5308_s26 + $0x8c] sm:$0xf] %vm1777_vm0, %v2234_v38 }
 0x4b6   : > { %3063 = vrot.lane.b32.xlu1 %v5912_v1, %s4482_s12  ;;  %v2619_v9 = vpop.permute.xlu0 %2618 }
 0x4b7   : > { %3759 = vst.msk [vmem:[%s5308_s26 + $0x108] sm:$0xf] %vm1777_vm0, %v2619_v9 }
 0x4b8   : > { %v2411_v4 = vpop.permute.xlu1 %2410  ;;  %3134 = vrot.lane.b32.xlu0 %v7154_v56, %s4482_s12 }
 0x4b9   : > { %3720 = vst.msk [vmem:[%s5318_s28 + $0xec] sm:$0xf] %vm1777_vm0, %v2411_v4 }
 0x4ba   : > { %3132 = vrot.lane.b32.xlu1 %v7150_v39, %s4482_s12  ;;  %v2796_v22 = vpop.permute.xlu0 %2795 }
 0x4bb   : > { %3815 = vst.msk [vmem:[%s5318_s28 + $0x168] sm:$0xf] %vm1777_vm0, %v2796_v22 }
 0x4bc   : > { %v2621_v0 = vpop.permute.xlu1 %2620  ;;  %3138 = vrot.lane.b32.xlu0 %v7160_v14, %s4482_s12 }
 0x4bd   : > { %3760 = vst.msk [vmem:[%s5308_s26 + $0x10c] sm:$0xf] %vm1777_vm0, %v2621_v0 }
 0x4be   : > { %3136 = vrot.lane.b32.xlu1 %v7155_v5, %s4482_s12  ;;  %v3006_v1 = vpop.permute.xlu0 %3005  ;;  %v7166_v5 = vld [vmem:[#allocation12_spill] sm:$0xff] }
 0x4bf   : > { %3855 = vst.msk [vmem:[%s5308_s26 + $0x188] sm:$0xf] %vm1777_vm0, %v3006_v1 }
 0x4c0   : > { %v2798_v56 = vpop.permute.xlu1 %2797  ;;  %3142 = vrot.lane.b32.xlu0 %v7164_v35, %s4482_s12 }
 0x4c1   : > { %3816 = vst.msk [vmem:[%s5318_s28 + $0x16c] sm:$0xf] %vm1777_vm0, %v2798_v56 }
 0x4c2   : > { %3140 = vrot.lane.b32.xlu1 %v7161_v48, %s4482_s12  ;;  %v2361_v39 = vpop.permute.xlu0 %2360  ;;  %v7167_v48 = vld [vmem:[#allocation14_spill] sm:$0xff] }
 0x4c3   : > { %3695 = vst.msk [vmem:[%s5318_s28 + $0x88] sm:$0xf] %vm1777_vm0, %v2361_v39 }
 0x4c4   : > { %v3008_v14 = vpop.permute.xlu1 %3007  ;;  %3146 = vrot.lane.b32.xlu0 %v7166_v5, %s4482_s12 }
 0x4c5   : > { %3856 = vst.msk [vmem:[%s5308_s26 + $0x18c] sm:$0xf] %vm1777_vm0, %v3008_v14 }
 0x4c6   : > { %3144 = vrot.lane.b32.xlu1 %v7165_v54, %s4482_s12  ;;  %v2748_v58 = vpop.permute.xlu0 %2747 }
 0x4c7   : > { %3791 = vst.msk [vmem:[%s5318_s28 + $0x108] sm:$0xf] %vm1777_vm0, %v2748_v58 }
 0x4c8   : > { %v2363_v49 = vpop.permute.xlu1 %2362  ;;  %3150 = vrot.lane.b32.xlu0 %v7167_v48, %s4482_s12 }
 0x4c9   : > { %3696 = vst.msk [vmem:[%s5318_s28 + $0x8c] sm:$0xf] %vm1777_vm0, %v2363_v49 }
 0x4ca   : > { %3148 = vrot.lane.b32.xlu1 %v7168_v19, %s4482_s12  ;;  %v2284_v59 = vpop.permute.xlu0 %2283 }
 0x4cb   : > { %3689 = vst.msk [vmem:[%s5308_s26 + $0xf0] sm:$0xf] %vm1777_vm0, %v2284_v59 }
 0x4cc   : > { %v2750_v18 = vpop.permute.xlu1 %2749  ;;  %3154 = vrot.lane.b32.xlu0 %v5426_v2, %s4482_s12 }
 0x4cd   : > { %3792 = vst.msk [vmem:[%s5318_s28 + $0x10c] sm:$0xf] %vm1777_vm0, %v2750_v18 }
 0x4ce   : > { %3152 = vrot.lane.b32.xlu1 %v7169_v25, %s4482_s12  ;;  %v2671_v55 = vpop.permute.xlu0 %2670 }
 0x4cf   : > { %3785 = vst.msk [vmem:[%s5308_s26 + $0x170] sm:$0xf] %vm1777_vm0, %v2671_v55 }
 0x4d0   : > { %v2286_v61 = vpop.permute.xlu1 %2285  ;;  %3158 = vrot.lane.b32.xlu0 %v5482_v15, %s4482_s12 }
 0x4d1   : > { %3690 = vst.msk [vmem:[%s5308_s26 + $0xf4] sm:$0xf] %vm1777_vm0, %v2286_v61 }
 0x4d2   : > { %3156 = vrot.lane.b32.xlu1 %v5440_v53, %s4482_s12  ;;  %v2236_v2 = vpop.permute.xlu0 %2235 }
 0x4d3   : > { %3665 = vst.msk [vmem:[%s5308_s26 + $0x90] sm:$0xf] %vm1777_vm0, %v2236_v2 }
 0x4d4   : > { %v2673_v41 = vpop.permute.xlu1 %2672  ;;  %3162 = vrot.lane.b32.xlu0 %v5538_v30, %s4482_s12 }
 0x4d5   : > { %3786 = vst.msk [vmem:[%s5308_s26 + $0x174] sm:$0xf] %vm1777_vm0, %v2673_v41 }
 0x4d6   : > { %3160 = vrot.lane.b32.xlu1 %v5496_v12, %s4482_s12  ;;  %v2413_v15 = vpop.permute.xlu0 %2412 }
 0x4d7   : > { %3721 = vst.msk [vmem:[%s5318_s28 + $0xf0] sm:$0xf] %vm1777_vm0, %v2413_v15 }
 0x4d8   : > { %v2238_v34 = vpop.permute.xlu1 %2237  ;;  %3166 = vrot.lane.b32.xlu0 %v5594_v33, %s4482_s12 }
 0x4d9   : > { %3666 = vst.msk [vmem:[%s5308_s26 + $0x94] sm:$0xf] %vm1777_vm0, %v2238_v34 }
 0x4da   : > { %3164 = vrot.lane.b32.xlu1 %v5552_v42, %s4482_s12  ;;  %v2623_v53 = vpop.permute.xlu0 %2622 }
 0x4db   : > { %3761 = vst.msk [vmem:[%s5308_s26 + $0x110] sm:$0xf] %vm1777_vm0, %v2623_v53 }
 0x4dc   : > { %v2415_v30 = vpop.permute.xlu1 %2414  ;;  %3170 = vrot.lane.b32.xlu0 %v5650_v3, %s4482_s12 }
 0x4dd   : > { %3722 = vst.msk [vmem:[%s5318_s28 + $0xf4] sm:$0xf] %vm1777_vm0, %v2415_v30 }
 0x4de   : > { %3168 = vrot.lane.b32.xlu1 %v5608_v17, %s4482_s12  ;;  %v2800_v12 = vpop.permute.xlu0 %2799 }
 0x4df   : > { %3817 = vst.msk [vmem:[%s5318_s28 + $0x170] sm:$0xf] %vm1777_vm0, %v2800_v12 }
 0x4e0   : > { %v2625_v33 = vpop.permute.xlu1 %2624  ;;  %3174 = vrot.lane.b32.xlu0 %v5706_v24, %s4482_s12 }
 0x4e1   : > { %3762 = vst.msk [vmem:[%s5308_s26 + $0x114] sm:$0xf] %vm1777_vm0, %v2625_v33 }
 0x4e2   : > { %3172 = vrot.lane.b32.xlu1 %v5664_v46, %s4482_s12  ;;  %v3010_v42 = vpop.permute.xlu0 %3009 }
 0x4e3   : > { %3857 = vst.msk [vmem:[%s5308_s26 + $0x190] sm:$0xf] %vm1777_vm0, %v3010_v42 }
 0x4e4   : > { %v2802_v3 = vpop.permute.xlu1 %2801  ;;  %3178 = vrot.lane.b32.xlu0 %v7146_v51, %s4482_s12 }
 0x4e5   : > { %3818 = vst.msk [vmem:[%s5318_s28 + $0x174] sm:$0xf] %vm1777_vm0, %v2802_v3 }
 0x4e6   : > { %3176 = vrot.lane.b32.xlu1 %v7141_v57, %s4482_s12  ;;  %v2365_v17 = vpop.permute.xlu0 %2364 }
 0x4e7   : > { %3697 = vst.msk [vmem:[%s5318_s28 + $0x90] sm:$0xf] %vm1777_vm0, %v2365_v17 }
 0x4e8   : > { %v3012_v24 = vpop.permute.xlu1 %3011  ;;  %3182 = vrot.lane.b32.xlu0 %v5818_v60, %s4482_s12 }
 0x4e9   : > { %3858 = vst.msk [vmem:[%s5308_s26 + $0x194] sm:$0xf] %vm1777_vm0, %v3012_v24 }
 0x4ea   : > { %3180 = vrot.lane.b32.xlu1 %v7148_v36, %s4482_s12  ;;  %v2752_v46 = vpop.permute.xlu0 %2751 }
 0x4eb   : > { %3793 = vst.msk [vmem:[%s5318_s28 + $0x110] sm:$0xf] %vm1777_vm0, %v2752_v46 }
 0x4ec   : > { %v2367_v51 = vpop.permute.xlu1 %2366  ;;  %3186 = vrot.lane.b32.xlu0 %v7157_v26, %s4482_s12 }
 0x4ed   : > { %3698 = vst.msk [vmem:[%s5318_s28 + $0x94] sm:$0xf] %vm1777_vm0, %v2367_v51 }
 0x4ee   : > { %3184 = vrot.lane.b32.xlu1 %v7153_v43, %s4482_s12  ;;  %v2288_v60 = vpop.permute.xlu0 %2287 }
 0x4ef   : > { %3691 = vst.msk [vmem:[%s5308_s26 + $0xf8] sm:$0xf] %vm1777_vm0, %v2288_v60 }
 0x4f0   : > { %v2754_v57 = vpop.permute.xlu1 %2753  ;;  %3190 = vrot.lane.b32.xlu0 %v5906_v27, %s4482_s12 }
 0x4f1   : > { %3794 = vst.msk [vmem:[%s5318_s28 + $0x114] sm:$0xf] %vm1777_vm0, %v2754_v57 }
 0x4f2   : > { %3188 = vrot.lane.b32.xlu1 %v7159_v7, %s4482_s12  ;;  %v2675_v36 = vpop.permute.xlu0 %2674 }
 0x4f3   : > { %3787 = vst.msk [vmem:[%s5308_s26 + $0x178] sm:$0xf] %vm1777_vm0, %v2675_v36 }
 0x4f4   : > { %v2290_v43 = vpop.permute.xlu1 %2289 }
 0x4f5   : > { %3692 = vst.msk [vmem:[%s5308_s26 + $0xfc] sm:$0xf] %vm1777_vm0, %v2290_v43 }
 0x4f6   : > { %3192 = vrot.lane.b32.xlu1 %v5919_v63, %s4482_s12  ;;  %v2240_v26 = vpop.permute.xlu0 %2239 }
 0x4f7   : > { %3667 = vst.msk [vmem:[%s5308_s26 + $0x98] sm:$0xf] %vm1777_vm0, %v2240_v26 }
 0x4f8   : > { %v2677_v27 = vpop.permute.xlu1 %2676 }
 0x4f9   : > { %3788 = vst.msk [vmem:[%s5308_s26 + $0x17c] sm:$0xf] %vm1777_vm0, %v2677_v27 }
 0x4fa   : > { %v2417_v7 = vpop.permute.xlu0 %2416 }
 0x4fb   : > { %3723 = vst.msk [vmem:[%s5318_s28 + $0xf8] sm:$0xf] %vm1777_vm0, %v2417_v7 }
 0x4fc   : > { %v2242_v11 = vpop.permute.xlu1 %2241 }
 0x4fd   : > { %3668 = vst.msk [vmem:[%s5308_s26 + $0x9c] sm:$0xf] %vm1777_vm0, %v2242_v11 }
 0x4fe   : > { %v2627_v44 = vpop.permute.xlu0 %2626 }
 0x4ff   : > { %3763 = vst.msk [vmem:[%s5308_s26 + $0x118] sm:$0xf] %vm1777_vm0, %v2627_v44 }
 0x500   : > { %v2419_v63 = vpop.permute.xlu1 %2418 }
 0x501   : > { %3724 = vst.msk [vmem:[%s5318_s28 + $0xfc] sm:$0xf] %vm1777_vm0, %v2419_v63 }
 0x502   : > { %v2804_v21 = vpop.permute.xlu0 %2803 }
 0x503   : > { %3819 = vst.msk [vmem:[%s5318_s28 + $0x178] sm:$0xf] %vm1777_vm0, %v2804_v21 }
 0x504   : > { %v2629_v20 = vpop.permute.xlu1 %2628 }
 0x505   : > { %3764 = vst.msk [vmem:[%s5308_s26 + $0x11c] sm:$0xf] %vm1777_vm0, %v2629_v20 }
 0x506   : > { %v3014_v31 = vpop.permute.xlu0 %3013 }
 0x507   : > { %3859 = vst.msk [vmem:[%s5308_s26 + $0x198] sm:$0xf] %vm1777_vm0, %v3014_v31 }
 0x508   : > { %v2806_v16 = vpop.permute.xlu1 %2805 }
 0x509   : > { %3820 = vst.msk [vmem:[%s5318_s28 + $0x17c] sm:$0xf] %vm1777_vm0, %v2806_v16 }
 0x50a   : > { %v2369_v50 = vpop.permute.xlu0 %2368 }
 0x50b   : > { %3699 = vst.msk [vmem:[%s5318_s28 + $0x98] sm:$0xf] %vm1777_vm0, %v2369_v50 }
 0x50c   : > { %v3016_v8 = vpop.permute.xlu1 %3015 }
 0x50d   : > { %3860 = vst.msk [vmem:[%s5308_s26 + $0x19c] sm:$0xf] %vm1777_vm0, %v3016_v8 }
 0x50e   : > { %v2756_v35 = vpop.permute.xlu0 %2755 }
 0x50f   : > { %3795 = vst.msk [vmem:[%s5318_s28 + $0x118] sm:$0xf] %vm1777_vm0, %v2756_v35 }
 0x510   : > { %v2371_v37 = vpop.permute.xlu1 %2370 }
 0x511   : > { %3700 = vst.msk [vmem:[%s5318_s28 + $0x9c] sm:$0xf] %vm1777_vm0, %v2371_v37 }
 0x512   : > { %v3046_v62 = vpop.permute.xlu0 %3045 }
 0x513   : > { %3875 = vst.msk [vmem:[%s5308_s26 + $0x1d8] sm:$0xf] %vm1777_vm0, %v3046_v62 }
 0x514   : > { %v2758_v54 = vpop.permute.xlu1 %2757 }
 0x515   : > { %3796 = vst.msk [vmem:[%s5318_s28 + $0x11c] sm:$0xf] %vm1777_vm0, %v2758_v54 }
 0x516   : > { %v3050_v40 = vpop.permute.xlu0 %3049 }
 0x517   : > { %3877 = vst.msk [vmem:[%s5308_s26 + $0x1e0] sm:$0xf] %vm1777_vm0, %v3050_v40 }
 0x518   : > { %v3048_v29 = vpop.permute.xlu1 %3047 }
 0x519   : > { %3876 = vst.msk [vmem:[%s5308_s26 + $0x1dc] sm:$0xf] %vm1777_vm0, %v3048_v29 }
 0x51a   : > { %v3054_v45 = vpop.permute.xlu0 %3053 }
 0x51b   : > { %3879 = vst.msk [vmem:[%s5308_s26 + $0x1e8] sm:$0xf] %vm1777_vm0, %v3054_v45 }
 0x51c   : > { %v3052_v32 = vpop.permute.xlu1 %3051 }
 0x51d   : > { %3878 = vst.msk [vmem:[%s5308_s26 + $0x1e4] sm:$0xf] %vm1777_vm0, %v3052_v32 }
 0x51e   : > { %v3058_v28 = vpop.permute.xlu0 %3057 }
 0x51f   : > { %3881 = vst.msk [vmem:[%s5308_s26 + $0x1f0] sm:$0xf] %vm1777_vm0, %v3058_v28 }
 0x520   : > { %v3056_v23 = vpop.permute.xlu1 %3055 }
 0x521   : > { %3880 = vst.msk [vmem:[%s5308_s26 + $0x1ec] sm:$0xf] %vm1777_vm0, %v3056_v23 }
 0x522   : > { %v3062_v10 = vpop.permute.xlu0 %3061 }
 0x523   : > { %3883 = vst.msk [vmem:[%s5308_s26 + $0x1f8] sm:$0xf] %vm1777_vm0, %v3062_v10 }
 0x524   : > { %v3060_v52 = vpop.permute.xlu1 %3059 }
 0x525   : > { %3882 = vst.msk [vmem:[%s5308_s26 + $0x1f4] sm:$0xf] %vm1777_vm0, %v3060_v52 }
 0x526   : > { %v3131_v6 = vpop.permute.xlu0 %3130 }
 0x527   : > { %3885 = vst.msk [vmem:[%s5318_s28 + $0x180] sm:$0xf] %vm1777_vm0, %v3131_v6 }
 0x528   : > { %v3064_v47 = vpop.permute.xlu1 %3063 }
 0x529   : > { %3884 = vst.msk [vmem:[%s5308_s26 + $0x1fc] sm:$0xf] %vm1777_vm0, %v3064_v47 }
 0x52a   : > { %v3135_v13 = vpop.permute.xlu0 %3134 }
 0x52b   : > { %3887 = vst.msk [vmem:[%s5318_s28 + $0x188] sm:$0xf] %vm1777_vm0, %v3135_v13 }
 0x52c   : > { %v3133_v38 = vpop.permute.xlu1 %3132 }
 0x52d   : > { %3886 = vst.msk [vmem:[%s5318_s28 + $0x184] sm:$0xf] %vm1777_vm0, %v3133_v38 }
 0x52e   : > { %v3139_v9 = vpop.permute.xlu0 %3138 }
 0x52f   : > { %3889 = vst.msk [vmem:[%s5318_s28 + $0x190] sm:$0xf] %vm1777_vm0, %v3139_v9 }
 0x530   : > { %v3137_v4 = vpop.permute.xlu1 %3136 }
 0x531   : > { %3888 = vst.msk [vmem:[%s5318_s28 + $0x18c] sm:$0xf] %vm1777_vm0, %v3137_v4 }
 0x532   : > { %v3143_v22 = vpop.permute.xlu0 %3142 }
 0x533   : > { %3891 = vst.msk [vmem:[%s5318_s28 + $0x198] sm:$0xf] %vm1777_vm0, %v3143_v22 }
 0x534   : > { %v3141_v0 = vpop.permute.xlu1 %3140 }
 0x535   : > { %3890 = vst.msk [vmem:[%s5318_s28 + $0x194] sm:$0xf] %vm1777_vm0, %v3141_v0 }
 0x536   : > { %v3147_v1 = vpop.permute.xlu0 %3146 }
 0x537   : > { %3893 = vst.msk [vmem:[%s5318_s28 + $0x1a0] sm:$0xf] %vm1777_vm0, %v3147_v1 }
 0x538   : > { %v3145_v56 = vpop.permute.xlu1 %3144 }
 0x539   : > { %3892 = vst.msk [vmem:[%s5318_s28 + $0x19c] sm:$0xf] %vm1777_vm0, %v3145_v56 }
 0x53a   : > { %v3151_v39 = vpop.permute.xlu0 %3150 }
 0x53b   : > { %3895 = vst.msk [vmem:[%s5318_s28 + $0x1a8] sm:$0xf] %vm1777_vm0, %v3151_v39 }
 0x53c   : > { %v3149_v14 = vpop.permute.xlu1 %3148 }
 0x53d   : > { %3894 = vst.msk [vmem:[%s5318_s28 + $0x1a4] sm:$0xf] %vm1777_vm0, %v3149_v14 }
 0x53e   : > { %v3155_v5 = vpop.permute.xlu0 %3154 }
 0x53f   : > { %3897 = vst.msk [vmem:[%s5318_s28 + $0x1b0] sm:$0xf] %vm1777_vm0, %v3155_v5 }
 0x540   : > { %v3153_v58 = vpop.permute.xlu1 %3152 }
 0x541   : > { %3896 = vst.msk [vmem:[%s5318_s28 + $0x1ac] sm:$0xf] %vm1777_vm0, %v3153_v58 }
 0x542   : > { %v3159_v49 = vpop.permute.xlu0 %3158 }
 0x543   : > { %3899 = vst.msk [vmem:[%s5318_s28 + $0x1b8] sm:$0xf] %vm1777_vm0, %v3159_v49 }
 0x544   : > { %v3157_v48 = vpop.permute.xlu1 %3156 }
 0x545   : > { %3898 = vst.msk [vmem:[%s5318_s28 + $0x1b4] sm:$0xf] %vm1777_vm0, %v3157_v48 }
 0x546   : > { %v3163_v19 = vpop.permute.xlu0 %3162 }
 0x547   : > { %3901 = vst.msk [vmem:[%s5318_s28 + $0x1c0] sm:$0xf] %vm1777_vm0, %v3163_v19 }
 0x548   : > { %v3161_v59 = vpop.permute.xlu1 %3160 }
 0x549   : > { %3900 = vst.msk [vmem:[%s5318_s28 + $0x1bc] sm:$0xf] %vm1777_vm0, %v3161_v59 }
 0x54a   : > { %v3167_v18 = vpop.permute.xlu0 %3166 }
 0x54b   : > { %3903 = vst.msk [vmem:[%s5318_s28 + $0x1c8] sm:$0xf] %vm1777_vm0, %v3167_v18 }
 0x54c   : > { %v3165_v25 = vpop.permute.xlu1 %3164 }
 0x54d   : > { %3902 = vst.msk [vmem:[%s5318_s28 + $0x1c4] sm:$0xf] %vm1777_vm0, %v3165_v25 }
 0x54e   : > { %v3171_v55 = vpop.permute.xlu0 %3170 }
 0x54f   : > { %3905 = vst.msk [vmem:[%s5318_s28 + $0x1d0] sm:$0xf] %vm1777_vm0, %v3171_v55 }
 0x550   : > { %v3169_v61 = vpop.permute.xlu1 %3168 }
 0x551   : > { %3904 = vst.msk [vmem:[%s5318_s28 + $0x1cc] sm:$0xf] %vm1777_vm0, %v3169_v61 }
 0x552   : > { %v3175_v2 = vpop.permute.xlu0 %3174 }
 0x553   : > { %3907 = vst.msk [vmem:[%s5318_s28 + $0x1d8] sm:$0xf] %vm1777_vm0, %v3175_v2 }
 0x554   : > { %v3173_v41 = vpop.permute.xlu1 %3172 }
 0x555   : > { %3906 = vst.msk [vmem:[%s5318_s28 + $0x1d4] sm:$0xf] %vm1777_vm0, %v3173_v41 }
 0x556   : > { %v3179_v15 = vpop.permute.xlu0 %3178 }
 0x557   : > { %3909 = vst.msk [vmem:[%s5318_s28 + $0x1e0] sm:$0xf] %vm1777_vm0, %v3179_v15 }
 0x558   : > { %v3177_v34 = vpop.permute.xlu1 %3176 }
 0x559   : > { %3908 = vst.msk [vmem:[%s5318_s28 + $0x1dc] sm:$0xf] %vm1777_vm0, %v3177_v34 }
 0x55a   : > { %v3183_v53 = vpop.permute.xlu0 %3182 }
 0x55b   : > { %3911 = vst.msk [vmem:[%s5318_s28 + $0x1e8] sm:$0xf] %vm1777_vm0, %v3183_v53 }
 0x55c   : > { %v3181_v30 = vpop.permute.xlu1 %3180 }
 0x55d   : > { %3910 = vst.msk [vmem:[%s5318_s28 + $0x1e4] sm:$0xf] %vm1777_vm0, %v3181_v30 }
 0x55e   : > { %v3187_v12 = vpop.permute.xlu0 %3186 }
 0x55f   : > { %3913 = vst.msk [vmem:[%s5318_s28 + $0x1f0] sm:$0xf] %vm1777_vm0, %v3187_v12 }
 0x560   : > { %v3185_v33 = vpop.permute.xlu1 %3184 }
 0x561   : > { %3912 = vst.msk [vmem:[%s5318_s28 + $0x1ec] sm:$0xf] %vm1777_vm0, %v3185_v33 }
 0x562   : > { %v3191_v42 = vpop.permute.xlu0 %3190 }
 0x563   : > { %3915 = vst.msk [vmem:[%s5318_s28 + $0x1f8] sm:$0xf] %vm1777_vm0, %v3191_v42 }
 0x564   : > { %v3189_v3 = vpop.permute.xlu1 %3188 }
 0x565   : > { %3914 = vst.msk [vmem:[%s5318_s28 + $0x1f4] sm:$0xf] %vm1777_vm0, %v3189_v3 }
 0x568   : > { %v3193_v17 = vpop.permute.xlu1 %3192 }
 0x569   : > { %3916 = vst.msk [vmem:[%s5318_s28 + $0x1fc] sm:$0xf] %vm1777_vm0, %v3193_v17 }
 0x56a PF: > { %s26_s18 = sadd.s32 1, %s4469_s18   ;;  %s7170_s27 = smov %s7177_s13 }
 0x56b   : > { %p23_p9 = scmp.ge.s32.totalorder %s26_s18, 4   ;;  %s7171_s13 = smov %s4453_s14 }
 0x56c   : > { %s7172_s14 = smov %s4457_s15  ;;  %s7173_s15 = smov %s4678_s19 }
 0x56d   : > { %s7174_s16 = smov %s4465_s17  ;;  %s7175_s17 = smov %s7170_s27 }
 0x56e   :  { %25 = sbr.rel (!%p23_p9) target bundleno = 11 (0xb), region = 138 }
 0x575   :  { %3339 = vsyncpa [#allocation3], 1 }
 0x576   :  { %3341 = vsyncpa [#allocation3 + $0x1], 1 }
 0x577   :  { %3342 = vsyncpa [#allocation5], 1 }
 0x578   :  { %3343 = vsyncpa [#allocation8], 1 }

</bundles_post_ra>
